<compile_context>
chip_gen: v7x
topology: tpu7x:2x2x1
jax: 0.10.0
libtpu: 0.0.40
codegen_flags: <defaults>
</compile_context>

<pallas_src>
import functools
import math

import jax
import jax.numpy as jnp
from jax import lax
from jax.experimental import pallas as pl
from jax.experimental.pallas import tpu as pltpu


def _transformer_layer_kernel(x_ref, wqkv_ref, wip_ref, bin_ref, wo_ref,
                              bo_ref, w1_ref, w2_ref, out_ref,
                              *, num_heads, batch_tile, seq_len):
    # x_ref    : (M, C)    slab of Bb batch elements, M = Bb*S, C lane-dense
    # wqkv_ref : (3C, C)   concat(Wq, Wk, Wv), PyTorch (out, in) layout, bf16
    # wip_ref  : (3C, C)   MHA packed in-projection weight, (out, in), bf16
    # bin_ref  : (3, C)    MHA in-projection biases (q, k, v rows), f32
    # wo_ref   : (C, C)    MHA out-projection weight, (out, in), bf16
    # bo_ref   : (1, C)    MHA out-projection bias, f32
    # w1/w2    : (C, C)    fc1 / fc2 weights, (out, in), bf16
    # out_ref  : (M, C)
    M, C = x_ref.shape
    H, S, Bb = num_heads, seq_len, batch_tile
    D = C // H
    scale = 1.0 / math.sqrt(D)

    def mm(a, w_bf16):
        # a @ w.T with w kept in PyTorch (out, in) layout: bf16 MXU, f32 acc.
        return lax.dot_general(a.astype(jnp.bfloat16), w_bf16,
                               (((1,), (1,)), ((), ())),
                               preferred_element_type=jnp.float32)

    x = x_ref[...].astype(jnp.float32)                         # (M, C)

    # ----- external q / k / v linears (bias=False), fused: one GEMM, N=3C ---
    qkv = mm(x, wqkv_ref[...])                                 # (M, 3C)

    # ----- MHA in-projection (+bias), issued back-to-back -------------------
    Q = mm(qkv[:, 0:C],         wip_ref[0:C, :])         + bin_ref[0:1, :]
    K = mm(qkv[:, C:2 * C],     wip_ref[C:2 * C, :])     + bin_ref[1:2, :]
    V = mm(qkv[:, 2 * C:3 * C], wip_ref[2 * C:3 * C, :]) + bin_ref[2:3, :]

    # ----- per-head attention, batched over the Bb batch elements -----------
    # (M, C) -> (Bb, S, C) is a free leading-dim split (S multiple of 8).
    Q3 = Q.reshape(Bb, S, C).astype(jnp.bfloat16)
    K3 = K.reshape(Bb, S, C).astype(jnp.bfloat16)
    V3 = V.reshape(Bb, S, C).astype(jnp.bfloat16)

    head_out = []
    for h in range(H):
        lo = h * D
        # (Bb,S,D) x (Bb,S,D) -> (Bb,S,S)   == einsum('bqd,bkd->bqk')
        s = lax.dot_general(Q3[:, :, lo:lo + D], K3[:, :, lo:lo + D],
                            (((2,), (2,)), ((0,), (0,))),
                            preferred_element_type=jnp.float32) * scale
        m = jnp.max(s, axis=-1, keepdims=True)
        e = jnp.exp(s - m)
        p = e * pl.reciprocal(jnp.sum(e, axis=-1, keepdims=True), approx=True)
        # (Bb,S,S) x (Bb,S,D) -> (Bb,S,D)   == einsum('bqk,bkd->bqd')
        oh = lax.dot_general(p.astype(jnp.bfloat16), V3[:, :, lo:lo + D],
                             (((2,), (1,)), ((0,), (0,))),
                             preferred_element_type=jnp.float32)
        head_out.append(oh.reshape(M, D))

    # lane-concat heads -> single full-K out-projection GEMM
    o_cat = jnp.concatenate(head_out, axis=-1)                 # (M, C)

    # ----- out-projection (+bias) and first residual ------------------------
    x1 = mm(o_cat, wo_ref[...]) + bo_ref[...] + x              # (M, C)

    # ----- feed-forward (bias-free) + second residual ------------------------
    y = mm(mm(x1, w1_ref[...]), w2_ref[...]) + x1

    out_ref[...] = y.astype(out_ref.dtype)


def _pick_batch_tile(batch, seq, min_rows=128):
    """Smallest divisor of `batch` whose slab has >= min_rows GEMM rows.

    Keeps M >= 128 for MXU fill while leaving >= 2 grid steps when possible
    (v7x: both TensorCores get a slab via 'parallel' semantics).
    """
    for bb in range(1, batch + 1):
        if batch % bb != 0:
            continue
        rows = bb * seq
        if rows >= min_rows and (rows % 8 == 0 or bb == batch):
            return bb
    return batch


@functools.partial(jax.jit, static_argnames=("num_heads",))
def transformer_layer(x_sbc, wq, wk, wv, in_proj_w, in_proj_b,
                      out_proj_w, out_proj_b, w1, w2, *, num_heads):
    """PyTorch-convention entry point.

    x_sbc      : (S, B, C)   seq-first, as nn.MultiheadAttention expects
    wq/wk/wv   : (C, C)      nn.Linear weights, (out, in), bias=False
    in_proj_w  : (3C, C)     MHA packed in-projection weight, (out, in)
    in_proj_b  : (3C,)       MHA packed in-projection bias
    out_proj_w : (C, C)      (out, in);  out_proj_b : (C,)
    w1, w2     : (C, C)      fc1 / fc2 weights, (out, in), bias=False
    """
    S, B, C = x_sbc.shape
    assert C % num_heads == 0
    Bb = _pick_batch_tile(B, S)
    M = Bb * S
    n_steps = B // Bb

    # Weight-sized glue only (no (out,in) weight relayouts):
    #  - fuse Wq|Wk|Wv along the out dim (contiguous concat, no transpose),
    #  - cast weights once to bf16 (MXU-native, halves DMA + VMEM),
    #  - biases to 2-D for lane-dense broadcast.
    wqkv = jnp.concatenate([wq, wk, wv], axis=0).astype(jnp.bfloat16)   # (3C,C)
    wip = in_proj_w.astype(jnp.bfloat16)                                # (3C,C)
    wo = out_proj_w.astype(jnp.bfloat16)                                # (C,C)
    w1b = w1.astype(jnp.bfloat16)
    w2b = w2.astype(jnp.bfloat16)
    b_in = in_proj_b.reshape(3, C).astype(jnp.float32)
    bo = out_proj_b.reshape(1, C).astype(jnp.float32)

    # One (S,B,C)->(B,S,C) transpose so each batch element's rows form a
    # contiguous slab of the flattened M dimension (attention grouping);
    # the (B,S,C)->(B*S,C) reshape is a free leading-dim collapse.
    # TODO(synk): for very long sequences, feed seq-first and regroup
    # in-kernel (plus flash-style online softmax) to save this HBM pass.
    x2d = jnp.transpose(x_sbc, (1, 0, 2)).reshape(B * S, C)

    def winv(shape):
        # Grid-invariant weight / bias block. At C=128 double-buffering costs
        # <1 MiB; for large C add pipeline_mode=pl.Buffered(1) to single-buffer
        # (v7x has only 64 MiB physical VMEM).
        return pl.BlockSpec(shape, lambda i: (0, 0))

    out2d = pl.pallas_call(
        functools.partial(_transformer_layer_kernel, num_heads=num_heads,
                          batch_tile=Bb, seq_len=S),
        out_shape=jax.ShapeDtypeStruct((B * S, C), x_sbc.dtype),
        grid_spec=pltpu.PrefetchScalarGridSpec(
            num_scalar_prefetch=0,
            grid=(n_steps,),
            in_specs=[
                pl.BlockSpec((M, C), lambda i: (i, 0)),   # activation slab
                winv((3 * C, C)),                         # fused Wq|Wk|Wv
                winv((3 * C, C)),                         # MHA in-proj weight
                winv((3, C)),                             # MHA in-proj bias
                winv((C, C)),                             # MHA out-proj weight
                winv((1, C)),                             # MHA out-proj bias
                winv((C, C)),                             # fc1
                winv((C, C)),                             # fc2
            ],
            out_specs=pl.BlockSpec((M, C), lambda i: (i, 0)),
        ),
        compiler_params=pltpu.CompilerParams(
            dimension_semantics=("parallel",),            # v7x: 2 TCs, 1 slab each
            vmem_limit_bytes=32 * 1024 * 1024),
    )(x2d, wqkv, wip, b_in, wo, bo, w1b, w2b)

    return jnp.transpose(out2d.reshape(B, S, C), (1, 0, 2))   # back to (S,B,C)


def _reference_transformer_layer(x_sbc, wq, wk, wv, in_proj_w, in_proj_b,
                                 out_proj_w, out_proj_b, w1, w2, num_heads):
    """Pure-JAX reference matching PyTorch TransformerLayer.forward."""
    S, B, C = x_sbc.shape
    D = C // num_heads
    hp = lax.Precision.HIGHEST

    def lin(t, w):                                         # nn.Linear, no bias
        return jnp.einsum('sbc,oc->sbo', t, w, precision=hp)

    q = lin(x_sbc, wq)
    k = lin(x_sbc, wk)
    v = lin(x_sbc, wv)

    Q = lin(q, in_proj_w[:C]) + in_proj_b[:C]
    K = lin(k, in_proj_w[C:2 * C]) + in_proj_b[C:2 * C]
    V = lin(v, in_proj_w[2 * C:]) + in_proj_b[2 * C:]

    def heads(t):                                          # (S,B,C) -> (B,H,S,D)
        return jnp.transpose(t.reshape(S, B, num_heads, D), (1, 2, 0, 3))

    Qh, Kh, Vh = heads(Q), heads(K), heads(V)
    s = jnp.einsum('bhqd,bhkd->bhqk', Qh, Kh, precision=hp) / math.sqrt(D)
    p = jax.nn.softmax(s, axis=-1)
    o = jnp.einsum('bhqk,bhkd->bhqd', p, Vh, precision=hp)
    o = jnp.transpose(o, (2, 0, 1, 3)).reshape(S, B, C)
    mha = lin(o, out_proj_w) + out_proj_b
    x1 = mha + x_sbc
    return lin(lin(x1, w1), w2) + x1


if __name__ == "__main__":
    # Small shapes: seq=64, batch=4, embed c=128 (lane-dense), 4 heads.
    # -> batch tile Bb=2, grid of 2 "parallel" steps, each GEMM slab M=128.
    S, B, C, H = 64, 4, 128, 4
    key = jax.random.PRNGKey(0)
    ks = jax.random.split(key, 10)
    bound = 1.0 / math.sqrt(C)

    x = jax.random.normal(ks[0], (S, B, C), jnp.float32)
    wq = jax.random.uniform(ks[1], (C, C), jnp.float32, -bound, bound)
    wk = jax.random.uniform(ks[2], (C, C), jnp.float32, -bound, bound)
    wv = jax.random.uniform(ks[3], (C, C), jnp.float32, -bound, bound)
    in_proj_w = jax.random.uniform(ks[4], (3 * C, C), jnp.float32, -bound, bound)
    in_proj_b = jax.random.uniform(ks[5], (3 * C,), jnp.float32, -bound, bound)
    out_proj_w = jax.random.uniform(ks[6], (C, C), jnp.float32, -bound, bound)
    out_proj_b = jax.random.uniform(ks[7], (C,), jnp.float32, -bound, bound)
    w1 = jax.random.uniform(ks[8], (C, C), jnp.float32, -bound, bound)
    w2 = jax.random.uniform(ks[9], (C, C), jnp.float32, -bound, bound)

    out = transformer_layer(x, wq, wk, wv, in_proj_w, in_proj_b,
                            out_proj_w, out_proj_b, w1, w2, num_heads=H)
    out = jax.block_until_ready(out)

    ref = _reference_transformer_layer(x, wq, wk, wv, in_proj_w, in_proj_b,
                                       out_proj_w, out_proj_b, w1, w2, H)
    assert out.shape == (S, B, C)
    # bf16 MXU inputs (f32 accumulation): check relative L2 error vs the
    # HIGHEST-precision f32 reference (typically ~0.3%; threshold 2%).
    rel_err = float(jnp.linalg.norm(out - ref) / jnp.linalg.norm(ref))
    assert rel_err < 2e-2, f"mismatch vs reference: rel_l2={rel_err:.3e}"

    print("KERNEL_OK")
</pallas_src>

<mosaic_0001>
module attributes {stable_mosaic.version = 11 : i64} {
  func.func @_transformer_layer_kernel(%arg0: i32, %arg1: memref<128x128xf32, #tpu.memory_space<vmem>>, %arg2: memref<384x128xbf16, #tpu.memory_space<vmem>>, %arg3: memref<384x128xbf16, #tpu.memory_space<vmem>>, %arg4: memref<3x128xf32, #tpu.memory_space<vmem>>, %arg5: memref<128x128xbf16, #tpu.memory_space<vmem>>, %arg6: memref<1x128xf32, #tpu.memory_space<vmem>>, %arg7: memref<128x128xbf16, #tpu.memory_space<vmem>>, %arg8: memref<128x128xbf16, #tpu.memory_space<vmem>>, %arg9: memref<128x128xf32, #tpu.memory_space<vmem>>) attributes {dimension_semantics = [#tpu.dimension_semantics<parallel>], iteration_bounds = array<i64: 2>, scalar_prefetch = 0 : i64, scratch_operands = 0 : i64, tpu.core_type = #tpu.core_type<tc>, window_params = [{transform_indices = @transform_0, window_bounds = array<i64: 128, 128>}, {pipeline_mode = #tpu.pipeline_mode<synchronous>, transform_indices = @transform_1, window_bounds = array<i64: 384, 128>}, {pipeline_mode = #tpu.pipeline_mode<synchronous>, transform_indices = @transform_2, window_bounds = array<i64: 384, 128>}, {pipeline_mode = #tpu.pipeline_mode<synchronous>, transform_indices = @transform_3, window_bounds = array<i64: 3, 128>}, {pipeline_mode = #tpu.pipeline_mode<synchronous>, transform_indices = @transform_4, window_bounds = array<i64: 128, 128>}, {pipeline_mode = #tpu.pipeline_mode<synchronous>, transform_indices = @transform_5, window_bounds = array<i64: 1, 128>}, {pipeline_mode = #tpu.pipeline_mode<synchronous>, transform_indices = @transform_6, window_bounds = array<i64: 128, 128>}, {pipeline_mode = #tpu.pipeline_mode<synchronous>, transform_indices = @transform_7, window_bounds = array<i64: 128, 128>}, {transform_indices = @transform_8, window_bounds = array<i64: 128, 128>}]} {
    %c0 = arith.constant 0 : index
    %c0_0 = arith.constant 0 : index
    %0 = vector.load %arg1[%c0, %c0_0] : memref<128x128xf32, #tpu.memory_space<vmem>>, vector<128x128xf32>
    %c0_1 = arith.constant 0 : index
    %c0_2 = arith.constant 0 : index
    %1 = vector.load %arg2[%c0_1, %c0_2] : memref<384x128xbf16, #tpu.memory_space<vmem>>, vector<384x128xbf16>
    %2 = arith.truncf %0 : vector<128x128xf32> to vector<128x128xbf16>
    %cst = arith.constant dense<0.000000e+00> : vector<128x384xf32>
    %3 = tpu.matmul %2, %1, %cst {dimension_numbers = #tpu.dot_dimension_numbers<[1], [1], [0], [0], [0, 0, 1, 0], [], []>} : vector<128x128xbf16>, vector<384x128xbf16>, vector<128x384xf32> -> vector<128x384xf32>
    %4 = vector.extract_strided_slice %3 {offsets = [0, 0], sizes = [128, 128], strides = [1, 1]} : vector<128x384xf32> to vector<128x128xf32>
    %c0_3 = arith.constant 0 : index
    %c0_4 = arith.constant 0 : index
    %5 = vector.load %arg3[%c0_3, %c0_4] : memref<384x128xbf16, #tpu.memory_space<vmem>>, vector<128x128xbf16>
    %6 = arith.truncf %4 : vector<128x128xf32> to vector<128x128xbf16>
    %cst_5 = arith.constant dense<0.000000e+00> : vector<128x128xf32>
    %7 = tpu.matmul %6, %5, %cst_5 {dimension_numbers = #tpu.dot_dimension_numbers<[1], [1], [0], [0], [0, 0, 1, 0], [], []>} : vector<128x128xbf16>, vector<128x128xbf16>, vector<128x128xf32> -> vector<128x128xf32>
    %c0_6 = arith.constant 0 : index
    %c0_7 = arith.constant 0 : index
    %8 = vector.load %arg4[%c0_6, %c0_7] : memref<3x128xf32, #tpu.memory_space<vmem>>, vector<1x128xf32>
    %9 = vector.broadcast %8 : vector<1x128xf32> to vector<128x128xf32>
    %10 = arith.addf %7, %9 : vector<128x128xf32>
    %11 = vector.extract_strided_slice %3 {offsets = [0, 128], sizes = [128, 128], strides = [1, 1]} : vector<128x384xf32> to vector<128x128xf32>
    %c128 = arith.constant 128 : index
    %c0_8 = arith.constant 0 : index
    %12 = vector.load %arg3[%c128, %c0_8] : memref<384x128xbf16, #tpu.memory_space<vmem>>, vector<128x128xbf16>
    %13 = arith.truncf %11 : vector<128x128xf32> to vector<128x128xbf16>
    %cst_9 = arith.constant dense<0.000000e+00> : vector<128x128xf32>
    %14 = tpu.matmul %13, %12, %cst_9 {dimension_numbers = #tpu.dot_dimension_numbers<[1], [1], [0], [0], [0, 0, 1, 0], [], []>} : vector<128x128xbf16>, vector<128x128xbf16>, vector<128x128xf32> -> vector<128x128xf32>
    %c1 = arith.constant 1 : index
    %c0_10 = arith.constant 0 : index
    %15 = vector.load %arg4[%c1, %c0_10] : memref<3x128xf32, #tpu.memory_space<vmem>>, vector<1x128xf32>
    %16 = vector.broadcast %15 : vector<1x128xf32> to vector<128x128xf32>
    %17 = arith.addf %14, %16 : vector<128x128xf32>
    %18 = vector.extract_strided_slice %3 {offsets = [0, 256], sizes = [128, 128], strides = [1, 1]} : vector<128x384xf32> to vector<128x128xf32>
    %c256 = arith.constant 256 : index
    %c0_11 = arith.constant 0 : index
    %19 = vector.load %arg3[%c256, %c0_11] : memref<384x128xbf16, #tpu.memory_space<vmem>>, vector<128x128xbf16>
    %20 = arith.truncf %18 : vector<128x128xf32> to vector<128x128xbf16>
    %cst_12 = arith.constant dense<0.000000e+00> : vector<128x128xf32>
    %21 = tpu.matmul %20, %19, %cst_12 {dimension_numbers = #tpu.dot_dimension_numbers<[1], [1], [0], [0], [0, 0, 1, 0], [], []>} : vector<128x128xbf16>, vector<128x128xbf16>, vector<128x128xf32> -> vector<128x128xf32>
    %c2 = arith.constant 2 : index
    %c0_13 = arith.constant 0 : index
    %22 = vector.load %arg4[%c2, %c0_13] : memref<3x128xf32, #tpu.memory_space<vmem>>, vector<1x128xf32>
    %23 = vector.broadcast %22 : vector<1x128xf32> to vector<128x128xf32>
    %24 = arith.addf %21, %23 : vector<128x128xf32>
    %25 = vector.shape_cast %10 : vector<128x128xf32> to vector<2x64x128xf32>
    %26 = arith.truncf %25 : vector<2x64x128xf32> to vector<2x64x128xbf16>
    %27 = vector.shape_cast %17 : vector<128x128xf32> to vector<2x64x128xf32>
    %28 = arith.truncf %27 : vector<2x64x128xf32> to vector<2x64x128xbf16>
    %29 = vector.shape_cast %24 : vector<128x128xf32> to vector<2x64x128xf32>
    %30 = arith.truncf %29 : vector<2x64x128xf32> to vector<2x64x128xbf16>
    %31 = vector.extract_strided_slice %26 {offsets = [0, 0, 0], sizes = [2, 64, 32], strides = [1, 1, 1]} : vector<2x64x128xbf16> to vector<2x64x32xbf16>
    %32 = vector.extract_strided_slice %28 {offsets = [0, 0, 0], sizes = [2, 64, 32], strides = [1, 1, 1]} : vector<2x64x128xbf16> to vector<2x64x32xbf16>
    %cst_14 = arith.constant dense<0.000000e+00> : vector<2x64x64xf32>
    %33 = tpu.matmul %31, %32, %cst_14 {dimension_numbers = #tpu.dot_dimension_numbers<[2], [2], [1], [1], [0, 0, 0, 1, 1, 1], [0], [0]>} : vector<2x64x32xbf16>, vector<2x64x32xbf16>, vector<2x64x64xf32> -> vector<2x64x64xf32>
    %cst_15 = arith.constant 0.176776692 : f32
    %34 = vector.broadcast %cst_15 : f32 to vector<2x64x64xf32>
    %35 = arith.mulf %33, %34 : vector<2x64x64xf32>
    %cst_16 = arith.constant dense<0xFF800000> : vector<2x64xf32>
    %36 = vector.multi_reduction <maximumf>, %35, %cst_16 [2] : vector<2x64x64xf32> to vector<2x64xf32>
    %37 = vector.shape_cast %36 : vector<2x64xf32> to vector<2x64x1xf32>
    %38 = vector.broadcast %37 : vector<2x64x1xf32> to vector<2x64x64xf32>
    %39 = arith.subf %35, %38 : vector<2x64x64xf32>
    %40 = math.exp %39 : vector<2x64x64xf32>
    %cst_17 = arith.constant dense<0.000000e+00> : vector<2x64xf32>
    %41 = vector.multi_reduction <add>, %40, %cst_17 [2] : vector<2x64x64xf32> to vector<2x64xf32>
    %42 = vector.shape_cast %41 : vector<2x64xf32> to vector<2x64x1xf32>
    %43 = tpu.reciprocal %42 {approx = true} : vector<2x64x1xf32> -> vector<2x64x1xf32>
    %44 = vector.broadcast %43 : vector<2x64x1xf32> to vector<2x64x64xf32>
    %45 = arith.mulf %40, %44 : vector<2x64x64xf32>
    %46 = arith.truncf %45 : vector<2x64x64xf32> to vector<2x64x64xbf16>
    %47 = vector.extract_strided_slice %30 {offsets = [0, 0, 0], sizes = [2, 64, 32], strides = [1, 1, 1]} : vector<2x64x128xbf16> to vector<2x64x32xbf16>
    %cst_18 = arith.constant dense<0.000000e+00> : vector<2x64x32xf32>
    %48 = tpu.matmul %46, %47, %cst_18 {dimension_numbers = #tpu.dot_dimension_numbers<[2], [1], [1], [2], [0, 0, 0, 1, 1, 2], [0], [0]>} : vector<2x64x64xbf16>, vector<2x64x32xbf16>, vector<2x64x32xf32> -> vector<2x64x32xf32>
    %49 = vector.shape_cast %48 : vector<2x64x32xf32> to vector<128x32xf32>
    %50 = vector.extract_strided_slice %26 {offsets = [0, 0, 32], sizes = [2, 64, 32], strides = [1, 1, 1]} : vector<2x64x128xbf16> to vector<2x64x32xbf16>
    %51 = vector.extract_strided_slice %28 {offsets = [0, 0, 32], sizes = [2, 64, 32], strides = [1, 1, 1]} : vector<2x64x128xbf16> to vector<2x64x32xbf16>
    %cst_19 = arith.constant dense<0.000000e+00> : vector<2x64x64xf32>
    %52 = tpu.matmul %50, %51, %cst_19 {dimension_numbers = #tpu.dot_dimension_numbers<[2], [2], [1], [1], [0, 0, 0, 1, 1, 1], [0], [0]>} : vector<2x64x32xbf16>, vector<2x64x32xbf16>, vector<2x64x64xf32> -> vector<2x64x64xf32>
    %cst_20 = arith.constant 0.176776692 : f32
    %53 = vector.broadcast %cst_20 : f32 to vector<2x64x64xf32>
    %54 = arith.mulf %52, %53 : vector<2x64x64xf32>
    %cst_21 = arith.constant dense<0xFF800000> : vector<2x64xf32>
    %55 = vector.multi_reduction <maximumf>, %54, %cst_21 [2] : vector<2x64x64xf32> to vector<2x64xf32>
    %56 = vector.shape_cast %55 : vector<2x64xf32> to vector<2x64x1xf32>
    %57 = vector.broadcast %56 : vector<2x64x1xf32> to vector<2x64x64xf32>
    %58 = arith.subf %54, %57 : vector<2x64x64xf32>
    %59 = math.exp %58 : vector<2x64x64xf32>
    %cst_22 = arith.constant dense<0.000000e+00> : vector<2x64xf32>
    %60 = vector.multi_reduction <add>, %59, %cst_22 [2] : vector<2x64x64xf32> to vector<2x64xf32>
    %61 = vector.shape_cast %60 : vector<2x64xf32> to vector<2x64x1xf32>
    %62 = tpu.reciprocal %61 {approx = true} : vector<2x64x1xf32> -> vector<2x64x1xf32>
    %63 = vector.broadcast %62 : vector<2x64x1xf32> to vector<2x64x64xf32>
    %64 = arith.mulf %59, %63 : vector<2x64x64xf32>
    %65 = arith.truncf %64 : vector<2x64x64xf32> to vector<2x64x64xbf16>
    %66 = vector.extract_strided_slice %30 {offsets = [0, 0, 32], sizes = [2, 64, 32], strides = [1, 1, 1]} : vector<2x64x128xbf16> to vector<2x64x32xbf16>
    %cst_23 = arith.constant dense<0.000000e+00> : vector<2x64x32xf32>
    %67 = tpu.matmul %65, %66, %cst_23 {dimension_numbers = #tpu.dot_dimension_numbers<[2], [1], [1], [2], [0, 0, 0, 1, 1, 2], [0], [0]>} : vector<2x64x64xbf16>, vector<2x64x32xbf16>, vector<2x64x32xf32> -> vector<2x64x32xf32>
    %68 = vector.shape_cast %67 : vector<2x64x32xf32> to vector<128x32xf32>
    %69 = vector.extract_strided_slice %26 {offsets = [0, 0, 64], sizes = [2, 64, 32], strides = [1, 1, 1]} : vector<2x64x128xbf16> to vector<2x64x32xbf16>
    %70 = vector.extract_strided_slice %28 {offsets = [0, 0, 64], sizes = [2, 64, 32], strides = [1, 1, 1]} : vector<2x64x128xbf16> to vector<2x64x32xbf16>
    %cst_24 = arith.constant dense<0.000000e+00> : vector<2x64x64xf32>
    %71 = tpu.matmul %69, %70, %cst_24 {dimension_numbers = #tpu.dot_dimension_numbers<[2], [2], [1], [1], [0, 0, 0, 1, 1, 1], [0], [0]>} : vector<2x64x32xbf16>, vector<2x64x32xbf16>, vector<2x64x64xf32> -> vector<2x64x64xf32>
    %cst_25 = arith.constant 0.176776692 : f32
    %72 = vector.broadcast %cst_25 : f32 to vector<2x64x64xf32>
    %73 = arith.mulf %71, %72 : vector<2x64x64xf32>
    %cst_26 = arith.constant dense<0xFF800000> : vector<2x64xf32>
    %74 = vector.multi_reduction <maximumf>, %73, %cst_26 [2] : vector<2x64x64xf32> to vector<2x64xf32>
    %75 = vector.shape_cast %74 : vector<2x64xf32> to vector<2x64x1xf32>
    %76 = vector.broadcast %75 : vector<2x64x1xf32> to vector<2x64x64xf32>
    %77 = arith.subf %73, %76 : vector<2x64x64xf32>
    %78 = math.exp %77 : vector<2x64x64xf32>
    %cst_27 = arith.constant dense<0.000000e+00> : vector<2x64xf32>
    %79 = vector.multi_reduction <add>, %78, %cst_27 [2] : vector<2x64x64xf32> to vector<2x64xf32>
    %80 = vector.shape_cast %79 : vector<2x64xf32> to vector<2x64x1xf32>
    %81 = tpu.reciprocal %80 {approx = true} : vector<2x64x1xf32> -> vector<2x64x1xf32>
    %82 = vector.broadcast %81 : vector<2x64x1xf32> to vector<2x64x64xf32>
    %83 = arith.mulf %78, %82 : vector<2x64x64xf32>
    %84 = arith.truncf %83 : vector<2x64x64xf32> to vector<2x64x64xbf16>
    %85 = vector.extract_strided_slice %30 {offsets = [0, 0, 64], sizes = [2, 64, 32], strides = [1, 1, 1]} : vector<2x64x128xbf16> to vector<2x64x32xbf16>
    %cst_28 = arith.constant dense<0.000000e+00> : vector<2x64x32xf32>
    %86 = tpu.matmul %84, %85, %cst_28 {dimension_numbers = #tpu.dot_dimension_numbers<[2], [1], [1], [2], [0, 0, 0, 1, 1, 2], [0], [0]>} : vector<2x64x64xbf16>, vector<2x64x32xbf16>, vector<2x64x32xf32> -> vector<2x64x32xf32>
    %87 = vector.shape_cast %86 : vector<2x64x32xf32> to vector<128x32xf32>
    %88 = vector.extract_strided_slice %26 {offsets = [0, 0, 96], sizes = [2, 64, 32], strides = [1, 1, 1]} : vector<2x64x128xbf16> to vector<2x64x32xbf16>
    %89 = vector.extract_strided_slice %28 {offsets = [0, 0, 96], sizes = [2, 64, 32], strides = [1, 1, 1]} : vector<2x64x128xbf16> to vector<2x64x32xbf16>
    %cst_29 = arith.constant dense<0.000000e+00> : vector<2x64x64xf32>
    %90 = tpu.matmul %88, %89, %cst_29 {dimension_numbers = #tpu.dot_dimension_numbers<[2], [2], [1], [1], [0, 0, 0, 1, 1, 1], [0], [0]>} : vector<2x64x32xbf16>, vector<2x64x32xbf16>, vector<2x64x64xf32> -> vector<2x64x64xf32>
    %cst_30 = arith.constant 0.176776692 : f32
    %91 = vector.broadcast %cst_30 : f32 to vector<2x64x64xf32>
    %92 = arith.mulf %90, %91 : vector<2x64x64xf32>
    %cst_31 = arith.constant dense<0xFF800000> : vector<2x64xf32>
    %93 = vector.multi_reduction <maximumf>, %92, %cst_31 [2] : vector<2x64x64xf32> to vector<2x64xf32>
    %94 = vector.shape_cast %93 : vector<2x64xf32> to vector<2x64x1xf32>
    %95 = vector.broadcast %94 : vector<2x64x1xf32> to vector<2x64x64xf32>
    %96 = arith.subf %92, %95 : vector<2x64x64xf32>
    %97 = math.exp %96 : vector<2x64x64xf32>
    %cst_32 = arith.constant dense<0.000000e+00> : vector<2x64xf32>
    %98 = vector.multi_reduction <add>, %97, %cst_32 [2] : vector<2x64x64xf32> to vector<2x64xf32>
    %99 = vector.shape_cast %98 : vector<2x64xf32> to vector<2x64x1xf32>
    %100 = tpu.reciprocal %99 {approx = true} : vector<2x64x1xf32> -> vector<2x64x1xf32>
    %101 = vector.broadcast %100 : vector<2x64x1xf32> to vector<2x64x64xf32>
    %102 = arith.mulf %97, %101 : vector<2x64x64xf32>
    %103 = arith.truncf %102 : vector<2x64x64xf32> to vector<2x64x64xbf16>
    %104 = vector.extract_strided_slice %30 {offsets = [0, 0, 96], sizes = [2, 64, 32], strides = [1, 1, 1]} : vector<2x64x128xbf16> to vector<2x64x32xbf16>
    %cst_33 = arith.constant dense<0.000000e+00> : vector<2x64x32xf32>
    %105 = tpu.matmul %103, %104, %cst_33 {dimension_numbers = #tpu.dot_dimension_numbers<[2], [1], [1], [2], [0, 0, 0, 1, 1, 2], [0], [0]>} : vector<2x64x64xbf16>, vector<2x64x32xbf16>, vector<2x64x32xf32> -> vector<2x64x32xf32>
    %106 = vector.shape_cast %105 : vector<2x64x32xf32> to vector<128x32xf32>
    %107 = tpu.concatenate %49, %68, %87, %106 in 1 : vector<128x32xf32>, vector<128x32xf32>, vector<128x32xf32>, vector<128x32xf32> -> vector<128x128xf32>
    %c0_34 = arith.constant 0 : index
    %c0_35 = arith.constant 0 : index
    %108 = vector.load %arg5[%c0_34, %c0_35] : memref<128x128xbf16, #tpu.memory_space<vmem>>, vector<128x128xbf16>
    %109 = arith.truncf %107 : vector<128x128xf32> to vector<128x128xbf16>
    %cst_36 = arith.constant dense<0.000000e+00> : vector<128x128xf32>
    %110 = tpu.matmul %109, %108, %cst_36 {dimension_numbers = #tpu.dot_dimension_numbers<[1], [1], [0], [0], [0, 0, 1, 0], [], []>} : vector<128x128xbf16>, vector<128x128xbf16>, vector<128x128xf32> -> vector<128x128xf32>
    %c0_37 = arith.constant 0 : index
    %c0_38 = arith.constant 0 : index
    %111 = vector.load %arg6[%c0_37, %c0_38] : memref<1x128xf32, #tpu.memory_space<vmem>>, vector<1x128xf32>
    %112 = vector.broadcast %111 : vector<1x128xf32> to vector<128x128xf32>
    %113 = arith.addf %110, %112 : vector<128x128xf32>
    %114 = arith.addf %113, %0 : vector<128x128xf32>
    %c0_39 = arith.constant 0 : index
    %c0_40 = arith.constant 0 : index
    %115 = vector.load %arg7[%c0_39, %c0_40] : memref<128x128xbf16, #tpu.memory_space<vmem>>, vector<128x128xbf16>
    %116 = arith.truncf %114 : vector<128x128xf32> to vector<128x128xbf16>
    %cst_41 = arith.constant dense<0.000000e+00> : vector<128x128xf32>
    %117 = tpu.matmul %116, %115, %cst_41 {dimension_numbers = #tpu.dot_dimension_numbers<[1], [1], [0], [0], [0, 0, 1, 0], [], []>} : vector<128x128xbf16>, vector<128x128xbf16>, vector<128x128xf32> -> vector<128x128xf32>
    %c0_42 = arith.constant 0 : index
    %c0_43 = arith.constant 0 : index
    %118 = vector.load %arg8[%c0_42, %c0_43] : memref<128x128xbf16, #tpu.memory_space<vmem>>, vector<128x128xbf16>
    %119 = arith.truncf %117 : vector<128x128xf32> to vector<128x128xbf16>
    %cst_44 = arith.constant dense<0.000000e+00> : vector<128x128xf32>
    %120 = tpu.matmul %119, %118, %cst_44 {dimension_numbers = #tpu.dot_dimension_numbers<[1], [1], [0], [0], [0, 0, 1, 0], [], []>} : vector<128x128xbf16>, vector<128x128xbf16>, vector<128x128xf32> -> vector<128x128xf32>
    %121 = arith.addf %120, %114 : vector<128x128xf32>
    %c0_45 = arith.constant 0 : index
    %c0_46 = arith.constant 0 : index
    %122 = vector.load %arg9[%c0_45, %c0_46] : memref<128x128xf32, #tpu.memory_space<vmem>>, vector<128x128xf32>
    tpu.vector_store %arg9[%c0_45, %c0_46], %121 {strides = array<i32>} : memref<128x128xf32, #tpu.memory_space<vmem>>, vector<128x128xf32>,
    return
  }
  func.func @transform_0(%arg0: i32) -> (i32, i32) {
    %c0_i32 = arith.constant 0 : i32
    %c0_i32_0 = arith.constant 0 : i32
    return %arg0, %c0_i32 : i32, i32
  }
  func.func @transform_1(%arg0: i32) -> (i32, i32) {
    %c0_i32 = arith.constant 0 : i32
    %c0_i32_0 = arith.constant 0 : i32
    %c0_i32_1 = arith.constant 0 : i32
    return %c0_i32, %c0_i32_0 : i32, i32
  }
  func.func @transform_2(%arg0: i32) -> (i32, i32) {
    %c0_i32 = arith.constant 0 : i32
    %c0_i32_0 = arith.constant 0 : i32
    %c0_i32_1 = arith.constant 0 : i32
    return %c0_i32, %c0_i32_0 : i32, i32
  }
  func.func @transform_3(%arg0: i32) -> (i32, i32) {
    %c0_i32 = arith.constant 0 : i32
    %c0_i32_0 = arith.constant 0 : i32
    %c0_i32_1 = arith.constant 0 : i32
    return %c0_i32, %c0_i32_0 : i32, i32
  }
  func.func @transform_4(%arg0: i32) -> (i32, i32) {
    %c0_i32 = arith.constant 0 : i32
    %c0_i32_0 = arith.constant 0 : i32
    %c0_i32_1 = arith.constant 0 : i32
    return %c0_i32, %c0_i32_0 : i32, i32
  }
  func.func @transform_5(%arg0: i32) -> (i32, i32) {
    %c0_i32 = arith.constant 0 : i32
    %c0_i32_0 = arith.constant 0 : i32
    %c0_i32_1 = arith.constant 0 : i32
    return %c0_i32, %c0_i32_0 : i32, i32
  }
  func.func @transform_6(%arg0: i32) -> (i32, i32) {
    %c0_i32 = arith.constant 0 : i32
    %c0_i32_0 = arith.constant 0 : i32
    %c0_i32_1 = arith.constant 0 : i32
    return %c0_i32, %c0_i32_0 : i32, i32
  }
  func.func @transform_7(%arg0: i32) -> (i32, i32) {
    %c0_i32 = arith.constant 0 : i32
    %c0_i32_0 = arith.constant 0 : i32
    %c0_i32_1 = arith.constant 0 : i32
    return %c0_i32, %c0_i32_0 : i32, i32
  }
  func.func @transform_8(%arg0: i32) -> (i32, i32) {
    %c0_i32 = arith.constant 0 : i32
    %c0_i32_0 = arith.constant 0 : i32
    return %arg0, %c0_i32 : i32, i32
  }
}

</mosaic_0001>

<bundles_post_ra>
// kernel: transformer_layer.1
= control target key start
LH: loop header
LB: loop body
LE: loop exit
PB: predicated region body
PF: predicated region fallthrough
CT: control target
= control target key end

     0   :  { %s5913_s27 = smov 0   ;;  %s7720_s0 = inlined_call_operand.vmem [shape: f32[256,128], index: 0, kind: input, shape index: {}]   ;;  %s7721_s1 = inlined_call_operand.vmem [shape: bf16[384,128], index: 1, kind: input, shape index: {}]   ;;  %s7722_s2 = inlined_call_operand.vmem [shape: bf16[384,128], index: 2, kind: input, shape index: {}]   ;;  %s7723_s3 = inlined_call_operand.vmem [shape: f32[3,128], index: 3, kind: input, shape index: {}]   ;;  %s7724_s4 = inlined_call_operand.vmem [shape: bf16[128,128], index: 4, kind: input, shape index: {}]   ;;  %s7725_s5 = inlined_call_operand.vmem [shape: f32[1,128], index: 5, kind: input, shape index: {}]   ;;  %s7726_s6 = inlined_call_operand.vmem [shape: bf16[128,128], index: 6, kind: input, shape index: {}]   ;;  %s7727_s7 = inlined_call_operand.vmem [shape: bf16[128,128], index: 7, kind: input, shape index: {}]   ;;  %s7728_s8 = inlined_call_operand.vmem [shape: f32[256,128], index: 8, kind: output, shape index: {}]  }
   0x1 LB: > { %s4447_s28 = sadd.s32 4294967295, %s5863_s27   ;;  %p4451_p0 = scmp.ge.s32.totalorder %s5863_s27, 1  ;;  %s5863_s27 = sphi %s5913_s27, %s18_s27  }
   0x2   : > { %p263_p1 = scmp.lt.s32.totalorder %s5863_s27, 3 }
   0x4   : > { %p264_p2 = pnand %p4451_p0, %p263_p1 }
   0x6   : > { %267 = sbr.rel (%p264_p2) target bundleno = 4074 (0xfea), region = 52 }
   0xd   : > { %v5513_v0 = vld [vmem:[%s7721_s1 + $0x40] sm:$0xff]   ;;  %s4452_s9 = sshll.u32 %s4447_s28, 4  ;;  %v5515_v2 = vld [vmem:[%s7721_s1 + $0x48] sm:$0xff]   ;;  %v5517_v4 = vld [vmem:[%s7721_s1 + $0x50] sm:$0xff]   ;;  %vm1282_vm0 = vcmask 261120   ;;  %s5865_s22 = smov 96  }
   0xe   : > { %v5514_v1 = vld [vmem:[%s7721_s1] sm:$0xff]   ;;  %4598 = vmatprep.subr.bf16.mxu0 %v5513_v0  ;;  %p298_p3 = scmp.lt.s32.totalorder %s4452_s9, 31  ;;  %v5516_v3 = vld [vmem:[%s7721_s1 + $0x8] sm:$0xff]   ;;  %v5518_v5 = vld [vmem:[%s7721_s1 + $0x10] sm:$0xff]   ;;  %vm1477_vm1 = vcmask 523264   ;;  %s5866_s25 = smov 64  }
   0xf   : > { %4599 = vmatpush3.bf16.xpose.msra.mxu0 %v5514_v1  ;;  %v5519_v6 = vld [vmem:[%s7721_s1 + $0x58] sm:$0xff]   ;;  %v5529_v10 = vld [vmem:[%s7721_s1 + $0x80] sm:$0xff]   ;;  %v5530_v11 = vld [vmem:[%s7721_s1 + $0x88] sm:$0xff]   ;;  %s5867_s26 = smov 32   ;;  %vm3828_vm2 = vcmask 785408  }
  0x10   : > { %4600 = vmatprep.subr.bf16.mxu0 %v5515_v2  ;;  %s7783_s9 = smov (!%p298_p3, %s4452_s9), 31  ;;  %4870 = vmatprep.subr.bf16.mxu1 %v5529_v10  ;;  %v5520_v12 = vld [vmem:[%s7721_s1 + $0x18] sm:$0xff]   ;;  %v5521_v13 = vld [vmem:[%s7721_s1 + $0x60] sm:$0xff]   ;;  %v5531_v14 = vld [vmem:[%s7721_s1 + $0x90] sm:$0xff]  }
  0x11   : > { %s4453_s18 = sshll.u32 %s7783_s9, 3  ;;  %4871 = vmatpush3.bf16.xpose.msra.mxu1 %v5529_v10  ;;  %v5522_v15 = vld [vmem:[%s7721_s1 + $0x20] sm:$0xff]   ;;  %v5523_v16 = vld [vmem:[%s7721_s1 + $0x68] sm:$0xff]   ;;  %v5532_v17 = vld [vmem:[%s7721_s1 + $0x98] sm:$0xff]  }
  0x12   : > { %s5944_s21 = scalar_lea.vmem %s7720_s0, %s4453_s18  ;;  %4872 = vmatprep.subr.bf16.mxu1 %v5530_v11  ;;  %v5524_v18 = vld [vmem:[%s7721_s1 + $0x28] sm:$0xff]   ;;  %v5525_v19 = vld [vmem:[%s7721_s1 + $0x70] sm:$0xff]   ;;  %v5533_v20 = vld [vmem:[%s7721_s1 + $0xa0] sm:$0xff]   ;;  %s7683_s28 = scalar_lea.vmem %s7728_s8, %s4453_s18 }
  0x13   : > { %v310_v7 = vld [vmem:[%s5944_s21] sm:$0xff]  ;;  %v311_v8 = vld [vmem:[%s5944_s21 + $0x8] sm:$0xff]  ;;  %v5526_v21 = vld [vmem:[%s7721_s1 + $0x30] sm:$0xff]  }
  0x14   : > { %v374_v9 = vpack.c.bf16 %v311_v8, %v310_v7  ;;  %v5527_v22 = vld [vmem:[%s7721_s1 + $0x78] sm:$0xff]   ;;  %v5534_v23 = vld [vmem:[%s7721_s1 + $0xa8] sm:$0xff]   ;;  %v5537_v25 = vld [vmem:[%s7722_s2] sm:$0xff]  }
  0x15   : > { %v5528_v24 = vld [vmem:[%s7721_s1 + $0x38] sm:$0xff]   ;;  %v312_v26 = vld [vmem:[%s5944_s21 + $0x10] sm:$0xff]  ;;  %v5539_v29 = vld [vmem:[%s7722_s2 + $0x8] sm:$0xff]  }
  0x16   : > { %4614 = vmatprep.mubr.bf16.mxu0 %v374_v9  ;;  %4886 = vmatprep.mubr.bf16.mxu1 %v374_v9  ;;  %v313_v27 = vld [vmem:[%s5944_s21 + $0x18] sm:$0xff]  ;;  %v5535_v28 = vld [vmem:[%s7721_s1 + $0xb0] sm:$0xff]   ;;  %v314_v31 = vld [vmem:[%s5944_s21 + $0x20] sm:$0xff] }
  0x17   : > { %4601 = vmatpush3.bf16.xpose.msra.mxu0 %v5516_v3  ;;  %v375_v30 = vpack.c.bf16 %v313_v27, %v312_v26  ;;  %v315_v32 = vld [vmem:[%s5944_s21 + $0x28] sm:$0xff]  ;;  %v5536_v33 = vld [vmem:[%s7721_s1 + $0xb8] sm:$0xff]   ;;  %v5541_v35 = vld [vmem:[%s7722_s2 + $0x10] sm:$0xff]  }
  0x18   : > { %4602 = vmatprep.subr.bf16.mxu0 %v5517_v4  ;;  %v376_v34 = vpack.c.bf16 %v315_v32, %v314_v31  ;;  %v316_v36 = vld [vmem:[%s5944_s21 + $0x30] sm:$0xff]  ;;  %v317_v37 = vld [vmem:[%s5944_s21 + $0x38] sm:$0xff]  ;;  %v5538_v38 = vld [vmem:[%s7722_s2 + $0x40] sm:$0xff]  }
  0x19   : > { %4873 = vmatpush3.bf16.xpose.msra.mxu1 %v5530_v11  ;;  %v377_v39 = vpack.c.bf16 %v317_v37, %v316_v36  ;;  %v5543_v40 = vld [vmem:[%s7722_s2 + $0x18] sm:$0xff]   ;;  %v318_v41 = vld [vmem:[%s5944_s21 + $0x40] sm:$0xff]  ;;  %v319_v42 = vld [vmem:[%s5944_s21 + $0x48] sm:$0xff] }
  0x1a   : > { %4874 = vmatprep.subr.bf16.mxu1 %v5531_v14  ;;  %v5540_v43 = vld [vmem:[%s7722_s2 + $0x48] sm:$0xff]   ;;  %v378_v44 = vpack.c.bf16 %v319_v42, %v318_v41  ;;  %v5545_v45 = vld [vmem:[%s7722_s2 + $0x20] sm:$0xff]   ;;  %v320_v46 = vld [vmem:[%s5944_s21 + $0x50] sm:$0xff] }
  0x1b   : > { %v321_v47 = vld [vmem:[%s5944_s21 + $0x58] sm:$0xff]  ;;  %v5542_v48 = vld [vmem:[%s7722_s2 + $0x50] sm:$0xff]   ;;  %v5547_v50 = vld [vmem:[%s7722_s2 + $0x28] sm:$0xff]  }
  0x1c   : > { %v379_v49 = vpack.c.bf16 %v321_v47, %v320_v46  ;;  %v322_v51 = vld [vmem:[%s5944_s21 + $0x60] sm:$0xff]  ;;  %v323_v52 = vld [vmem:[%s5944_s21 + $0x68] sm:$0xff]  ;;  %v5544_v53 = vld [vmem:[%s7722_s2 + $0x58] sm:$0xff]  }
  0x1d   : > { %v380_v54 = vpack.c.bf16 %v323_v52, %v322_v51  ;;  %v5549_v55 = vld [vmem:[%s7722_s2 + $0x30] sm:$0xff]   ;;  %v325_v57 = vld [vmem:[%s5944_s21 + $0x78] sm:$0xff]  ;;  %v5546_v59 = vld [vmem:[%s7722_s2 + $0x60] sm:$0xff]  }
  0x1e   : > { %v324_v56 = vld [vmem:[%s5944_s21 + $0x70] sm:$0xff]  ;;  %v5548_v60 = vld [vmem:[%s7722_s2 + $0x68] sm:$0xff]   ;;  %v5551_v62 = vld [vmem:[%s7722_s2 + $0x38] sm:$0xff]  }
  0x1f   : > { %4603 = vmatpush3.bf16.xpose.msra.mxu0 %v5518_v5  ;;  %v381_v58 = vpack.c.bf16 %v325_v57, %v324_v56  ;;  %v5550_v61 = vld [vmem:[%s7722_s2 + $0x70] sm:$0xff]   ;;  %v5552_v63 = vld [vmem:[%s7722_s2 + $0x78] sm:$0xff]   ;;  %v5553_v0 = vld [vmem:[%s7722_s2 + $0x80] sm:$0xff]  }
  0x20   : > { %4604 = vmatprep.subr.bf16.mxu0 %v5519_v6  ;;  %v5556_v32 = vld [vmem:[%s7722_s2 + $0x98] sm:$0xff]  }
  0x21   : > { %4875 = vmatpush3.bf16.xpose.msra.mxu1 %v5531_v14 }
  0x22   : > { %4876 = vmatprep.subr.bf16.mxu1 %v5532_v17 }
  0x27   : > { %4605 = vmatpush3.bf16.xpose.msra.mxu0 %v5520_v12  ;;  %v5554_v12 = vld [vmem:[%s7722_s2 + $0x88] sm:$0xff]  }
  0x28   : > { %4606 = vmatprep.subr.bf16.mxu0 %v5521_v13 }
  0x29   : > { %4877 = vmatpush3.bf16.xpose.msra.mxu1 %v5532_v17 }
  0x2a   : > { %4878 = vmatprep.subr.bf16.mxu1 %v5533_v20 }
  0x2f   : > { %4607 = vmatpush3.bf16.xpose.msra.mxu0 %v5522_v15 }
  0x30   : > { %4608 = vmatprep.subr.bf16.mxu0 %v5523_v16 }
  0x31   : > { %4879 = vmatpush3.bf16.xpose.msra.mxu1 %v5533_v20 }
  0x32   : > { %4880 = vmatprep.subr.bf16.mxu1 %v5534_v23 }
  0x37   : > { %4609 = vmatpush3.bf16.xpose.msra.mxu0 %v5524_v18 }
  0x38   : > { %4610 = vmatprep.subr.bf16.mxu0 %v5525_v19  ;;  %v5555_v19 = vld [vmem:[%s7722_s2 + $0x90] sm:$0xff]  }
  0x39   : > { %4881 = vmatpush3.bf16.xpose.msra.mxu1 %v5534_v23 }
  0x3a   : > { %4882 = vmatprep.subr.bf16.mxu1 %v5535_v28 }
  0x3f   : > { %4611 = vmatpush3.bf16.xpose.msra.mxu0 %v5526_v21 }
  0x40   : > { %4612 = vmatprep.subr.bf16.mxu0 %v5527_v22 }
  0x41   : > { %4883 = vmatpush3.bf16.xpose.msra.mxu1 %v5535_v28 }
  0x42   : > { %4884 = vmatprep.subr.bf16.mxu1 %v5536_v33 }
  0x47   : > { %4613 = vmatpush3.bf16.xpose.msra.mxu0 %v5528_v24 }
  0x48   : > { %4902 = vmatprep.subr.bf16.mxu0 %v5537_v25 }
  0x49   : > { %4885 = vmatpush3.bf16.xpose.msra.mxu1 %v5536_v33 }
  0x4a   : > { %4934 = vmatprep.subr.bf16.mxu1 %v5538_v38 }
  0x4e   : > { %4615 = vmatmul.mubr.bf16.vlgmr.msra.gmra.mrb[0].mxu0 %v374_v9 }
  0x4f   : > { %4616 = vmatprep.mubr.bf16.mxu0 %v375_v30  ;;  %4903 = vmatpush3.bf16.xpose.msra.mxu0 %v5537_v25 }
  0x50   : > { %4904 = vmatprep.subr.bf16.mxu0 %v5539_v29  ;;  %4887 = vmatmul.mubr.bf16.vlgmr.msra.gmra.mrb[0].mxu1 %v375_v30 }
  0x51   : > { %4890 = vmatprep.mubr.bf16.mxu1 %v376_v34  ;;  %4935 = vmatpush3.bf16.xpose.msra.mxu1 %v5538_v38 }
  0x52   : > { %4936 = vmatprep.subr.bf16.mxu1 %v5540_v43 }
  0x56   : > { %4617 = vmatmul.mubr.bf16.gmra.mrb[4].mxu0 %v375_v30 }
  0x57   : > { %4618 = vmatprep.mubr.bf16.mxu0 %v376_v34  ;;  %4905 = vmatpush3.bf16.xpose.msra.mxu0 %v5539_v29 }
  0x58   : > { %4906 = vmatprep.subr.bf16.mxu0 %v5541_v35  ;;  %4891 = vmatmul.mubr.bf16.gmra.mrb[4].mxu1 %v377_v39 }
  0x59   : > { %4937 = vmatpush3.bf16.xpose.msra.mxu1 %v5540_v43  ;;  %4894 = vmatprep.mubr.bf16.mxu1 %v378_v44 }
  0x5a   : > { %4938 = vmatprep.subr.bf16.mxu1 %v5542_v48 }
  0x5e   : > { %4619 = vmatmul.mubr.bf16.gmra.mrb[8].mxu0 %v376_v34 }
  0x5f   : > { %4620 = vmatprep.mubr.bf16.mxu0 %v377_v39  ;;  %4907 = vmatpush3.bf16.xpose.msra.mxu0 %v5541_v35 }
  0x60   : > { %4908 = vmatprep.subr.bf16.mxu0 %v5543_v40  ;;  %4895 = vmatmul.mubr.bf16.gmra.mrb[8].mxu1 %v379_v49 }
  0x61   : > { %4939 = vmatpush3.bf16.xpose.msra.mxu1 %v5542_v48  ;;  %4898 = vmatprep.mubr.bf16.mxu1 %v380_v54 }
  0x62   : > { %4940 = vmatprep.subr.bf16.mxu1 %v5544_v53 }
  0x66   : > { %4621 = vmatmul.mubr.bf16.gmra.mrb[12].mxu0 %v377_v39 }
  0x67   : > { %4622 = vmatprep.mubr.bf16.mxu0 %v378_v44  ;;  %4909 = vmatpush3.bf16.xpose.msra.mxu0 %v5543_v40 }
  0x68   : > { %4910 = vmatprep.subr.bf16.mxu0 %v5545_v45  ;;  %4899 = vmatmul.mubr.bf16.gmra.mrb[12].mxu1 %v381_v58 }
  0x69   : > { %4941 = vmatpush3.bf16.xpose.msra.mxu1 %v5544_v53 }
  0x6a   : > { %4942 = vmatprep.subr.bf16.mxu1 %v5546_v59 }
  0x6e   : > { %4623 = vmatmul.mubr.bf16.gmra.mrb[16].mxu0 %v378_v44 }
  0x6f   : > { %4624 = vmatprep.mubr.bf16.mxu0 %v379_v49  ;;  %4911 = vmatpush3.bf16.xpose.msra.mxu0 %v5545_v45  ;;  %v5557_v45 = vld [vmem:[%s7722_s2 + $0xa0] sm:$0xff]  }
  0x70   : > { %4912 = vmatprep.subr.bf16.mxu0 %v5547_v50 }
  0x71   : > { %4943 = vmatpush3.bf16.xpose.msra.mxu1 %v5546_v59 }
  0x72   : > { %4944 = vmatprep.subr.bf16.mxu1 %v5548_v60 }
  0x76   : > { %4625 = vmatmul.mubr.bf16.gmra.mrb[20].mxu0 %v379_v49 }
  0x77   : > { %4626 = vmatprep.mubr.bf16.mxu0 %v380_v54  ;;  %4913 = vmatpush3.bf16.xpose.msra.mxu0 %v5547_v50 }
  0x78   : > { %4914 = vmatprep.subr.bf16.mxu0 %v5549_v55 }
  0x79   : > { %4945 = vmatpush3.bf16.xpose.msra.mxu1 %v5548_v60 }
  0x7a   : > { %4946 = vmatprep.subr.bf16.mxu1 %v5550_v61 }
  0x7e   : > { %4627 = vmatmul.mubr.bf16.gmra.mrb[24].mxu0 %v380_v54 }
  0x7f   : > { %4628 = vmatprep.mubr.bf16.mxu0 %v381_v58  ;;  %4915 = vmatpush3.bf16.xpose.msra.mxu0 %v5549_v55 }
  0x80   : > { %4916 = vmatprep.subr.bf16.mxu0 %v5551_v62 }
  0x81   : > { %4947 = vmatpush3.bf16.xpose.msra.mxu1 %v5550_v61 }
  0x82   : > { %4948 = vmatprep.subr.bf16.mxu1 %v5552_v63 }
  0x86   : > { %4629 = vmatmul.mubr.bf16.gmra.mrb[28].mxu0 %v381_v58  ;;  %v5558_v58 = vld [vmem:[%s7722_s2 + $0xa8] sm:$0xff]  }
  0x87   : > { %4917 = vmatpush3.bf16.xpose.msra.mxu0 %v5551_v62 }
  0x88   : > { %4966 = vmatprep.subr.bf16.mxu0 %v5553_v0 }
  0x89   : > { %4949 = vmatpush3.bf16.xpose.msra.mxu1 %v5552_v63 }
 0x121   : > { %v560_v1 = vpop.f32.mrb[0].mxu0 }
 0x122   : > { %v562_v2 = vpop.f32.mrb[1].mxu0 }
 0x123   : > { %v564_v3 = vpop.f32.mrb[2].mxu0  ;;  %v6076_v21 = vpop.f32.mrb[0].mxu1 }
 0x124   : > { %v752_v4 = vpack.c.bf16 %v564_v3, %v560_v1  ;;  %v566_v5 = vpop.f32.mrb[3].mxu0  ;;  %v6078_v22 = vpop.f32.mrb[1].mxu1 }
 0x125   : > { %v926_v6 = vpack.c.bf16 %v566_v5, %v562_v2  ;;  %v6080_v23 = vpop.f32.mrb[2].mxu1 }
 0x126   : > { %4918 = vmatprep.mubr.bf16.mxu0 %v752_v4  ;;  %v1101_v24 = vpack.c.bf16 %v6080_v23, %v6076_v21  ;;  %v6084_v25 = vpop.f32.mrb[3].mxu1 }
 0x127   : > { %4950 = vmatprep.mubr.bf16.mxu1 %v926_v6  ;;  %v1100_v27 = vpack.c.bf16 %v6084_v25, %v6078_v22 }
 0x129   : > { %v570_v7 = vpop.f32.mrb[4].mxu0 }
 0x12a   : > { %v572_v8 = vpop.f32.mrb[5].mxu0 }
 0x12b   : > { %v574_v9 = vpop.f32.mrb[6].mxu0  ;;  %v6091_v34 = vpop.f32.mrb[4].mxu1 }
 0x12c   : > { %v753_v10 = vpack.c.bf16 %v574_v9, %v570_v7  ;;  %v576_v11 = vpop.f32.mrb[7].mxu0  ;;  %v6093_v35 = vpop.f32.mrb[5].mxu1  ;;  %v5559_v7 = vld [vmem:[%s7722_s2 + $0xb0] sm:$0xff]  }
 0x12d   : > { %v927_v13 = vpack.c.bf16 %v576_v11, %v572_v8  ;;  %v6095_v36 = vpop.f32.mrb[6].mxu1 }
 0x12e   : > { %4919 = vmatmul.mubr.bf16.vlgmr.msra.gmra.mrb[32].mxu0 %v753_v10  ;;  %v1103_v37 = vpack.c.bf16 %v6095_v36, %v6091_v34  ;;  %v692_v38 = vpop.f32.mrb[7].mxu1 }
 0x12f   : > { %4951 = vmatmul.mubr.bf16.vlgmr.msra.gmra.mrb[16].mxu1 %v927_v13  ;;  %4967 = vmatpush3.bf16.xpose.msra.mxu0 %v5553_v0  ;;  %v1102_v40 = vpack.c.bf16 %v692_v38, %v6093_v35 }
 0x130   : > { %4968 = vmatprep.subr.bf16.mxu0 %v5554_v12 }
 0x131   : > { %v580_v14 = vpop.f32.mrb[8].mxu0 }
 0x132   : > { %v582_v15 = vpop.f32.mrb[9].mxu0 }
 0x133   : > { %v584_v16 = vpop.f32.mrb[10].mxu0  ;;  %v4896_v47 = vpop.f32.mrb[8].mxu1 }
 0x134   : > { %v754_v17 = vpack.c.bf16 %v584_v16, %v580_v14  ;;  %v586_v18 = vpop.f32.mrb[11].mxu0  ;;  %v705_v48 = vpop.f32.mrb[9].mxu1  ;;  %v5560_v14 = vld [vmem:[%s7722_s2 + $0xb8] sm:$0xff]  }
 0x135   : > { %v928_v20 = vpack.c.bf16 %v586_v18, %v582_v15  ;;  %v4897_v49 = vpop.f32.mrb[10].mxu1 }
 0x136   : > { %4922 = vmatprep.mubr.bf16.mxu0 %v754_v17  ;;  %v1105_v50 = vpack.c.bf16 %v4897_v49, %v4896_v47  ;;  %v708_v51 = vpop.f32.mrb[11].mxu1  ;;  %v6121_v17 = vld [vmem:[%s7723_s3] ss:$0 sm:$0xff] }
 0x137   : > { %4954 = vmatprep.mubr.bf16.mxu1 %v928_v20  ;;  %4969 = vmatpush3.bf16.xpose.msra.mxu0 %v5554_v12  ;;  %v1104_v53 = vpack.c.bf16 %v708_v51, %v705_v48  ;;  %v6126_v20 = vld [vmem:[%s7723_s3 + $0x1] ss:$0 sm:$0xff] }
 0x138   : > { %4970 = vmatprep.subr.bf16.mxu0 %v5555_v19 }
 0x139   : > { %v590_v26 = vpop.f32.mrb[12].mxu0 }
 0x13a   : > { %v592_v28 = vpop.f32.mrb[13].mxu0 }
 0x13b   : > { %v594_v29 = vpop.f32.mrb[14].mxu0  ;;  %v4900_v60 = vpop.f32.mrb[12].mxu1 }
 0x13c   : > { %v755_v30 = vpack.c.bf16 %v594_v29, %v590_v26  ;;  %v596_v31 = vpop.f32.mrb[15].mxu0  ;;  %v721_v61 = vpop.f32.mrb[13].mxu1 }
 0x13d   : > { %v929_v33 = vpack.c.bf16 %v596_v31, %v592_v28  ;;  %v4901_v62 = vpop.f32.mrb[14].mxu1 }
 0x13e   : > { %4923 = vmatmul.mubr.bf16.gmra.mrb[36].mxu0 %v755_v30  ;;  %v1107_v63 = vpack.c.bf16 %v4901_v62, %v4900_v60  ;;  %v724_v0 = vpop.f32.mrb[15].mxu1 }
 0x13f   : > { %4955 = vmatmul.mubr.bf16.gmra.mrb[20].mxu1 %v929_v33  ;;  %4971 = vmatpush3.bf16.xpose.msra.mxu0 %v5555_v19  ;;  %v1106_v2 = vpack.c.bf16 %v724_v0, %v721_v61 }
 0x140   : > { %4972 = vmatprep.subr.bf16.mxu0 %v5556_v32 }
 0x141   : > { %v600_v39 = vpop.f32.mrb[16].mxu0 }
 0x142   : > { %v602_v41 = vpop.f32.mrb[17].mxu0 }
 0x143   : > { %v604_v42 = vpop.f32.mrb[18].mxu0 }
 0x144   : > { %v756_v43 = vpack.c.bf16 %v604_v42, %v600_v39  ;;  %v606_v44 = vpop.f32.mrb[19].mxu0 }
 0x145   : > { %v930_v46 = vpack.c.bf16 %v606_v44, %v602_v41 }
 0x146   : > { %4926 = vmatprep.mubr.bf16.mxu0 %v756_v43 }
 0x147   : > { %4958 = vmatprep.mubr.bf16.mxu1 %v930_v46  ;;  %4973 = vmatpush3.bf16.xpose.msra.mxu0 %v5556_v32 }
 0x148   : > { %4974 = vmatprep.subr.bf16.mxu0 %v5557_v45 }
 0x149   : > { %v610_v52 = vpop.f32.mrb[20].mxu0 }
 0x14a   : > { %v612_v54 = vpop.f32.mrb[21].mxu0 }
 0x14b   : > { %v614_v55 = vpop.f32.mrb[22].mxu0 }
 0x14c   : > { %v757_v56 = vpack.c.bf16 %v614_v55, %v610_v52  ;;  %v616_v57 = vpop.f32.mrb[23].mxu0 }
 0x14d   : > { %v931_v59 = vpack.c.bf16 %v616_v57, %v612_v54 }
 0x14e   : > { %4927 = vmatmul.mubr.bf16.gmra.mrb[40].mxu0 %v757_v56 }
 0x14f   : > { %4959 = vmatmul.mubr.bf16.gmra.mrb[24].mxu1 %v931_v59  ;;  %4975 = vmatpush3.bf16.xpose.msra.mxu0 %v5557_v45 }
 0x150   : > { %4976 = vmatprep.subr.bf16.mxu0 %v5558_v58 }
 0x151   : > { %v620_v1 = vpop.f32.mrb[24].mxu0 }
 0x152   : > { %v622_v3 = vpop.f32.mrb[25].mxu0 }
 0x153   : > { %v624_v4 = vpop.f32.mrb[26].mxu0 }
 0x154   : > { %v758_v5 = vpack.c.bf16 %v624_v4, %v620_v1  ;;  %v626_v6 = vpop.f32.mrb[27].mxu0 }
 0x155   : > { %v932_v8 = vpack.c.bf16 %v626_v6, %v622_v3 }
 0x156   : > { %4930 = vmatprep.mubr.bf16.mxu0 %v758_v5 }
 0x157   : > { %4962 = vmatprep.mubr.bf16.mxu1 %v932_v8  ;;  %4977 = vmatpush3.bf16.xpose.msra.mxu0 %v5558_v58 }
 0x158   : > { %4978 = vmatprep.subr.bf16.mxu0 %v5559_v7 }
 0x159   : > { %v630_v9 = vpop.f32.mrb[28].mxu0 }
 0x15a   : > { %v632_v10 = vpop.f32.mrb[29].mxu0 }
 0x15b   : > { %v634_v11 = vpop.f32.mrb[30].mxu0 }
 0x15c   : > { %v759_v12 = vpack.c.bf16 %v634_v11, %v630_v9  ;;  %v636_v13 = vpop.f32.mrb[31].mxu0 }
 0x15d   : > { %v933_v15 = vpack.c.bf16 %v636_v13, %v632_v10 }
 0x15e   : > { %4931 = vmatmul.mubr.bf16.gmra.mrb[44].mxu0 %v759_v12 }
 0x15f   : > { %4963 = vmatmul.mubr.bf16.gmra.mrb[28].mxu1 %v933_v15  ;;  %4979 = vmatpush3.bf16.xpose.msra.mxu0 %v5559_v7 }
 0x160   : > { %4980 = vmatprep.subr.bf16.mxu0 %v5560_v14  ;;  %4982 = vmatprep.mubr.bf16.mxu0 %v1100_v27 }
 0x167   : > { %4981 = vmatpush3.bf16.xpose.msra.mxu0 %v5560_v14 }
 0x16e   : > { %4983 = vmatmul.mubr.bf16.vlgmr.msra.gmra.mrb[48].mxu0 %v1101_v24 }
 0x16f   : > { %4986 = vmatprep.mubr.bf16.mxu0 %v1102_v40 }
 0x176   : > { %4987 = vmatmul.mubr.bf16.gmra.mrb[52].mxu0 %v1103_v37 }
 0x177   : > { %4990 = vmatprep.mubr.bf16.mxu0 %v1104_v53 }
 0x17e   : > { %4991 = vmatmul.mubr.bf16.gmra.mrb[56].mxu0 %v1105_v50 }
 0x17f   : > { %4994 = vmatprep.mubr.bf16.mxu0 %v1106_v2 }
 0x186   : > { %4995 = vmatmul.mubr.bf16.gmra.mrb[60].mxu0 %v1107_v63 }
 0x201   : > { %v4920_v16 = vpop.f32.mrb[32].mxu0 }
 0x202   : > { %v847_v18 = vpop.f32.mrb[33].mxu0  ;;  %v4952_v19 = vpop.f32.mrb[16].mxu1  ;;  %v856_v23 = vadd.f32 %v4920_v16, %v6121_v17 }
 0x203   : > { %v4921_v21 = vpop.f32.mrb[34].mxu0  ;;  %v1021_v22 = vpop.f32.mrb[17].mxu1  ;;  %v848_v27 = vadd.f32 %v6121_v17, %v847_v18  ;;  %v1030_v28 = vadd.f32 %v4952_v19, %v6126_v20 }
 0x204   : > { %v859_v24 = vadd.f32 %v4921_v21, %v6121_v17  ;;  %v850_v25 = vpop.f32.mrb[35].mxu0  ;;  %v4953_v26 = vpop.f32.mrb[18].mxu1  ;;  %v1022_v33 = vadd.f32 %v6126_v20, %v1021_v22 }
 0x205   : > { %v851_v29 = vadd.f32 %v6121_v17, %v850_v25  ;;  %v1033_v30 = vadd.f32 %v4953_v26, %v6126_v20  ;;  %v1024_v31 = vpop.f32.mrb[19].mxu1 }
 0x206   : > { %v6134_v32 = vpack.c.bf16 %v859_v24, %v856_v23  ;;  %v1025_v34 = vadd.f32 %v6126_v20, %v1024_v31 }
 0x207   : > { %v6138_v35 = vpack.c.bf16 %v851_v29, %v848_v27  ;;  %v6140_v36 = vpack.c.bf16 %v1033_v30, %v1030_v28 }
 0x208   : > { %v6142_v37 = vpack.c.bf16 %v1025_v34, %v1022_v33 }
 0x209   : > { %1834 = vrot.lane.b32.xlu1 %v6140_v36, %s5865_s22  ;;  %5006 = vmatprep.mubr.msk.bf16.mxu0 %vm1282_vm0, %v6138_v35  ;;  %v1299_v42 = vsel %vm1282_vm0, %v6140_v36, 0 }
 0x20a   : > { %1832 = vrot.lane.b32.xlu0 %v6142_v37, %s5865_s22  ;;  %5350 = vmatprep.subr.msk.bf16.mxu0 %vm1282_vm0, %v6142_v37  ;;  %v1296_v38 = vsel %vm1282_vm0, %v6142_v37, 0 }
 0x20b   : > { %4999 = vmatpush3.bf16.xpose.msra.mxu0 %v1296_v38 }
 0x20c   : > { %5351 = vmatprep.subr.msk.bf16.mxu0 %vm1282_vm0, %v6140_v36 }
 0x211   : > { %v4924_v39 = vpop.f32.mrb[36].mxu0 }
 0x212   : > { %v863_v40 = vpop.f32.mrb[37].mxu0  ;;  %v4956_v41 = vpop.f32.mrb[20].mxu1  ;;  %v872_v45 = vadd.f32 %v4924_v39, %v6121_v17 }
 0x213   : > { %v4925_v43 = vpop.f32.mrb[38].mxu0  ;;  %v1037_v44 = vpop.f32.mrb[21].mxu1  ;;  %5001 = vmatpush3.bf16.xpose.msra.mxu0 %v1299_v42  ;;  %v864_v49 = vadd.f32 %v6121_v17, %v863_v40  ;;  %v1046_v50 = vadd.f32 %v4956_v41, %v6126_v20 }
 0x214   : > { %v875_v46 = vadd.f32 %v4925_v43, %v6121_v17  ;;  %v866_v47 = vpop.f32.mrb[39].mxu0  ;;  %v4957_v48 = vpop.f32.mrb[22].mxu1  ;;  %v1038_v55 = vadd.f32 %v6126_v20, %v1037_v44 }
 0x215   : > { %v867_v51 = vadd.f32 %v6121_v17, %v866_v47  ;;  %v1049_v52 = vadd.f32 %v4957_v48, %v6126_v20  ;;  %v1040_v53 = vpop.f32.mrb[23].mxu1 }
 0x216   : > { %v6164_v54 = vpack.c.bf16 %v875_v46, %v872_v45  ;;  %v1041_v56 = vadd.f32 %v6126_v20, %v1040_v53 }
 0x217   : > { %v6168_v57 = vpack.c.bf16 %v867_v51, %v864_v49  ;;  %v6170_v58 = vpack.c.bf16 %v1049_v52, %v1046_v50 }
 0x218   : > { %v6172_v59 = vpack.c.bf16 %v1041_v56, %v1038_v55 }
 0x219   : > { %v1305_v63 = vsel %vm1282_vm0, %v6170_v58, 0 }
 0x21a   : > { %5352 = vmatprep.subr.msk.bf16.mxu0 %vm1282_vm0, %v6172_v59  ;;  %v1302_v60 = vsel %vm1282_vm0, %v6172_v59, 0 }
 0x21b   : > { %5003 = vmatpush3.bf16.xpose.msra.mxu0 %v1302_v60 }
 0x21c   : > { %5353 = vmatprep.subr.msk.bf16.mxu0 %vm1282_vm0, %v6170_v58 }
 0x221   : > { %v4928_v61 = vpop.f32.mrb[40].mxu0 }
 0x222   : > { %v4960_v62 = vpop.f32.mrb[24].mxu1  ;;  %v888_v0 = vadd.f32 %v4928_v61, %v6121_v17  ;;  %v879_v1 = vpop.f32.mrb[41].mxu0 }
 0x223   : > { %v1062_v2 = vadd.f32 %v4960_v62, %v6126_v20  ;;  %v1053_v3 = vpop.f32.mrb[25].mxu1  ;;  %5005 = vmatpush3.bf16.xpose.msra.mxu0 %v1305_v63  ;;  %v880_v4 = vadd.f32 %v6121_v17, %v879_v1  ;;  %v4929_v5 = vpop.f32.mrb[42].mxu0 }
 0x224   : > { %v1054_v6 = vadd.f32 %v6126_v20, %v1053_v3  ;;  %v4961_v7 = vpop.f32.mrb[26].mxu1  ;;  %v891_v8 = vadd.f32 %v4929_v5, %v6121_v17  ;;  %v882_v9 = vpop.f32.mrb[43].mxu0 }
 0x225   : > { %v1065_v10 = vadd.f32 %v4961_v7, %v6126_v20  ;;  %v1056_v11 = vpop.f32.mrb[27].mxu1  ;;  %v883_v12 = vadd.f32 %v6121_v17, %v882_v9 }
 0x226   : > { %v1057_v13 = vadd.f32 %v6126_v20, %v1056_v11  ;;  %v6190_v14 = vpack.c.bf16 %v891_v8, %v888_v0 }
 0x227   : > { %v6192_v15 = vpack.c.bf16 %v1065_v10, %v1062_v2  ;;  %v6194_v16 = vpack.c.bf16 %v883_v12, %v880_v4 }
 0x228   : > { %v6196_v18 = vpack.c.bf16 %v1057_v13, %v1054_v6 }
 0x229   : > { %5022 = vmatprep.mubr.msk.bf16.mxu1 %vm1282_vm0, %v6194_v16  ;;  %v1388_v21 = vsel %vm1282_vm0, %v6192_v15, 0 }
 0x22a   : > { %5007 = vmatmul.mubr.msk.bf16.vlgmr.msra.gmra.mrb[64].mxu0 %vm1282_vm0, %v6134_v32  ;;  %5354 = vmatprep.subr.msk.bf16.mxu1 %vm1282_vm0, %v6196_v18  ;;  %v1385_v19 = vsel %vm1282_vm0, %v6196_v18, 0 }
 0x22b   : > { %5010 = vmatprep.mubr.msk.bf16.mxu0 %vm1282_vm0, %v6168_v57  ;;  %5015 = vmatpush3.bf16.xpose.msra.mxu1 %v1385_v19 }
 0x22c   : > { %5355 = vmatprep.subr.msk.bf16.mxu1 %vm1282_vm0, %v6192_v15 }
 0x231   : > { %v4932_v22 = vpop.f32.mrb[44].mxu0 }
 0x232   : > { %v4964_v23 = vpop.f32.mrb[28].mxu1  ;;  %5011 = vmatmul.mubr.msk.bf16.gmra.mrb[68].mxu0 %vm1282_vm0, %v6164_v54  ;;  %v904_v24 = vadd.f32 %v4932_v22, %v6121_v17  ;;  %v895_v25 = vpop.f32.mrb[45].mxu0 }
 0x233   : > { %v1078_v26 = vadd.f32 %v4964_v23, %v6126_v20  ;;  %v1069_v27 = vpop.f32.mrb[29].mxu1  ;;  %5017 = vmatpush3.bf16.xpose.msra.mxu1 %v1388_v21  ;;  %v896_v28 = vadd.f32 %v6121_v17, %v895_v25  ;;  %v4933_v29 = vpop.f32.mrb[46].mxu0 }
 0x234   : > { %v1070_v30 = vadd.f32 %v6126_v20, %v1069_v27  ;;  %v4965_v31 = vpop.f32.mrb[30].mxu1  ;;  %v907_v33 = vadd.f32 %v4933_v29, %v6121_v17  ;;  %v898_v34 = vpop.f32.mrb[47].mxu0 }
 0x235   : > { %v1081_v38 = vadd.f32 %v4965_v31, %v6126_v20  ;;  %v1072_v39 = vpop.f32.mrb[31].mxu1  ;;  %v899_v40 = vadd.f32 %v6121_v17, %v898_v34 }
 0x236   : > { %v1073_v41 = vadd.f32 %v6126_v20, %v1072_v39  ;;  %v6222_v42 = vpack.c.bf16 %v907_v33, %v904_v24  ;;  %v4498_v20 = vld [vmem:[%s7723_s3 + $0x2] ss:$0 sm:$0xff] }
 0x237   : > { %v6224_v43 = vpack.c.bf16 %v1081_v38, %v1078_v26  ;;  %v6226_v44 = vpack.c.bf16 %v899_v40, %v896_v28 }
 0x238   : > { %v6228_v45 = vpack.c.bf16 %v1073_v41, %v1070_v30 }
 0x239   : > { %v1394_v17 = vsel %vm1282_vm0, %v6224_v43, 0 }
 0x23a   : > { %5356 = vmatprep.subr.msk.bf16.mxu1 %vm1282_vm0, %v6228_v45  ;;  %v1391_v46 = vsel %vm1282_vm0, %v6228_v45, 0 }
 0x23b   : > { %5019 = vmatpush3.bf16.xpose.msra.mxu1 %v1391_v46 }
 0x23c   : > { %5357 = vmatprep.subr.msk.bf16.mxu1 %vm1282_vm0, %v6224_v43 }
 0x241   : > { %v4984_v47 = vpop.f32.mrb[48].mxu0 }
 0x242   : > { %v1204_v48 = vadd.f32 %v4984_v47, %v4498_v20  ;;  %v1195_v49 = vpop.f32.mrb[49].mxu0 }
 0x243   : > { %5021 = vmatpush3.bf16.xpose.msra.mxu1 %v1394_v17  ;;  %v1196_v50 = vadd.f32 %v4498_v20, %v1195_v49  ;;  %v4985_v51 = vpop.f32.mrb[50].mxu0 }
 0x244   : > { %v1207_v52 = vadd.f32 %v4985_v51, %v4498_v20  ;;  %v1198_v53 = vpop.f32.mrb[51].mxu0 }
 0x245   : > { %v1199_v55 = vadd.f32 %v4498_v20, %v1198_v53 }
 0x246   : > { %v6241_v56 = vpack.c.bf16 %v1207_v52, %v1204_v48 }
 0x247   : > { %v6243_v60 = vpack.c.bf16 %v1199_v55, %v1196_v50 }
 0x249   : > { %v4988_v61 = vpop.f32.mrb[52].mxu0  ;;  %5030 = vmatprep.subr.bf16.mxu1 %v6243_v60 }
 0x24a   : > { %5023 = vmatmul.mubr.msk.bf16.vlgmr.msra.gmra.mrb[32].mxu1 %vm1282_vm0, %v6190_v14  ;;  %v1220_v62 = vadd.f32 %v4988_v61, %v4498_v20  ;;  %v1211_v63 = vpop.f32.mrb[53].mxu0 }
 0x24b   : > { %5026 = vmatprep.mubr.msk.bf16.mxu1 %vm1282_vm0, %v6226_v44  ;;  %v1212_v0 = vadd.f32 %v4498_v20, %v1211_v63  ;;  %5031 = vmatpush3.bf16.msra.mxu1 %v6243_v60  ;;  %v4989_v1 = vpop.f32.mrb[54].mxu0 }
 0x24c   : > { %v1223_v2 = vadd.f32 %v4989_v1, %v4498_v20  ;;  %v1214_v3 = vpop.f32.mrb[55].mxu0  ;;  %5032 = vmatprep.subr.bf16.mxu1 %v6241_v56 }
 0x24d   : > { %v1215_v4 = vadd.f32 %v4498_v20, %v1214_v3 }
 0x24e   : > { %v6252_v5 = vpack.c.bf16 %v1223_v2, %v1220_v62 }
 0x24f   : > { %v6254_v6 = vpack.c.bf16 %v1215_v4, %v1212_v0  ;;  %5033 = vmatpush3.bf16.msra.mxu1 %v6241_v56 }
 0x251   : > { %5034 = vmatprep.subr.bf16.mxu1 %v6254_v6  ;;  %v4992_v7 = vpop.f32.mrb[56].mxu0 }
 0x252   : > { %5027 = vmatmul.mubr.msk.bf16.gmra.mrb[36].mxu1 %vm1282_vm0, %v6222_v42  ;;  %v1236_v8 = vadd.f32 %v4992_v7, %v4498_v20  ;;  %v1227_v9 = vpop.f32.mrb[57].mxu0 }
 0x253   : > { %5035 = vmatpush3.bf16.msra.mxu1 %v6254_v6  ;;  %v1228_v10 = vadd.f32 %v4498_v20, %v1227_v9  ;;  %v4993_v11 = vpop.f32.mrb[58].mxu0 }
 0x254   : > { %5036 = vmatprep.subr.bf16.mxu1 %v6252_v5  ;;  %v1239_v12 = vadd.f32 %v4993_v11, %v4498_v20  ;;  %v1230_v13 = vpop.f32.mrb[59].mxu0 }
 0x255   : > { %v1231_v19 = vadd.f32 %v4498_v20, %v1230_v13 }
 0x256   : > { %v6262_v21 = vpack.c.bf16 %v1239_v12, %v1236_v8 }
 0x257   : > { %5037 = vmatpush3.bf16.msra.mxu1 %v6252_v5  ;;  %v6265_v22 = vpack.c.bf16 %v1231_v19, %v1228_v10 }
 0x259   : > { %v4996_v23 = vpop.f32.mrb[60].mxu0  ;;  %5046 = vmatprep.subr.bf16.mxu0 %v6265_v22 }
 0x25a   : > { %v1252_v24 = vadd.f32 %v4996_v23, %v4498_v20  ;;  %v1243_v25 = vpop.f32.mrb[61].mxu0  ;;  %5047 = vmatpush3.bf16.msra.mxu0 %v6265_v22 }
 0x25b   : > { %v1244_v26 = vadd.f32 %v4498_v20, %v1243_v25  ;;  %v4997_v27 = vpop.f32.mrb[62].mxu0  ;;  %5048 = vmatprep.subr.bf16.mxu0 %v6262_v21 }
 0x25c   : > { %v1255_v28 = vadd.f32 %v4997_v27, %v4498_v20  ;;  %v1246_v29 = vpop.f32.mrb[63].mxu0 }
 0x25d   : > { %v1247_v30 = vadd.f32 %v4498_v20, %v1246_v29 }
 0x25e   : > { %v6270_v31 = vpack.c.bf16 %v1255_v28, %v1252_v24  ;;  %5049 = vmatpush3.bf16.msra.mxu0 %v6262_v21 }
 0x25f   : > { %v6273_v33 = vpack.c.bf16 %v1247_v30, %v1244_v26 }
 0x261   : > { %5050 = vmatprep.subr.bf16.mxu0 %v6273_v33 }
 0x262   : > { %5051 = vmatpush3.bf16.msra.mxu0 %v6273_v33 }
 0x263   : > { %5052 = vmatprep.subr.bf16.mxu0 %v6270_v31 }
 0x266   : > { %5053 = vmatpush3.bf16.msra.mxu0 %v6270_v31 }
 0x27c   : > { %v6279_v34 = vpop.permute.xlu0 %1832 }
 0x27d   : > { %5358 = vmatprep.subr.msk.bf16.mxu1 %vm1282_vm0, %v6279_v34 }
 0x2fd   : > { %v5008_v38 = vpop.f32.mrb[64].mxu0 }
 0x2fe   : > { %v6283_v39 = vmul.f32 0.17677669, %v5008_v38  ;;  %v1341_v40 = vpop.f32.mrb[65].mxu0 }
 0x2ff   : > { %v6285_v41 = vmul.f32 0.17677669, %v1341_v40  ;;  %v5009_v46 = vpop.f32.mrb[66].mxu0 }
 0x300   : > { %v6287_v17 = vmul.f32 0.17677669, %v5009_v46  ;;  %v1344_v20 = vpop.f32.mrb[67].mxu0  ;;  %v1484_v47 = vsel %vm1477_vm1, %v6283_v39, -inf }
 0x301   : > { %v6291_v48 = vmul.f32 0.17677669, %v1344_v20  ;;  %1485 = vmax.xlane.f32.xlu1 %v1484_v47  ;;  %v1478_v49 = vsel %vm1477_vm1, %v6285_v41, -inf }
 0x302   : > { %1479 = vmax.xlane.f32.xlu0 %v1478_v49  ;;  %v1487_v50 = vsel %vm1477_vm1, %v6287_v17, -inf }
 0x303   : > { %v1481_v52 = vsel %vm1477_vm1, %v6291_v48, -inf }
 0x305   : > { %1488 = vmax.xlane.f32.xlu1 %v1487_v50  ;;  %v5012_v51 = vpop.f32.mrb[68].mxu0 }
 0x306   : > { %v6299_v53 = vmul.f32 0.17677669, %v5012_v51  ;;  %1482 = vmax.xlane.f32.xlu0 %v1481_v52  ;;  %v1357_v55 = vpop.f32.mrb[69].mxu0 }
 0x307   : > { %v5013_v61 = vpop.f32.mrb[70].mxu0  ;;  %v6305_v1 = vmul.f32 0.17677669, %v1357_v55  ;;  %v6355_v55 = vpop.permute.xlu1 %1834 }
 0x308   : > { %v6301_v62 = vmul.f32 0.17677669, %v5013_v61  ;;  %v1360_v63 = vpop.f32.mrb[71].mxu0  ;;  %v1496_v0 = vsel %vm1477_vm1, %v6299_v53, -inf }
 0x309   : > { %v6307_v2 = vmul.f32 0.17677669, %v1360_v63  ;;  %v1490_v4 = vsel %vm1477_vm1, %v6305_v1, -inf }
 0x30a   : > { %1497 = vmax.xlane.f32.xlu0 %v1496_v0  ;;  %v1499_v3 = vsel %vm1477_vm1, %v6301_v62, -inf }
 0x30b   : > { %1500 = vmax.xlane.f32.xlu1 %v1499_v3  ;;  %v1493_v7 = vsel %vm1477_vm1, %v6307_v2, -inf }
 0x30e   : > { %1491 = vmax.xlane.f32.xlu0 %v1490_v4 }
 0x30f   : > { %1494 = vmax.xlane.f32.xlu1 %v1493_v7 }
 0x31d   : > { %v5024_v8 = vpop.f32.mrb[32].mxu1 }
 0x31e   : > { %v6315_v9 = vmul.f32 0.17677669, %v5024_v8  ;;  %v1430_v10 = vpop.f32.mrb[33].mxu1 }
 0x31f   : > { %v5025_v11 = vpop.f32.mrb[34].mxu1  ;;  %v6317_v12 = vmul.f32 0.17677669, %v1430_v10 }
 0x320   : > { %v1433_v13 = vpop.f32.mrb[35].mxu1  ;;  %1945 = vrot.lane.b32.xlu1 %v6196_v18, %s5865_s22  ;;  %v1508_v19 = vsel %vm1477_vm1, %v6315_v9, -inf  ;;  %v6329_v28 = vmul.f32 0.17677669, %v5025_v11 }
 0x321   : > { %1509 = vmax.xlane.f32.xlu0 %v1508_v19  ;;  %v1502_v23 = vsel %vm1477_vm1, %v6317_v12, -inf  ;;  %v6331_v29 = vmul.f32 0.17677669, %v1433_v13 }
 0x322   : > { %v1511_v30 = vsel %vm1477_vm1, %v6329_v28, -inf }
 0x323   : > { %v1505_v40 = vsel %vm1477_vm1, %v6331_v29, -inf }
 0x324   : > { %1838 = vrot.lane.b32.xlu1 %v6170_v58, %s5865_s22 }
 0x325   : > { %1503 = vmax.xlane.f32.xlu0 %v1502_v23  ;;  %v5028_v24 = vpop.f32.mrb[36].mxu1 }
 0x326   : > { %v1446_v25 = vpop.f32.mrb[37].mxu1  ;;  %v6345_v49 = vmul.f32 0.17677669, %v5028_v24 }
 0x327   : > { %v5029_v26 = vpop.f32.mrb[38].mxu1  ;;  %v6347_v50 = vmul.f32 0.17677669, %v1446_v25 }
 0x328   : > { %v1449_v27 = vpop.f32.mrb[39].mxu1  ;;  %v6335_v38 = vmul.f32 0.17677669, %v5029_v26  ;;  %v1520_v51 = vsel %vm1477_vm1, %v6345_v49, -inf }
 0x329   : > { %v6339_v46 = vmul.f32 0.17677669, %v1449_v27  ;;  %v1514_v52 = vsel %vm1477_vm1, %v6347_v50, -inf }
 0x32a   : > { %v1523_v20 = vsel %vm1477_vm1, %v6335_v38, -inf }
 0x32b   : > { %v1517_v47 = vsel %vm1477_vm1, %v6339_v46, -inf }
 0x33b   : > { %1836 = vrot.lane.b32.xlu0 %v6172_v59, %s5865_s22 }
 0x348   : > { %1512 = vmax.xlane.f32.xlu1 %v1511_v30 }
 0x34c   : > { %1506 = vmax.xlane.f32.xlu1 %v1505_v40 }
 0x350   : > { %1524 = vmax.xlane.f32.xlu1 %v1523_v20 }
 0x354   : > { %1518 = vmax.xlane.f32.xlu1 %v1517_v47 }
 0x35a   : > { %1521 = vmax.xlane.f32.xlu0 %v1520_v51 }
 0x35e   : > { %1515 = vmax.xlane.f32.xlu0 %v1514_v52 }
 0x365   : > { %1947 = vrot.lane.b32.xlu1 %v6192_v15, %s5865_s22 }
 0x38e   : > { %v1486_v61 = vpop.xlane.xlu1 %1485 }
 0x38f   : > { %v1528_v63 = vsub.f32 %v6283_v39, %v1486_v61  ;;  %v1480_v0 = vpop.xlane.xlu0 %1479 }
 0x390   : > { %v1526_v3 = vsub.f32 %v6285_v41, %v1480_v0 }
 0x391   : > { %v1546_v4 = vmul.f32 1.442695, %v1528_v63 }
 0x392   : > { %v1542_v7 = vmul.f32 1.442695, %v1526_v3  ;;  %v1489_v8 = vpop.xlane.xlu1 %1488 }
 0x393   : > { %5585 = vpow2.f32 %v1546_v4  ;;  %v1529_v10 = vsub.f32 %v6287_v17, %v1489_v8  ;;  %v1483_v11 = vpop.xlane.xlu0 %1482 }
 0x394   : > { %v1527_v13 = vsub.f32 %v6291_v48, %v1483_v11  ;;  %5587 = vpow2.f32 %v1542_v7 }
 0x395   : > { %v1548_v19 = vmul.f32 1.442695, %v1529_v10 }
 0x396   : > { %v1544_v23 = vmul.f32 1.442695, %v1527_v13 }
 0x397   : > { %5589 = vpow2.f32 %v1548_v19  ;;  %v1498_v24 = vpop.xlane.xlu0 %1497 }
 0x398   : > { %v1532_v25 = vsub.f32 %v6299_v53, %v1498_v24  ;;  %v1501_v39 = vpop.xlane.xlu1 %1500  ;;  %5591 = vpow2.f32 %v1544_v23 }
 0x399   : > { %v1533_v41 = vsub.f32 %v6301_v62, %v1501_v39 }
 0x39a   : > { %v1554_v26 = vmul.f32 1.442695, %v1532_v25 }
 0x39b   : > { %v1556_v27 = vmul.f32 1.442695, %v1533_v41  ;;  %v1492_v30 = vpop.xlane.xlu0 %1491 }
 0x39c   : > { %5593 = vpow2.f32 %v1554_v26  ;;  %v1530_v17 = vsub.f32 %v6305_v1, %v1492_v30  ;;  %v1495_v40 = vpop.xlane.xlu1 %1494 }
 0x39d   : > { %v6364_v20 = vpop.eup %5585  ;;  %5595 = vpow2.f32 %v1556_v27  ;;  %v1531_v48 = vsub.f32 %v6307_v2, %v1495_v40 }
 0x39e   : > { %v1550_v47 = vmul.f32 1.442695, %v1530_v17  ;;  %v1580_v53 = vsel %vm1477_vm1, %v6364_v20, 0.0  ;;  %v6369_v51 = vpop.eup %5587 }
 0x39f   : > { %v1552_v52 = vmul.f32 1.442695, %v1531_v48  ;;  %1581 = vadd.xlane.f32.xlu0 %v1580_v53  ;;  %v1574_v1 = vsel %vm1477_vm1, %v6369_v51, 0.0 }
 0x3a0   : > { %5597 = vpow2.f32 %v1550_v47  ;;  %v6371_v62 = vpop.permute.xlu1 %1945 }
 0x3a1   : > { %v6373_v61 = vpop.eup %5589  ;;  %5599 = vpow2.f32 %v1552_v52  ;;  %5362 = vmatprep.subr.msk.bf16.mxu0 %vm1282_vm0, %v6371_v62 }
 0x3a2   : > { %v1583_v2 = vsel %vm1477_vm1, %v6373_v61, 0.0  ;;  %v6381_v63 = vpop.eup %5591 }
 0x3a3   : > { %1575 = vadd.xlane.f32.xlu0 %v1574_v1  ;;  %1584 = vadd.xlane.f32.xlu1 %v1583_v2  ;;  %v1577_v3 = vsel %vm1477_vm1, %v6381_v63, 0.0 }
 0x3a6   : > { %v6383_v0 = vpop.eup %5593 }
 0x3a7   : > { %v6387_v4 = vpop.eup %5595  ;;  %1578 = vadd.xlane.f32.xlu1 %v1577_v3  ;;  %v1592_v7 = vsel %vm1477_vm1, %v6383_v0, 0.0 }
 0x3a8   : > { %1593 = vadd.xlane.f32.xlu0 %v1592_v7  ;;  %v1595_v10 = vsel %vm1477_vm1, %v6387_v4, 0.0 }
 0x3aa   : > { %v6391_v8 = vpop.eup %5597 }
 0x3ab   : > { %v6395_v11 = vpop.eup %5599  ;;  %1596 = vadd.xlane.f32.xlu1 %v1595_v10  ;;  %v1586_v13 = vsel %vm1477_vm1, %v6391_v8, 0.0 }
 0x3ac   : > { %1587 = vadd.xlane.f32.xlu0 %v1586_v13  ;;  %v1589_v23 = vsel %vm1477_vm1, %v6395_v11, 0.0 }
 0x3ae   : > { %v1510_v19 = vpop.xlane.xlu0 %1509 }
 0x3af   : > { %v1536_v24 = vsub.f32 %v6315_v9, %v1510_v19  ;;  %1590 = vadd.xlane.f32.xlu1 %v1589_v23  ;;  %v6411_v9 = vpop.permute.xlu1 %1838 }
 0x3b1   : > { %v1562_v25 = vmul.f32 1.442695, %v1536_v24 }
 0x3b2   : > { %v1504_v39 = vpop.xlane.xlu0 %1503 }
 0x3b3   : > { %5601 = vpow2.f32 %v1562_v25  ;;  %v1534_v41 = vsub.f32 %v6317_v12, %v1504_v39 }
 0x3b5   : > { %v1558_v26 = vmul.f32 1.442695, %v1534_v41 }
 0x3b6   : > { %v6417_v3 = vpop.permute.xlu0 %1836 }
 0x3b7   : > { %5603 = vpow2.f32 %v1558_v26 }
 0x3bd   : > { %v6403_v27 = vpop.eup %5601 }
 0x3be   : > { %v1604_v30 = vsel %vm1477_vm1, %v6403_v27, 0.0 }
 0x3bf   : > { %1605 = vadd.xlane.f32.xlu0 %v1604_v30 }
 0x3c1   : > { %v6407_v17 = vpop.eup %5603 }
 0x3c2   : > { %v1598_v40 = vsel %vm1477_vm1, %v6407_v17, 0.0 }
 0x3c3   : > { %1599 = vadd.xlane.f32.xlu0 %v1598_v40 }
 0x3d5   : > { %v1513_v48 = vpop.xlane.xlu1 %1512 }
 0x3d6   : > { %v1537_v47 = vsub.f32 %v6329_v28, %v1513_v48 }
 0x3d8   : > { %v1564_v12 = vmul.f32 1.442695, %v1537_v47 }
 0x3d9   : > { %1820 = vrot.lane.b32.xlu0 %v6138_v35, %s5865_s22  ;;  %v1507_v53 = vpop.xlane.xlu1 %1506 }
 0x3da   : > { %5605 = vpow2.f32 %v1564_v12  ;;  %v1535_v52 = vsub.f32 %v6331_v29, %v1507_v53 }
 0x3dc   : > { %v1560_v1 = vmul.f32 1.442695, %v1535_v52 }
 0x3dd   : > { %v1525_v2 = vpop.xlane.xlu1 %1524 }
 0x3de   : > { %5607 = vpow2.f32 %v1560_v1  ;;  %v1541_v48 = vsub.f32 %v6335_v38, %v1525_v2 }
 0x3e0   : > { %v1572_v12 = vmul.f32 1.442695, %v1541_v48 }
 0x3e1   : > { %v1519_v7 = vpop.xlane.xlu1 %1518 }
 0x3e2   : > { %v1539_v28 = vsub.f32 %v6339_v46, %v1519_v7 }
 0x3e4   : > { %v6419_v10 = vpop.eup %5605  ;;  %v1568_v25 = vmul.f32 1.442695, %v1539_v28 }
 0x3e5   : > { %v1607_v13 = vsel %vm1477_vm1, %v6419_v10, 0.0  ;;  %v6463_v1 = vpop.permute.xlu1 %1947 }
 0x3e6   : > { %1608 = vadd.xlane.f32.xlu1 %v1607_v13 }
 0x3e7   : > { %v1522_v19 = vpop.xlane.xlu0 %1521 }
 0x3e8   : > { %v6424_v23 = vpop.eup %5607  ;;  %v1540_v24 = vsub.f32 %v6345_v49, %v1522_v19 }
 0x3e9   : > { %v1601_v29 = vsel %vm1477_vm1, %v6424_v23, 0.0 }
 0x3ea   : > { %v1570_v39 = vmul.f32 1.442695, %v1540_v24  ;;  %1602 = vadd.xlane.f32.xlu1 %v1601_v29 }
 0x3eb   : > { %v1516_v30 = vpop.xlane.xlu0 %1515 }
 0x3ec   : > { %5609 = vpow2.f32 %v1570_v39  ;;  %v1538_v40 = vsub.f32 %v6347_v50, %v1516_v30 }
 0x3ed   : > { %5611 = vpow2.f32 %v1568_v25 }
 0x3ee   : > { %v1566_v47 = vmul.f32 1.442695, %v1538_v40 }
 0x3f0   : > { %5613 = vpow2.f32 %v1566_v47 }
 0x3f1   : > { %5615 = vpow2.f32 %v1572_v12 }
 0x3f6   : > { %v6429_v41 = vpop.eup %5609 }
 0x3f7   : > { %v1616_v26 = vsel %vm1477_vm1, %v6429_v41, 0.0  ;;  %v6433_v46 = vpop.eup %5611 }
 0x3f8   : > { %1617 = vadd.xlane.f32.xlu0 %v1616_v26  ;;  %v1613_v49 = vsel %vm1477_vm1, %v6433_v46, 0.0 }
 0x3fa   : > { %v6447_v53 = vpop.eup %5613 }
 0x3fb   : > { %1822 = vrot.lane.b32.xlu1 %v6134_v32, %s5865_s22  ;;  %v1610_v38 = vsel %vm1477_vm1, %v6447_v53, 0.0  ;;  %v6453_v50 = vpop.eup %5615 }
 0x3fc   : > { %1614 = vadd.xlane.f32.xlu0 %v1613_v49  ;;  %v1619_v52 = vsel %vm1477_vm1, %v6453_v50, 0.0 }
 0x412   : > { %1949 = vrot.lane.b32.xlu0 %v6228_v45, %s5865_s22 }
 0x416   : > { %1933 = vrot.lane.b32.xlu0 %v6194_v16, %s5865_s22 }
 0x41a   : > { %1824 = vrot.lane.b32.xlu0 %v6168_v57, %s5865_s22 }
 0x41e   : > { %1937 = vrot.lane.b32.xlu0 %v6226_v44, %s5865_s22 }
 0x41f   : > { %1611 = vadd.xlane.f32.xlu1 %v1610_v38 }
 0x422   : > { %2246 = vrot.lane.b32.xlu0 %v6243_v60, %s5865_s22 }
 0x423   : > { %1620 = vadd.xlane.f32.xlu1 %v1619_v52 }
 0x426   : > { %2250 = vrot.lane.b32.xlu0 %v6254_v6, %s5865_s22 }
 0x42a   : > { %2339 = vrot.lane.b32.xlu0 %v6265_v22, %s5865_s22 }
 0x42c   : > { %v1582_v2 = vpop.xlane.xlu0 %1581 }
 0x42e   : > { %2345 = vrot.lane.b32.xlu0 %v6270_v31, %s5865_s22 }
 0x430   : > { %v1576_v7 = vpop.xlane.xlu0 %1575  ;;  %v1585_v13 = vpop.xlane.xlu1 %1584 }
 0x431   : > { %5617 = vrcp.f32 %v1585_v13 }
 0x432   : > { %5619 = vrcp.f32 %v1576_v7 }
 0x433   : > { %5621 = vrcp.f32 %v1582_v2 }
 0x434   : > { %1951 = vrot.lane.b32.xlu1 %v6224_v43, %s5865_s22  ;;  %v1579_v28 = vpop.xlane.xlu1 %1578 }
 0x435   : > { %5623 = vrcp.f32 %v1579_v28  ;;  %v1594_v19 = vpop.xlane.xlu0 %1593 }
 0x438   : > { %1935 = vrot.lane.b32.xlu1 %v6190_v14, %s5865_s22  ;;  %v1597_v24 = vpop.xlane.xlu1 %1596 }
 0x439   : > { %v1588_v29 = vpop.xlane.xlu0 %1587  ;;  %5625 = vrcp.f32 %v1597_v24 }
 0x43a   : > { %5627 = vrcp.f32 %v1588_v29 }
 0x43b   : > { %v5618_v25 = vpop.eup %5617  ;;  %5629 = vrcp.f32 %v1594_v19 }
 0x43c   : > { %1826 = vrot.lane.b32.xlu1 %v6164_v54, %s5865_s22  ;;  %v1591_v39 = vpop.xlane.xlu1 %1590  ;;  %v5620_v26 = vpop.eup %5619  ;;  %v1641_v40 = vmul.f32 %v5618_v25, %v6373_v61  ;;  %v1853_v61 = vsel %vm1282_vm0, %v6279_v34, 0 }
 0x43d   : > { %5631 = vrcp.f32 %v1591_v39  ;;  %v5622_v49 = vpop.eup %5621  ;;  %v1638_v48 = vmul.f32 %v5620_v26, %v6369_v51 }
 0x43e   : > { %v1640_v12 = vmul.f32 %v5622_v49, %v6364_v20 }
 0x43f   : > { %v5624_v30 = vpop.eup %5623 }
 0x440   : > { %1939 = vrot.lane.b32.xlu1 %v6222_v42, %s5865_s22  ;;  %v1639_v47 = vmul.f32 %v5624_v30, %v6381_v63  ;;  %v1655_v52 = vpack.c.bf16 %v1641_v40, %v1640_v12 }
 0x442   : > { %v1654_v38 = vpack.c.bf16 %v1639_v47, %v1638_v48 }
 0x443   : > { %v5626_v2 = vpop.eup %5625 }
 0x444   : > { %2248 = vrot.lane.b32.xlu1 %v6241_v56, %s5865_s22  ;;  %5038 = vmatprep.mubr.msk.bf16.mxu1 %vm1477_vm1, %v1654_v38  ;;  %v5628_v7 = vpop.eup %5627  ;;  %v1645_v20 = vmul.f32 %v5626_v2, %v6387_v4  ;;  %v1856_v4 = vsel %vm1282_vm0, %v6355_v55, 0 }
 0x445   : > { %5039 = vmatmul.mubr.msk.bf16.vlgmr.msra.gmra.mrb[40].mxu1 %vm1477_vm1, %v1655_v52  ;;  %v5630_v13 = vpop.eup %5629  ;;  %v1642_v63 = vmul.f32 %v5628_v7, %v6391_v8  ;;  %v1966_v7 = vsel %vm1282_vm0, %v6371_v62, 0 }
 0x446   : > { %5063 = vmatpush3.bf16.xpose.msra.mxu1 %v1853_v61  ;;  %v1644_v19 = vmul.f32 %v5630_v13, %v6383_v0 }
 0x447   : > { %v5632_v51 = vpop.eup %5631  ;;  %5359 = vmatprep.subr.msk.bf16.mxu1 %vm1282_vm0, %v6355_v55  ;;  %v1862_v55 = vsel %vm1282_vm0, %v6411_v9, 0 }
 0x448   : > { %2252 = vrot.lane.b32.xlu1 %v6252_v5, %s5865_s22  ;;  %v1643_v28 = vmul.f32 %v5632_v51, %v6395_v11  ;;  %v1657_v29 = vpack.c.bf16 %v1645_v20, %v1644_v19  ;;  %v1859_v11 = vsel %vm1282_vm0, %v6417_v3, 0 }
 0x44a   : > { %v1656_v24 = vpack.c.bf16 %v1643_v28, %v1642_v63 }
 0x44c   : > { %v1606_v34 = vpop.xlane.xlu0 %1605  ;;  %2341 = vrot.lane.b32.xlu1 %v6262_v21, %s5865_s22  ;;  %5042 = vmatprep.mubr.msk.bf16.mxu1 %vm1477_vm1, %v1656_v24 }
 0x44d   : > { %5043 = vmatmul.mubr.msk.bf16.gmra.mrb[44].mxu1 %vm1477_vm1, %v1657_v29 }
 0x44e   : > { %5065 = vmatpush3.bf16.xpose.msra.mxu1 %v1856_v4 }
 0x44f   : > { %5360 = vmatprep.subr.msk.bf16.mxu1 %vm1282_vm0, %v6417_v3 }
 0x450   : > { %v1600_v8 = vpop.xlane.xlu0 %1599  ;;  %2436 = vrot.lane.b32.xlu1 %v6142_v37, %s5866_s25 }
 0x454   : > { %v1821_v0 = vpop.permute.xlu0 %1820  ;;  %2343 = vrot.lane.b32.xlu1 %v6273_v33, %s5865_s22 }
 0x455   : > { %5070 = vmatprep.mubr.msk.bf16.mxu1 %vm1282_vm0, %v1821_v0 }
 0x456   : > { %5067 = vmatpush3.bf16.xpose.msra.mxu1 %v1859_v11 }
 0x457   : > { %5361 = vmatprep.subr.msk.bf16.mxu1 %vm1282_vm0, %v6411_v9 }
 0x458   : > { %2438 = vrot.lane.b32.xlu1 %v6140_v36, %s5866_s25 }
 0x45e   : > { %5069 = vmatpush3.bf16.xpose.msra.mxu1 %v1862_v55 }
 0x473   : > { %v1609_v25 = vpop.xlane.xlu1 %1608 }
 0x474   : > { %5633 = vrcp.f32 %v1609_v25 }
 0x475   : > { %5635 = vrcp.f32 %v1600_v8 }
 0x476   : > { %5637 = vrcp.f32 %v1606_v34 }
 0x477   : > { %v1603_v39 = vpop.xlane.xlu1 %1602 }
 0x478   : > { %5639 = vrcp.f32 %v1603_v39 }
 0x47b   : > { %v1823_v3 = vpop.permute.xlu1 %1822 }
 0x47c   : > { %5071 = vmatmul.mubr.msk.bf16.vlgmr.msra.gmra.mrb[48].mxu1 %vm1282_vm0, %v1823_v3 }
 0x47e   : > { %v5634_v26 = vpop.eup %5633 }
 0x47f   : > { %v5636_v49 = vpop.eup %5635  ;;  %v1649_v48 = vmul.f32 %v5634_v26, %v6419_v10  ;;  %v1969_v10 = vsel %vm1282_vm0, %v6463_v1, 0 }
 0x480   : > { %v5638_v30 = vpop.eup %5637  ;;  %v1646_v47 = vmul.f32 %v5636_v49, %v6407_v17 }
 0x481   : > { %v1648_v12 = vmul.f32 %v5638_v30, %v6403_v27 }
 0x482   : > { %v5640_v40 = vpop.eup %5639 }
 0x483   : > { %v1647_v9 = vmul.f32 %v5640_v40, %v6424_v23  ;;  %v1659_v2 = vpack.c.bf16 %v1649_v48, %v1648_v12 }
 0x485   : > { %v1618_v38 = vpop.xlane.xlu0 %1617  ;;  %v1658_v52 = vpack.c.bf16 %v1647_v9, %v1646_v47 }
 0x487   : > { %5054 = vmatprep.mubr.msk.bf16.mxu0 %vm1477_vm1, %v1658_v52 }
 0x488   : > { %5055 = vmatmul.mubr.msk.bf16.vlgmr.msra.gmra.mrb[72].mxu0 %vm1477_vm1, %v1659_v2 }
 0x489   : > { %5079 = vmatpush3.bf16.xpose.msra.mxu0 %v1966_v7  ;;  %v1615_v61 = vpop.xlane.xlu0 %1614 }
 0x48a   : > { %5363 = vmatprep.subr.msk.bf16.mxu0 %vm1282_vm0, %v6463_v1  ;;  %5641 = vrcp.f32 %v1615_v61 }
 0x48d   : > { %v1950_v17 = vpop.permute.xlu0 %1949 }
 0x48e   : > { %v1972_v13 = vsel %vm1282_vm0, %v1950_v17, 0 }
 0x491   : > { %5081 = vmatpush3.bf16.xpose.msra.mxu0 %v1969_v10  ;;  %v1934_v27 = vpop.permute.xlu0 %1933 }
 0x492   : > { %5364 = vmatprep.subr.msk.bf16.mxu0 %vm1282_vm0, %v1950_v17 }
 0x494   : > { %v5642_v19 = vpop.eup %5641 }
 0x495   : > { %v1825_v23 = vpop.permute.xlu0 %1824  ;;  %v1651_v0 = vmul.f32 %v5642_v19, %v6433_v46 }
 0x496   : > { %5074 = vmatprep.mubr.msk.bf16.mxu1 %vm1282_vm0, %v1825_v23 }
 0x499   : > { %5083 = vmatpush3.bf16.xpose.msra.mxu0 %v1972_v13  ;;  %v1938_v62 = vpop.permute.xlu0 %1937 }
 0x49d   : > { %v2247_v51 = vpop.permute.xlu0 %2246 }
 0x49e   : > { %5094 = vmatprep.subr.bf16.mxu1 %v2247_v51 }
 0x49f   : > { %5095 = vmatpush3.bf16.msra.mxu1 %v2247_v51 }
 0x4a1   : > { %v2251_v63 = vpop.permute.xlu0 %2250 }
 0x4a5   : > { %v2340_v29 = vpop.permute.xlu0 %2339 }
 0x4a9   : > { %v2346_v48 = vpop.permute.xlu0 %2345 }
 0x4ac   : > { %v1612_v20 = vpop.xlane.xlu1 %1611 }
 0x4ad   : > { %5643 = vrcp.f32 %v1612_v20 }
 0x4ae   : > { %5645 = vrcp.f32 %v1618_v38 }
 0x4b0   : > { %v1621_v1 = vpop.xlane.xlu1 %1620 }
 0x4b1   : > { %5647 = vrcp.f32 %v1621_v1 }
 0x4b4   : > { %v1952_v28 = vpop.permute.xlu1 %1951 }
 0x4b5   : > { %5365 = vmatprep.subr.msk.bf16.mxu0 %vm1282_vm0, %v1952_v28  ;;  %v1975_v24 = vsel %vm1282_vm0, %v1952_v28, 0 }
 0x4b6   : > { %5085 = vmatpush3.bf16.xpose.msra.mxu0 %v1975_v24 }
 0x4b7   : > { %v5644_v34 = vpop.eup %5643  ;;  %5110 = vmatprep.subr.bf16.mxu0 %v2340_v29 }
 0x4b8   : > { %v1936_v4 = vpop.permute.xlu1 %1935  ;;  %v1650_v8 = vmul.f32 %v5644_v34, %v6447_v53  ;;  %v5646_v11 = vpop.eup %5645 }
 0x4b9   : > { %v1652_v3 = vmul.f32 %v5646_v11, %v6429_v41 }
 0x4ba   : > { %v1660_v55 = vpack.c.bf16 %v1651_v0, %v1650_v8 }
 0x4bb   : > { %v5648_v25 = vpop.eup %5647 }
 0x4bc   : > { %5058 = vmatprep.mubr.msk.bf16.mxu0 %vm1477_vm1, %v1660_v55  ;;  %v1827_v39 = vpop.permute.xlu1 %1826  ;;  %v1653_v26 = vmul.f32 %v5648_v25, %v6453_v50 }
 0x4bd   : > { %5075 = vmatmul.mubr.msk.bf16.gmra.mrb[52].mxu1 %vm1282_vm0, %v1827_v39 }
 0x4be   : > { %v1661_v49 = vpack.c.bf16 %v1653_v26, %v1652_v3 }
 0x4c0   : > { %5059 = vmatmul.mubr.msk.bf16.gmra.mrb[76].mxu0 %vm1477_vm1, %v1661_v49  ;;  %v1940_v30 = vpop.permute.xlu1 %1939 }
 0x4c1   : > { %5086 = vmatprep.mubr.msk.bf16.mxu0 %vm1282_vm0, %v1934_v27 }
 0x4c4   : > { %v2249_v53 = vpop.permute.xlu1 %2248 }
 0x4c5   : > { %5096 = vmatprep.subr.bf16.mxu1 %v2249_v53 }
 0x4c6   : > { %5097 = vmatpush3.bf16.msra.mxu1 %v2249_v53 }
 0x4c7   : > { %5098 = vmatprep.subr.bf16.mxu1 %v2251_v63 }
 0x4c8   : > { %5087 = vmatmul.mubr.msk.bf16.vlgmr.msra.gmra.mrb[80].mxu0 %vm1282_vm0, %v1936_v4  ;;  %v2253_v46 = vpop.permute.xlu1 %2252 }
 0x4c9   : > { %5111 = vmatpush3.bf16.msra.mxu0 %v2340_v29  ;;  %5090 = vmatprep.mubr.msk.bf16.mxu0 %vm1282_vm0, %v1938_v62 }
 0x4ca   : > { %5099 = vmatpush3.bf16.msra.mxu1 %v2251_v63 }
 0x4cb   : > { %5100 = vmatprep.subr.bf16.mxu1 %v2253_v46 }
 0x4cc   : > { %v2342_v41 = vpop.permute.xlu1 %2341 }
 0x4cd   : > { %5112 = vmatprep.subr.bf16.mxu0 %v2342_v41 }
 0x4ce   : > { %5101 = vmatpush3.bf16.msra.mxu1 %v2253_v46  ;;  %5113 = vmatpush3.bf16.msra.mxu0 %v2342_v41 }
 0x4d0   : > { %5091 = vmatmul.mubr.msk.bf16.gmra.mrb[84].mxu0 %vm1282_vm0, %v1940_v30  ;;  %v6543_v50 = vpop.permute.xlu1 %2436 }
 0x4d1   : > { %5366 = vmatprep.subr.msk.bf16.mxu1 %vm1282_vm0, %v6543_v50 }
 0x4d4   : > { %v2344_v40 = vpop.permute.xlu1 %2343 }
 0x4d5   : > { %5114 = vmatprep.subr.bf16.mxu0 %v2344_v40 }
 0x4d6   : > { %5115 = vmatpush3.bf16.msra.mxu0 %v2344_v40 }
 0x4d7   : > { %5116 = vmatprep.subr.bf16.mxu0 %v2346_v48 }
 0x4da   : > { %5117 = vmatpush3.bf16.msra.mxu0 %v2346_v48 }
 0x518   : > { %v6547_v47 = vpop.f32.mrb[40].mxu1 }
 0x519   : > { %7732 = vst [vmem:[#allocation2_spill] sm:$0xff] %v6547_v47  ;;  %v6549_v9 = vpop.f32.mrb[41].mxu1 }
 0x51a   : > { %7733 = vst [vmem:[#allocation3_spill] sm:$0xff] %v6549_v9  ;;  %v6551_v12 = vpop.f32.mrb[42].mxu1 }
 0x51b   : > { %7734 = vst [vmem:[#allocation4_spill] sm:$0xff] %v6551_v12  ;;  %v6553_v38 = vpop.f32.mrb[43].mxu1 }
 0x51c   : > { %7735 = vst [vmem:[#allocation5_spill] sm:$0xff] %v6553_v38 }
 0x520   : > { %v6555_v52 = vpop.f32.mrb[44].mxu1 }
 0x521   : > { %7736 = vst [vmem:[#allocation6_spill] sm:$0xff] %v6555_v52  ;;  %v6557_v2 = vpop.f32.mrb[45].mxu1 }
 0x522   : > { %7737 = vst [vmem:[#allocation7_spill] sm:$0xff] %v6557_v2  ;;  %v6559_v7 = vpop.f32.mrb[46].mxu1 }
 0x523   : > { %7738 = vst [vmem:[#allocation8_spill] sm:$0xff] %v6559_v7  ;;  %v6561_v61 = vpop.f32.mrb[47].mxu1 }
 0x524   : > { %7739 = vst [vmem:[#allocation9_spill] sm:$0xff] %v6561_v61 }
 0x54f   : > { %v5072_v17 = vpop.f32.mrb[48].mxu1 }
 0x550   : > { %v6563_v10 = vmul.f32 0.17677669, %v5072_v17  ;;  %v1898_v27 = vpop.f32.mrb[49].mxu1 }
 0x551   : > { %v5073_v23 = vpop.f32.mrb[50].mxu1  ;;  %v6565_v13 = vmul.f32 0.17677669, %v1898_v27 }
 0x552   : > { %v1901_v62 = vpop.f32.mrb[51].mxu1  ;;  %v2064_v51 = vsel %vm1477_vm1, %v6563_v10, -inf  ;;  %v6573_v1 = vmul.f32 0.17677669, %v5073_v23 }
 0x553   : > { %v6569_v20 = vmul.f32 0.17677669, %v1901_v62  ;;  %2065 = vmax.xlane.f32.xlu0 %v2064_v51  ;;  %v2058_v28 = vsel %vm1477_vm1, %v6565_v13, -inf }
 0x554   : > { %v2067_v19 = vsel %vm1477_vm1, %v6573_v1, -inf }
 0x555   : > { %v2061_v63 = vsel %vm1477_vm1, %v6569_v20, -inf }
 0x556   : > { %2062 = vmax.xlane.f32.xlu1 %v2061_v63 }
 0x557   : > { %2059 = vmax.xlane.f32.xlu0 %v2058_v28 }
 0x55b   : > { %v6579_v24 = vpop.f32.mrb[72].mxu0  ;;  %2068 = vmax.xlane.f32.xlu0 %v2067_v19 }
 0x55c   : > { %7740 = vst [vmem:[#allocation10_spill] sm:$0xff] %v6579_v24  ;;  %v6581_v29 = vpop.f32.mrb[73].mxu0 }
 0x55d   : > { %7741 = vst [vmem:[#allocation11_spill] sm:$0xff] %v6581_v29  ;;  %v6583_v34 = vpop.f32.mrb[74].mxu0 }
 0x55e   : > { %7742 = vst [vmem:[#allocation12_spill] sm:$0xff] %v6583_v34  ;;  %v6585_v4 = vpop.f32.mrb[75].mxu0 }
 0x55f   : > { %7743 = vst [vmem:[#allocation13_spill] sm:$0xff] %v6585_v4 }
 0x590   : > { %v5076_v8 = vpop.f32.mrb[52].mxu1 }
 0x591   : > { %v6587_v0 = vmul.f32 0.17677669, %v5076_v8  ;;  %v1914_v11 = vpop.f32.mrb[53].mxu1 }
 0x592   : > { %v6589_v55 = vmul.f32 0.17677669, %v1914_v11  ;;  %v5077_v25 = vpop.f32.mrb[54].mxu1 }
 0x593   : > { %v6591_v39 = vmul.f32 0.17677669, %v5077_v25  ;;  %v6593_v3 = vpop.f32.mrb[76].mxu0  ;;  %v1917_v26 = vpop.f32.mrb[55].mxu1  ;;  %v2076_v49 = vsel %vm1477_vm1, %v6587_v0, -inf }
 0x594   : > { %7744 = vst [vmem:[#allocation14_spill] sm:$0xff] %v6593_v3  ;;  %v6597_v30 = vpop.f32.mrb[77].mxu0  ;;  %2077 = vmax.xlane.f32.xlu0 %v2076_v49  ;;  %v6599_v53 = vmul.f32 0.17677669, %v1917_v26  ;;  %v2070_v48 = vsel %vm1477_vm1, %v6589_v55, -inf }
 0x595   : > { %7745 = vst [vmem:[#allocation15_spill] sm:$0xff] %v6597_v30  ;;  %v6601_v46 = vpop.f32.mrb[78].mxu0  ;;  %v2079_v41 = vsel %vm1477_vm1, %v6591_v39, -inf }
 0x596   : > { %7746 = vst [vmem:[#allocation16_spill] sm:$0xff] %v6601_v46  ;;  %v6605_v40 = vpop.f32.mrb[79].mxu0  ;;  %2080 = vmax.xlane.f32.xlu1 %v2079_v41  ;;  %v2073_v17 = vsel %vm1477_vm1, %v6599_v53, -inf }
 0x597   : > { %7747 = vst [vmem:[#allocation17_spill] sm:$0xff] %v6605_v40 }
 0x598   : > { %2071 = vmax.xlane.f32.xlu0 %v2070_v48 }
 0x59a   : > { %2074 = vmax.xlane.f32.xlu1 %v2073_v17 }
 0x59b   : > { %v5088_v27 = vpop.f32.mrb[80].mxu0 }
 0x59c   : > { %v6611_v23 = vmul.f32 0.17677669, %v5088_v27  ;;  %v2011_v62 = vpop.f32.mrb[81].mxu0 }
 0x59d   : > { %v5089_v51 = vpop.f32.mrb[82].mxu0  ;;  %v6613_v63 = vmul.f32 0.17677669, %v2011_v62 }
 0x59e   : > { %v2014_v28 = vpop.f32.mrb[83].mxu0  ;;  %v2088_v19 = vsel %vm1477_vm1, %v6611_v23, -inf  ;;  %v6625_v41 = vmul.f32 0.17677669, %v5089_v51 }
 0x59f   : > { %2089 = vmax.xlane.f32.xlu0 %v2088_v19  ;;  %v2082_v8 = vsel %vm1477_vm1, %v6613_v63, -inf  ;;  %v6627_v48 = vmul.f32 0.17677669, %v2014_v28 }
 0x5a0   : > { %v2091_v17 = vsel %vm1477_vm1, %v6625_v41, -inf }
 0x5a1   : > { %v2085_v19 = vsel %vm1477_vm1, %v6627_v48, -inf }
 0x5a3   : > { %2083 = vmax.xlane.f32.xlu0 %v2082_v8  ;;  %v5092_v11 = vpop.f32.mrb[84].mxu0 }
 0x5a4   : > { %v2027_v25 = vpop.f32.mrb[85].mxu0  ;;  %v6631_v27 = vmul.f32 0.17677669, %v5092_v11 }
 0x5a5   : > { %v5093_v26 = vpop.f32.mrb[86].mxu0  ;;  %v6637_v8 = vmul.f32 0.17677669, %v2027_v25 }
 0x5a6   : > { %v2030_v49 = vpop.f32.mrb[87].mxu0  ;;  %v6633_v62 = vmul.f32 0.17677669, %v5093_v26  ;;  %v2100_v51 = vsel %vm1477_vm1, %v6631_v27, -inf }
 0x5a7   : > { %v6641_v28 = vmul.f32 0.17677669, %v2030_v49  ;;  %v2094_v11 = vsel %vm1477_vm1, %v6637_v8, -inf }
 0x5a8   : > { %v2103_v30 = vsel %vm1477_vm1, %v6633_v62, -inf }
 0x5a9   : > { %v2097_v26 = vsel %vm1477_vm1, %v6641_v28, -inf }
 0x5ab   : > { %2541 = vrot.lane.b32.xlu1 %v6196_v18, %s5866_s25 }
 0x5af   : > { %2442 = vrot.lane.b32.xlu1 %v6170_v58, %s5866_s25 }
 0x5b9   : > { %2440 = vrot.lane.b32.xlu0 %v6172_v59, %s5866_s25 }
 0x5d3   : > { %2092 = vmax.xlane.f32.xlu1 %v2091_v17 }
 0x5d7   : > { %2086 = vmax.xlane.f32.xlu1 %v2085_v19 }
 0x5d8   : > { %2101 = vmax.xlane.f32.xlu0 %v2100_v51 }
 0x5db   : > { %2104 = vmax.xlane.f32.xlu1 %v2103_v30 }
 0x5dc   : > { %2095 = vmax.xlane.f32.xlu0 %v2094_v11 }
 0x5df   : > { %2098 = vmax.xlane.f32.xlu1 %v2097_v26  ;;  %v6661_v26 = vpop.permute.xlu1 %2438 }
 0x5e0   : > { %v2066_v25 = vpop.xlane.xlu0 %2065 }
 0x5e1   : > { %v2108_v17 = vsub.f32 %v6563_v10, %v2066_v25 }
 0x5e3   : > { %v2126_v19 = vmul.f32 1.442695, %v2108_v17  ;;  %v2063_v25 = vpop.xlane.xlu1 %2062 }
 0x5e4   : > { %v2060_v40 = vpop.xlane.xlu0 %2059  ;;  %v2107_v17 = vsub.f32 %v6569_v20, %v2063_v25 }
 0x5e5   : > { %5649 = vpow2.f32 %v2126_v19  ;;  %v2106_v49 = vsub.f32 %v6565_v13, %v2060_v40 }
 0x5e7   : > { %v2122_v51 = vmul.f32 1.442695, %v2106_v49  ;;  %v2124_v49 = vmul.f32 1.442695, %v2107_v17 }
 0x5e8   : > { %v2069_v13 = vpop.xlane.xlu0 %2068 }
 0x5e9   : > { %5651 = vpow2.f32 %v2122_v51  ;;  %v2109_v40 = vsub.f32 %v6573_v1, %v2069_v13 }
 0x5eb   : > { %v2128_v19 = vmul.f32 1.442695, %v2109_v40 }
 0x5ed   : > { %5653 = vpow2.f32 %v2128_v19 }
 0x5ee   : > { %5655 = vpow2.f32 %v2124_v49 }
 0x5ef   : > { %v6651_v3 = vpop.eup %5649 }
 0x5f0   : > { %2543 = vrot.lane.b32.xlu1 %v6192_v15, %s5866_s25  ;;  %v2160_v30 = vsel %vm1477_vm1, %v6651_v3, 0.0 }
 0x5f1   : > { %2161 = vadd.xlane.f32.xlu0 %v2160_v30 }
 0x5f3   : > { %v6657_v11 = vpop.eup %5651 }
 0x5f4   : > { %v2154_v10 = vsel %vm1477_vm1, %v6657_v11, 0.0 }
 0x5f5   : > { %2155 = vadd.xlane.f32.xlu0 %v2154_v10 }
 0x5f7   : > { %v6665_v51 = vpop.eup %5653 }
 0x5f8   : > { %v2163_v30 = vsel %vm1477_vm1, %v6665_v51, 0.0  ;;  %v6669_v46 = vpop.eup %5655 }
 0x5f9   : > { %v2157_v10 = vsel %vm1477_vm1, %v6669_v46, 0.0 }
 0x614   : > { %2164 = vadd.xlane.f32.xlu1 %v2163_v30 }
 0x618   : > { %2158 = vadd.xlane.f32.xlu1 %v2157_v10 }
 0x621   : > { %v2078_v1 = vpop.xlane.xlu0 %2077 }
 0x622   : > { %v2112_v13 = vsub.f32 %v6587_v0, %v2078_v1 }
 0x623   : > { %v2081_v20 = vpop.xlane.xlu1 %2080 }
 0x624   : > { %v2134_v40 = vmul.f32 1.442695, %v2112_v13  ;;  %v2113_v25 = vsub.f32 %v6591_v39, %v2081_v20 }
 0x625   : > { %v2072_v17 = vpop.xlane.xlu0 %2071 }
 0x626   : > { %5657 = vpow2.f32 %v2134_v40  ;;  %v2110_v19 = vsub.f32 %v6589_v55, %v2072_v17  ;;  %v2136_v49 = vmul.f32 1.442695, %v2113_v25 }
 0x627   : > { %v2075_v52 = vpop.xlane.xlu1 %2074 }
 0x628   : > { %v2130_v7 = vmul.f32 1.442695, %v2110_v19  ;;  %v2111_v30 = vsub.f32 %v6599_v53, %v2075_v52 }
 0x62a   : > { %5659 = vpow2.f32 %v2130_v7  ;;  %v2132_v2 = vmul.f32 1.442695, %v2111_v30 }
 0x62b   : > { %5661 = vpow2.f32 %v2136_v49  ;;  %v6677_v10 = vpop.permute.xlu1 %2541 }
 0x62c   : > { %5663 = vpow2.f32 %v2132_v2  ;;  %v2090_v0 = vpop.xlane.xlu0 %2089  ;;  %5370 = vmatprep.subr.msk.bf16.mxu0 %vm1282_vm0, %v6677_v10 }
 0x62d   : > { %v2116_v39 = vsub.f32 %v6611_v23, %v2090_v0 }
 0x62f   : > { %v2142_v1 = vmul.f32 1.442695, %v2116_v39  ;;  %v6707_v0 = vpop.permute.xlu1 %2442 }
 0x630   : > { %v6682_v13 = vpop.eup %5657  ;;  %v2084_v55 = vpop.xlane.xlu0 %2083 }
 0x631   : > { %5665 = vpow2.f32 %v2142_v1  ;;  %v2114_v20 = vsub.f32 %v6613_v63, %v2084_v55  ;;  %v2172_v52 = vsel %vm1477_vm1, %v6682_v13, 0.0 }
 0x632   : > { %2173 = vadd.xlane.f32.xlu0 %v2172_v52 }
 0x633   : > { %v2138_v7 = vmul.f32 1.442695, %v2114_v20 }
 0x634   : > { %v6687_v53 = vpop.eup %5659 }
 0x635   : > { %v6689_v2 = vpop.eup %5661  ;;  %5667 = vpow2.f32 %v2138_v7  ;;  %v2166_v23 = vsel %vm1477_vm1, %v6687_v53, 0.0 }
 0x636   : > { %v6693_v40 = vpop.eup %5663  ;;  %2167 = vadd.xlane.f32.xlu0 %v2166_v23  ;;  %v2175_v63 = vsel %vm1477_vm1, %v6689_v2, 0.0 }
 0x637   : > { %v2169_v25 = vsel %vm1477_vm1, %v6693_v40, 0.0 }
 0x638   : > { %2170 = vadd.xlane.f32.xlu1 %v2169_v25 }
 0x63a   : > { %2176 = vadd.xlane.f32.xlu0 %v2175_v63 }
 0x63b   : > { %v6699_v17 = vpop.eup %5665 }
 0x63c   : > { %v2184_v19 = vsel %vm1477_vm1, %v6699_v17, 0.0 }
 0x63d   : > { %2185 = vadd.xlane.f32.xlu1 %v2184_v19 }
 0x63f   : > { %v6703_v49 = vpop.eup %5667 }
 0x640   : > { %v2178_v30 = vsel %vm1477_vm1, %v6703_v49, 0.0 }
 0x641   : > { %2179 = vadd.xlane.f32.xlu1 %v2178_v30  ;;  %v6721_v30 = vpop.permute.xlu0 %2440 }
 0x660   : > { %v2093_v39 = vpop.xlane.xlu1 %2092 }
 0x661   : > { %v2117_v1 = vsub.f32 %v6625_v41, %v2093_v39 }
 0x663   : > { %v2144_v55 = vmul.f32 1.442695, %v2117_v1 }
 0x664   : > { %v2087_v20 = vpop.xlane.xlu1 %2086 }
 0x665   : > { %5669 = vpow2.f32 %v2144_v55  ;;  %v2115_v52 = vsub.f32 %v6627_v48, %v2087_v20  ;;  %v2102_v39 = vpop.xlane.xlu0 %2101 }
 0x666   : > { %v2120_v55 = vsub.f32 %v6631_v27, %v2102_v39 }
 0x667   : > { %v2140_v7 = vmul.f32 1.442695, %v2115_v52 }
 0x668   : > { %v2105_v41 = vpop.xlane.xlu1 %2104 }
 0x669   : > { %5671 = vpow2.f32 %v2140_v7  ;;  %v2096_v52 = vpop.xlane.xlu0 %2095  ;;  %v2150_v7 = vmul.f32 1.442695, %v2120_v55 }
 0x66c   : > { %v2099_v48 = vpop.xlane.xlu1 %2098 }
 0x66d   : > { %v2119_v1 = vsub.f32 %v6641_v28, %v2099_v48 }
 0x66f   : > { %v6711_v23 = vpop.eup %5669  ;;  %v2148_v20 = vmul.f32 1.442695, %v2119_v1 }
 0x670   : > { %v2187_v25 = vsel %vm1477_vm1, %v6711_v23, 0.0  ;;  %v6729_v4 = vpop.permute.xlu1 %2543 }
 0x671   : > { %2188 = vadd.xlane.f32.xlu1 %v2187_v25  ;;  %v2118_v25 = vsub.f32 %v6637_v8, %v2096_v52  ;;  %5673 = vpow2.f32 %v2148_v20 }
 0x672   : > { %5675 = vpow2.f32 %v2150_v7 }
 0x673   : > { %v6715_v63 = vpop.eup %5671  ;;  %v2146_v29 = vmul.f32 1.442695, %v2118_v25 }
 0x674   : > { %v2181_v19 = vsel %vm1477_vm1, %v6715_v63, 0.0 }
 0x675   : > { %2182 = vadd.xlane.f32.xlu0 %v2181_v19  ;;  %v2121_v19 = vsub.f32 %v6633_v62, %v2105_v41  ;;  %5677 = vpow2.f32 %v2146_v29 }
 0x677   : > { %v2152_v24 = vmul.f32 1.442695, %v2121_v19 }
 0x679   : > { %5679 = vpow2.f32 %v2152_v24 }
 0x67b   : > { %v6731_v28 = vpop.eup %5673 }
 0x67c   : > { %v2193_v8 = vsel %vm1477_vm1, %v6731_v28, 0.0  ;;  %v6735_v62 = vpop.eup %5675 }
 0x67d   : > { %v2196_v41 = vsel %vm1477_vm1, %v6735_v62, 0.0 }
 0x67e   : > { %v2162_v61 = vpop.xlane.xlu0 %2161 }
 0x67f   : > { %v6739_v29 = vpop.eup %5677 }
 0x682   : > { %2430 = vrot.lane.b32.xlu1 %v6134_v32, %s5866_s25  ;;  %v2156_v34 = vpop.xlane.xlu0 %2155 }
 0x683   : > { %v6741_v48 = vpop.eup %5679 }
 0x684   : > { %v2199_v55 = vsel %vm1477_vm1, %v6741_v48, 0.0 }
 0x68b   : > { %2428 = vrot.lane.b32.xlu0 %v6138_v35, %s5866_s25 }
 0x6a1   : > { %v2165_v47 = vpop.xlane.xlu1 %2164 }
 0x6a2   : > { %5681 = vrcp.f32 %v2165_v47  ;;  %v2190_v47 = vsel %vm1477_vm1, %v6739_v29, 0.0 }
 0x6a3   : > { %5683 = vrcp.f32 %v2156_v34 }
 0x6a4   : > { %5685 = vrcp.f32 %v2162_v61 }
 0x6a5   : > { %v2159_v27 = vpop.xlane.xlu1 %2158 }
 0x6a6   : > { %5687 = vrcp.f32 %v2159_v27  ;;  %2194 = vadd.xlane.f32.xlu1 %v2193_v8  ;;  %v2457_v27 = vsel %vm1282_vm0, %v6543_v50, 0 }
 0x6aa   : > { %2197 = vadd.xlane.f32.xlu0 %v2196_v41 }
 0x6ac   : > { %v5682_v24 = vpop.eup %5681 }
 0x6ad   : > { %v5684_v61 = vpop.eup %5683  ;;  %v2221_v1 = vmul.f32 %v5682_v24, %v6665_v51  ;;  %v2463_v51 = vsel %vm1282_vm0, %v6721_v30, 0 }
 0x6ae   : > { %2191 = vadd.xlane.f32.xlu0 %v2190_v47  ;;  %v5686_v34 = vpop.eup %5685  ;;  %v2218_v20 = vmul.f32 %v5684_v61, %v6657_v11 }
 0x6af   : > { %v2220_v7 = vmul.f32 %v5686_v34, %v6651_v3  ;;  %v2460_v3 = vsel %vm1282_vm0, %v6661_v26, 0 }
 0x6b0   : > { %v5688_v39 = vpop.eup %5687 }
 0x6b1   : > { %v2219_v52 = vmul.f32 %v5688_v39, %v6669_v46  ;;  %v2235_v19 = vpack.c.bf16 %v2221_v1, %v2220_v7 }
 0x6b2   : > { %2200 = vadd.xlane.f32.xlu0 %v2199_v55 }
 0x6b3   : > { %v2234_v25 = vpack.c.bf16 %v2219_v52, %v2218_v20 }
 0x6b5   : > { %5102 = vmatprep.mubr.msk.bf16.mxu1 %vm1477_vm1, %v2234_v25 }
 0x6b6   : > { %5103 = vmatmul.mubr.msk.bf16.vlgmr.msra.gmra.mrb[56].mxu1 %vm1477_vm1, %v2235_v19 }
 0x6b7   : > { %5127 = vmatpush3.bf16.xpose.msra.mxu1 %v2457_v27  ;;  %2547 = vrot.lane.b32.xlu1 %v6224_v43, %s5866_s25 }
 0x6b8   : > { %5367 = vmatprep.subr.msk.bf16.mxu1 %vm1282_vm0, %v6661_v26 }
 0x6bb   : > { %2535 = vrot.lane.b32.xlu1 %v6190_v14, %s5866_s25 }
 0x6bf   : > { %5129 = vmatpush3.bf16.xpose.msra.mxu1 %v2460_v3  ;;  %v2174_v46 = vpop.xlane.xlu0 %2173  ;;  %2434 = vrot.lane.b32.xlu1 %v6164_v54, %s5866_s25  ;;  %v2562_v3 = vsel %vm1282_vm0, %v6677_v10, 0 }
 0x6c0   : > { %5368 = vmatprep.subr.msk.bf16.mxu1 %vm1282_vm0, %v6721_v30  ;;  %v2466_v30 = vsel %vm1282_vm0, %v6707_v0, 0 }
 0x6c3   : > { %v2168_v50 = vpop.xlane.xlu0 %2167  ;;  %2539 = vrot.lane.b32.xlu1 %v6222_v42, %s5866_s25 }
 0x6c4   : > { %5689 = vrcp.f32 %v2168_v50 }
 0x6c5   : > { %5691 = vrcp.f32 %v2174_v46  ;;  %v2171_v11 = vpop.xlane.xlu1 %2170 }
 0x6c6   : > { %5693 = vrcp.f32 %v2171_v11 }
 0x6c7   : > { %5131 = vmatpush3.bf16.xpose.msra.mxu1 %v2463_v51  ;;  %v2177_v26 = vpop.xlane.xlu0 %2176  ;;  %2840 = vrot.lane.b32.xlu1 %v6241_v56, %s5866_s25 }
 0x6c8   : > { %5695 = vrcp.f32 %v2177_v26  ;;  %5369 = vmatprep.subr.msk.bf16.mxu1 %vm1282_vm0, %v6707_v0  ;;  %2545 = vrot.lane.b32.xlu0 %v6228_v45, %s5866_s25 }
 0x6cb   : > { %2844 = vrot.lane.b32.xlu1 %v6252_v5, %s5866_s25 }
 0x6cc   : > { %2533 = vrot.lane.b32.xlu0 %v6194_v16, %s5866_s25 }
 0x6ce   : > { %v5690_v8 = vpop.eup %5689 }
 0x6cf   : > { %v5692_v41 = vpop.eup %5691  ;;  %5133 = vmatpush3.bf16.xpose.msra.mxu1 %v2466_v30  ;;  %2929 = vrot.lane.b32.xlu1 %v6262_v21, %s5866_s25  ;;  %v2222_v47 = vmul.f32 %v5690_v8, %v6687_v53 }
 0x6d0   : > { %v5694_v24 = vpop.eup %5693  ;;  %2432 = vrot.lane.b32.xlu0 %v6168_v57, %s5866_s25  ;;  %v2224_v0 = vmul.f32 %v5692_v41, %v6682_v13 }
 0x6d1   : > { %v2223_v61 = vmul.f32 %v5694_v24, %v6693_v40 }
 0x6d2   : > { %v5696_v34 = vpop.eup %5695 }
 0x6d3   : > { %3024 = vrot.lane.b32.xlu1 %v6142_v37, %s5867_s26  ;;  %v2236_v39 = vpack.c.bf16 %v2223_v61, %v2222_v47  ;;  %v2225_v1 = vmul.f32 %v5696_v34, %v6689_v2 }
 0x6d4   : > { %2537 = vrot.lane.b32.xlu0 %v6226_v44, %s5866_s25 }
 0x6d5   : > { %5106 = vmatprep.mubr.msk.bf16.mxu1 %vm1477_vm1, %v2236_v39  ;;  %v2237_v55 = vpack.c.bf16 %v2225_v1, %v2224_v0 }
 0x6d7   : > { %2931 = vrot.lane.b32.xlu1 %v6273_v33, %s5866_s25  ;;  %5107 = vmatmul.mubr.msk.bf16.gmra.mrb[60].mxu1 %vm1477_vm1, %v2237_v55 }
 0x6d8   : > { %2838 = vrot.lane.b32.xlu0 %v6243_v60, %s5866_s25 }
 0x6db   : > { %3026 = vrot.lane.b32.xlu1 %v6140_v36, %s5867_s26  ;;  %v2186_v36 = vpop.xlane.xlu1 %2185 }
 0x6dc   : > { %2842 = vrot.lane.b32.xlu0 %v6254_v6, %s5866_s25 }
 0x6df   : > { %3129 = vrot.lane.b32.xlu1 %v6196_v18, %s5867_s26  ;;  %v2180_v37 = vpop.xlane.xlu1 %2179 }
 0x6e0   : > { %2927 = vrot.lane.b32.xlu0 %v6265_v22, %s5866_s25 }
 0x6e3   : > { %3030 = vrot.lane.b32.xlu1 %v6170_v58, %s5867_s26 }
 0x6e4   : > { %2933 = vrot.lane.b32.xlu0 %v6270_v31, %s5866_s25 }
 0x6e7   : > { %3131 = vrot.lane.b32.xlu1 %v6192_v15, %s5867_s26 }
 0x6e8   : > { %3028 = vrot.lane.b32.xlu0 %v6172_v59, %s5867_s26 }
 0x6fe   : > { %v2189_v13 = vpop.xlane.xlu1 %2188 }
 0x6ff   : > { %5697 = vrcp.f32 %v2189_v13 }
 0x700   : > { %5699 = vrcp.f32 %v2180_v37 }
 0x701   : > { %5701 = vrcp.f32 %v2186_v36 }
 0x702   : > { %v2183_v18 = vpop.xlane.xlu0 %2182  ;;  %v2431_v2 = vpop.permute.xlu1 %2430 }
 0x703   : > { %5703 = vrcp.f32 %v2183_v18 }
 0x706   : > { %v2429_v53 = vpop.permute.xlu0 %2428 }
 0x707   : > { %5134 = vmatprep.mubr.msk.bf16.mxu1 %vm1282_vm0, %v2429_v53 }
 0x708   : > { %5135 = vmatmul.mubr.msk.bf16.vlgmr.msra.gmra.mrb[64].mxu1 %vm1282_vm0, %v2431_v2 }
 0x709   : > { %v5698_v58 = vpop.eup %5697 }
 0x70a   : > { %v5700_v40 = vpop.eup %5699  ;;  %v2229_v59 = vmul.f32 %v5698_v58, %v6711_v23 }
 0x70b   : > { %v5702_v15 = vpop.eup %5701  ;;  %v2226_v52 = vmul.f32 %v5700_v40, %v6703_v49  ;;  %v2565_v49 = vsel %vm1282_vm0, %v6729_v4, 0 }
 0x70c   : > { %v2228_v25 = vmul.f32 %v5702_v15, %v6699_v17 }
 0x70d   : > { %v5704_v20 = vpop.eup %5703 }
 0x70e   : > { %v2227_v7 = vmul.f32 %v5704_v20, %v6715_v63  ;;  %v2239_v27 = vpack.c.bf16 %v2229_v59, %v2228_v25 }
 0x710   : > { %v2238_v19 = vpack.c.bf16 %v2227_v7, %v2226_v52 }
 0x712   : > { %5118 = vmatprep.mubr.msk.bf16.mxu0 %vm1477_vm1, %v2238_v19 }
 0x713   : > { %5119 = vmatmul.mubr.msk.bf16.vlgmr.msra.gmra.mrb[88].mxu0 %vm1477_vm1, %v2239_v27 }
 0x714   : > { %5143 = vmatpush3.bf16.xpose.msra.mxu0 %v2562_v3 }
 0x715   : > { %5371 = vmatprep.subr.msk.bf16.mxu0 %vm1282_vm0, %v6729_v4 }
 0x71c   : > { %5145 = vmatpush3.bf16.xpose.msra.mxu0 %v2565_v49 }
 0x733   : > { %v2195_v23 = vpop.xlane.xlu1 %2194 }
 0x734   : > { %5705 = vrcp.f32 %v2195_v23 }
 0x737   : > { %v2198_v63 = vpop.xlane.xlu0 %2197  ;;  %v2548_v17 = vpop.permute.xlu1 %2547 }
 0x738   : > { %v2571_v13 = vsel %vm1282_vm0, %v2548_v17, 0 }
 0x73b   : > { %v2192_v46 = vpop.xlane.xlu0 %2191  ;;  %v2536_v50 = vpop.permute.xlu1 %2535 }
 0x73c   : > { %5707 = vrcp.f32 %v2192_v46 }
 0x73d   : > { %5709 = vrcp.f32 %v2198_v63 }
 0x73e   : > { %v5706_v8 = vpop.eup %5705 }
 0x73f   : > { %v2201_v11 = vpop.xlane.xlu0 %2200  ;;  %v2435_v51 = vpop.permute.xlu1 %2434  ;;  %v2231_v61 = vmul.f32 %v5706_v8, %v6731_v28 }
 0x740   : > { %5711 = vrcp.f32 %v2201_v11 }
 0x743   : > { %v2546_v10 = vpop.permute.xlu0 %2545  ;;  %v2540_v26 = vpop.permute.xlu1 %2539 }
 0x744   : > { %5372 = vmatprep.subr.msk.bf16.mxu0 %vm1282_vm0, %v2546_v10  ;;  %v2568_v30 = vsel %vm1282_vm0, %v2546_v10, 0 }
 0x745   : > { %5147 = vmatpush3.bf16.xpose.msra.mxu0 %v2568_v30 }
 0x746   : > { %v5708_v4 = vpop.eup %5707  ;;  %5373 = vmatprep.subr.msk.bf16.mxu0 %vm1282_vm0, %v2548_v17 }
 0x747   : > { %v2534_v41 = vpop.permute.xlu0 %2533  ;;  %v2841_v24 = vpop.permute.xlu1 %2840  ;;  %v2230_v47 = vmul.f32 %v5708_v4, %v6739_v29 }
 0x748   : > { %v5710_v34 = vpop.eup %5709 }
 0x749   : > { %v2240_v39 = vpack.c.bf16 %v2231_v61, %v2230_v47  ;;  %v2232_v36 = vmul.f32 %v5710_v34, %v6735_v62 }
 0x74a   : > { %v5712_v0 = vpop.eup %5711 }
 0x74b   : > { %v2433_v1 = vpop.permute.xlu0 %2432  ;;  %5122 = vmatprep.mubr.msk.bf16.mxu0 %vm1477_vm1, %v2240_v39  ;;  %v2845_v55 = vpop.permute.xlu1 %2844  ;;  %v2233_v37 = vmul.f32 %v5712_v0, %v6741_v48 }
 0x74c   : > { %5138 = vmatprep.mubr.msk.bf16.mxu1 %vm1282_vm0, %v2433_v1 }
 0x74d   : > { %5139 = vmatmul.mubr.msk.bf16.gmra.mrb[68].mxu1 %vm1282_vm0, %v2435_v51  ;;  %5149 = vmatpush3.bf16.xpose.msra.mxu0 %v2571_v13  ;;  %v2241_v29 = vpack.c.bf16 %v2233_v37, %v2232_v36 }
 0x74f   : > { %v2538_v28 = vpop.permute.xlu0 %2537  ;;  %5123 = vmatmul.mubr.msk.bf16.gmra.mrb[92].mxu0 %vm1477_vm1, %v2241_v29  ;;  %v2930_v18 = vpop.permute.xlu1 %2929 }
 0x750   : > { %5150 = vmatprep.mubr.msk.bf16.mxu0 %vm1282_vm0, %v2534_v41 }
 0x753   : > { %v2839_v53 = vpop.permute.xlu0 %2838  ;;  %v6844_v62 = vpop.permute.xlu1 %3024 }
 0x754   : > { %5158 = vmatprep.subr.bf16.mxu1 %v2839_v53 }
 0x755   : > { %5159 = vmatpush3.bf16.msra.mxu1 %v2839_v53 }
 0x756   : > { %5160 = vmatprep.subr.bf16.mxu1 %v2841_v24 }
 0x757   : > { %v2843_v48 = vpop.permute.xlu0 %2842  ;;  %5151 = vmatmul.mubr.msk.bf16.vlgmr.msra.gmra.mrb[96].mxu0 %vm1282_vm0, %v2536_v50  ;;  %v2932_v58 = vpop.permute.xlu1 %2931 }
 0x758   : > { %5154 = vmatprep.mubr.msk.bf16.mxu0 %vm1282_vm0, %v2538_v28 }
 0x759   : > { %5161 = vmatpush3.bf16.msra.mxu1 %v2841_v24 }
 0x75a   : > { %5162 = vmatprep.subr.bf16.mxu1 %v2843_v48 }
 0x75b   : > { %v2928_v2 = vpop.permute.xlu0 %2927  ;;  %v6851_v40 = vpop.permute.xlu1 %3026 }
 0x75c   : > { %5174 = vmatprep.subr.bf16.mxu0 %v2928_v2 }
 0x75d   : > { %5163 = vmatpush3.bf16.msra.mxu1 %v2843_v48  ;;  %5175 = vmatpush3.bf16.msra.mxu0 %v2928_v2 }
 0x75e   : > { %5164 = vmatprep.subr.bf16.mxu1 %v2845_v55  ;;  %5176 = vmatprep.subr.bf16.mxu0 %v2930_v18 }
 0x75f   : > { %5155 = vmatmul.mubr.msk.bf16.gmra.mrb[100].mxu0 %vm1282_vm0, %v2540_v26  ;;  %v2934_v15 = vpop.permute.xlu0 %2933  ;;  %v6853_v20 = vpop.permute.xlu1 %3129 }
 0x761   : > { %5165 = vmatpush3.bf16.msra.mxu1 %v2845_v55  ;;  %5177 = vmatpush3.bf16.msra.mxu0 %v2930_v18 }
 0x762   : > { %5178 = vmatprep.subr.bf16.mxu0 %v2932_v58  ;;  %5374 = vmatprep.subr.msk.bf16.mxu1 %vm1282_vm0, %v6844_v62 }
 0x765   : > { %5179 = vmatpush3.bf16.msra.mxu0 %v2932_v58 }
 0x766   : > { %5180 = vmatprep.subr.bf16.mxu0 %v2934_v15 }
 0x769   : > { %5181 = vmatpush3.bf16.msra.mxu0 %v2934_v15 }
 0x76a   : > { %5378 = vmatprep.subr.msk.bf16.mxu0 %vm1282_vm0, %v6853_v20 }
 0x789   : > { %v6857_v59 = vpop.f32.mrb[56].mxu1 }
 0x78a   : > { %v6859_v52 = vpop.f32.mrb[57].mxu1 }
 0x78b   : > { %v6861_v7 = vpop.f32.mrb[58].mxu1 }
 0x78c   : > { %v6865_v19 = vpop.f32.mrb[59].mxu1 }
 0x7aa   : > { %v6869_v3 = vpop.f32.mrb[60].mxu1 }
 0x7ab   : > { %v6871_v49 = vpop.f32.mrb[61].mxu1 }
 0x7ac   : > { %v6873_v23 = vpop.f32.mrb[62].mxu1 }
 0x7ad   : > { %v6877_v17 = vpop.f32.mrb[63].mxu1 }
 0x7db   : > { %v5136_v50 = vpop.f32.mrb[64].mxu1 }
 0x7dc   : > { %v6881_v11 = vmul.f32 0.17677669, %v5136_v50  ;;  %v2502_v51 = vpop.f32.mrb[65].mxu1 }
 0x7dd   : > { %v5137_v10 = vpop.f32.mrb[66].mxu1  ;;  %v6883_v26 = vmul.f32 0.17677669, %v2502_v51 }
 0x7de   : > { %v2505_v8 = vpop.f32.mrb[67].mxu1  ;;  %v2660_v30 = vsel %vm1477_vm1, %v6881_v11, -inf  ;;  %v6891_v24 = vmul.f32 0.17677669, %v5137_v10 }
 0x7df   : > { %v6887_v4 = vmul.f32 0.17677669, %v2505_v8  ;;  %2661 = vmax.xlane.f32.xlu0 %v2660_v30  ;;  %v2654_v47 = vsel %vm1477_vm1, %v6883_v26, -inf }
 0x7e0   : > { %v2663_v34 = vsel %vm1477_vm1, %v6891_v24, -inf }
 0x7e1   : > { %v2657_v41 = vsel %vm1477_vm1, %v6887_v4, -inf }
 0x7e2   : > { %2658 = vmax.xlane.f32.xlu1 %v2657_v41 }
 0x7e3   : > { %2655 = vmax.xlane.f32.xlu0 %v2654_v47 }
 0x7e6   : > { %v6895_v61 = vpop.f32.mrb[88].mxu0 }
 0x7e7   : > { %v6899_v39 = vpop.f32.mrb[89].mxu0  ;;  %2664 = vmax.xlane.f32.xlu0 %v2663_v34 }
 0x7e8   : > { %v6901_v0 = vpop.f32.mrb[90].mxu0 }
 0x7e9   : > { %v6905_v55 = vpop.f32.mrb[91].mxu0 }
 0x820   : > { %v5140_v37 = vpop.f32.mrb[68].mxu1 }
 0x821   : > { %v6909_v13 = vmul.f32 0.17677669, %v5140_v37  ;;  %v2518_v29 = vpop.f32.mrb[69].mxu1 }
 0x822   : > { %v6911_v28 = vmul.f32 0.17677669, %v2518_v29  ;;  %v6913_v18 = vpop.f32.mrb[92].mxu0  ;;  %v5141_v53 = vpop.f32.mrb[70].mxu1 }
 0x823   : > { %7748 = vst [vmem:[#allocation18_spill] sm:$0xff] %v6913_v18  ;;  %v6915_v48 = vmul.f32 0.17677669, %v5141_v53  ;;  %v6917_v2 = vpop.f32.mrb[93].mxu0  ;;  %v2521_v58 = vpop.f32.mrb[71].mxu1  ;;  %v2672_v15 = vsel %vm1477_vm1, %v6909_v13, -inf }
 0x824   : > { %7749 = vst [vmem:[#allocation19_spill] sm:$0xff] %v6917_v2  ;;  %v6921_v50 = vpop.f32.mrb[94].mxu0  ;;  %2673 = vmax.xlane.f32.xlu0 %v2672_v15  ;;  %v6923_v51 = vmul.f32 0.17677669, %v2521_v58  ;;  %v2666_v47 = vsel %vm1477_vm1, %v6911_v28, -inf }
 0x825   : > { %v6927_v8 = vpop.f32.mrb[95].mxu0  ;;  %v2675_v30 = vsel %vm1477_vm1, %v6915_v48, -inf }
 0x826   : > { %7750 = vst [vmem:[#allocation20_spill] sm:$0xff] %v6927_v8  ;;  %2676 = vmax.xlane.f32.xlu1 %v2675_v30  ;;  %v2669_v34 = vsel %vm1477_vm1, %v6923_v51, -inf }
 0x828   : > { %2667 = vmax.xlane.f32.xlu0 %v2666_v47 }
 0x82a   : > { %v5152_v37 = vpop.f32.mrb[96].mxu0  ;;  %2670 = vmax.xlane.f32.xlu1 %v2669_v34 }
 0x82b   : > { %v6937_v29 = vmul.f32 0.17677669, %v5152_v37  ;;  %v2607_v53 = vpop.f32.mrb[97].mxu0 }
 0x82c   : > { %v5153_v58 = vpop.f32.mrb[98].mxu0  ;;  %v6939_v15 = vmul.f32 0.17677669, %v2607_v53 }
 0x82d   : > { %v6941_v10 = vmul.f32 0.17677669, %v5153_v58  ;;  %v2610_v36 = vpop.f32.mrb[99].mxu0  ;;  %v2684_v30 = vsel %vm1477_vm1, %v6937_v29, -inf }
 0x82e   : > { %2685 = vmax.xlane.f32.xlu0 %v2684_v30  ;;  %v6945_v41 = vmul.f32 0.17677669, %v2610_v36  ;;  %v2678_v34 = vsel %vm1477_vm1, %v6939_v15, -inf }
 0x82f   : > { %v2687_v47 = vsel %vm1477_vm1, %v6941_v10, -inf }
 0x830   : > { %2688 = vmax.xlane.f32.xlu1 %v2687_v47  ;;  %v2681_v1 = vsel %vm1477_vm1, %v6945_v41, -inf }
 0x832   : > { %2679 = vmax.xlane.f32.xlu0 %v2678_v34  ;;  %v5156_v37 = vpop.f32.mrb[100].mxu0 }
 0x833   : > { %v6951_v53 = vmul.f32 0.17677669, %v5156_v37  ;;  %v2623_v58 = vpop.f32.mrb[101].mxu0 }
 0x834   : > { %2682 = vmax.xlane.f32.xlu1 %v2681_v1  ;;  %v5157_v46 = vpop.f32.mrb[102].mxu0  ;;  %v6955_v30 = vmul.f32 0.17677669, %v2623_v58 }
 0x835   : > { %v6957_v36 = vmul.f32 0.17677669, %v5157_v46  ;;  %v2626_v63 = vpop.f32.mrb[103].mxu0  ;;  %v2696_v47 = vsel %vm1477_vm1, %v6951_v53, -inf  ;;  %v6975_v46 = vpop.permute.xlu0 %3028 }
 0x836   : > { %2697 = vmax.xlane.f32.xlu0 %v2696_v47  ;;  %v6961_v27 = vmul.f32 0.17677669, %v2626_v63  ;;  %v2690_v37 = vsel %vm1477_vm1, %v6955_v30, -inf  ;;  %v6973_v63 = vpop.permute.xlu1 %3030 }
 0x837   : > { %v2699_v34 = vsel %vm1477_vm1, %v6957_v36, -inf }
 0x838   : > { %2700 = vmax.xlane.f32.xlu1 %v2699_v34  ;;  %v2693_v1 = vsel %vm1477_vm1, %v6961_v27, -inf }
 0x83a   : > { %2691 = vmax.xlane.f32.xlu0 %v2690_v37  ;;  %v6977_v58 = vpop.permute.xlu1 %3131 }
 0x83c   : > { %2694 = vmax.xlane.f32.xlu1 %v2693_v1 }
 0x84d   : > { %3018 = vrot.lane.b32.xlu1 %v6134_v32, %s5867_s26 }
 0x850   : > { %3016 = vrot.lane.b32.xlu0 %v6138_v35, %s5867_s26 }
 0x86c   : > { %v2662_v47 = vpop.xlane.xlu0 %2661 }
 0x86d   : > { %v2704_v34 = vsub.f32 %v6881_v11, %v2662_v47 }
 0x86f   : > { %v2722_v37 = vmul.f32 1.442695, %v2704_v34  ;;  %v2659_v25 = vpop.xlane.xlu1 %2658 }
 0x870   : > { %v2656_v12 = vpop.xlane.xlu0 %2655  ;;  %v2703_v32 = vsub.f32 %v6887_v4, %v2659_v25 }
 0x871   : > { %5713 = vpow2.f32 %v2722_v37  ;;  %v2702_v1 = vsub.f32 %v6883_v26, %v2656_v12 }
 0x872   : > { %v2720_v2 = vmul.f32 1.442695, %v2703_v32 }
 0x873   : > { %v2718_v38 = vmul.f32 1.442695, %v2702_v1 }
 0x874   : > { %v2665_v9 = vpop.xlane.xlu0 %2664 }
 0x875   : > { %5715 = vpow2.f32 %v2718_v38  ;;  %v2705_v35 = vsub.f32 %v6891_v24, %v2665_v9 }
 0x877   : > { %v2724_v8 = vmul.f32 1.442695, %v2705_v35 }
 0x879   : > { %5717 = vpow2.f32 %v2724_v8 }
 0x87a   : > { %5719 = vpow2.f32 %v2720_v2 }
 0x87b   : > { %v6983_v18 = vpop.eup %5713 }
 0x87c   : > { %v2756_v11 = vsel %vm1477_vm1, %v6983_v18, 0.0 }
 0x87d   : > { %2757 = vadd.xlane.f32.xlu0 %v2756_v11 }
 0x87f   : > { %v6987_v47 = vpop.eup %5715 }
 0x880   : > { %v2750_v12 = vsel %vm1477_vm1, %v6987_v47, 0.0 }
 0x881   : > { %2751 = vadd.xlane.f32.xlu0 %v2750_v12 }
 0x883   : > { %v6991_v25 = vpop.eup %5717 }
 0x884   : > { %v2759_v9 = vsel %vm1477_vm1, %v6991_v25, 0.0  ;;  %v6995_v38 = vpop.eup %5719 }
 0x885   : > { %2760 = vadd.xlane.f32.xlu1 %v2759_v9  ;;  %v2753_v26 = vsel %vm1477_vm1, %v6995_v38, 0.0 }
 0x889   : > { %2754 = vadd.xlane.f32.xlu1 %v2753_v26 }
 0x8b1   : > { %v2674_v4 = vpop.xlane.xlu0 %2673 }
 0x8b2   : > { %v2708_v24 = vsub.f32 %v6909_v13, %v2674_v4 }
 0x8b3   : > { %v2677_v2 = vpop.xlane.xlu1 %2676 }
 0x8b4   : > { %v2730_v8 = vmul.f32 1.442695, %v2708_v24  ;;  %v2709_v34 = vsub.f32 %v6915_v48, %v2677_v2 }
 0x8b5   : > { %v2668_v37 = vpop.xlane.xlu0 %2667 }
 0x8b6   : > { %5721 = vpow2.f32 %v2730_v8  ;;  %v2706_v1 = vsub.f32 %v6911_v28, %v2668_v37  ;;  %v2732_v32 = vmul.f32 1.442695, %v2709_v34 }
 0x8b7   : > { %v2671_v35 = vpop.xlane.xlu1 %2670 }
 0x8b8   : > { %v2726_v11 = vmul.f32 1.442695, %v2706_v1  ;;  %v2707_v12 = vsub.f32 %v6923_v51, %v2671_v35 }
 0x8ba   : > { %5723 = vpow2.f32 %v2726_v11  ;;  %v2728_v9 = vmul.f32 1.442695, %v2707_v12 }
 0x8bb   : > { %5725 = vpow2.f32 %v2732_v32  ;;  %v2686_v26 = vpop.xlane.xlu0 %2685 }
 0x8bc   : > { %5727 = vpow2.f32 %v2728_v9  ;;  %v2712_v13 = vsub.f32 %v6937_v29, %v2686_v26 }
 0x8bd   : > { %v2689_v4 = vpop.xlane.xlu1 %2688 }
 0x8be   : > { %v2738_v24 = vmul.f32 1.442695, %v2712_v13  ;;  %v2713_v48 = vsub.f32 %v6941_v10, %v2689_v4 }
 0x8bf   : > { %v2680_v2 = vpop.xlane.xlu0 %2679 }
 0x8c0   : > { %v7005_v8 = vpop.eup %5721  ;;  %5729 = vpow2.f32 %v2738_v24  ;;  %v2710_v28 = vsub.f32 %v6939_v15, %v2680_v2  ;;  %v2740_v34 = vmul.f32 1.442695, %v2713_v48 }
 0x8c1   : > { %v2683_v37 = vpop.xlane.xlu1 %2682  ;;  %v2768_v51 = vsel %vm1477_vm1, %v7005_v8, 0.0 }
 0x8c2   : > { %v2734_v1 = vmul.f32 1.442695, %v2710_v28  ;;  %v2711_v32 = vsub.f32 %v6945_v41, %v2683_v37  ;;  %2769 = vadd.xlane.f32.xlu0 %v2768_v51 }
 0x8c3   : > { %v2698_v37 = vpop.xlane.xlu0 %2697 }
 0x8c4   : > { %v7011_v29 = vpop.eup %5723  ;;  %5731 = vpow2.f32 %v2734_v1  ;;  %v2736_v35 = vmul.f32 1.442695, %v2711_v32  ;;  %v2716_v1 = vsub.f32 %v6951_v53, %v2698_v37 }
 0x8c5   : > { %v7013_v10 = vpop.eup %5725  ;;  %5733 = vpow2.f32 %v2740_v34  ;;  %v2762_v11 = vsel %vm1477_vm1, %v7011_v29, 0.0  ;;  %v2701_v34 = vpop.xlane.xlu1 %2700 }
 0x8c6   : > { %v7017_v15 = vpop.eup %5727  ;;  %5735 = vpow2.f32 %v2736_v35  ;;  %2763 = vadd.xlane.f32.xlu0 %v2762_v11  ;;  %v2771_v41 = vsel %vm1477_vm1, %v7013_v10, 0.0  ;;  %v2746_v11 = vmul.f32 1.442695, %v2716_v1 }
 0x8c7   : > { %v2765_v12 = vsel %vm1477_vm1, %v7017_v15, 0.0  ;;  %v2692_v32 = vpop.xlane.xlu0 %2691 }
 0x8c8   : > { %2766 = vadd.xlane.f32.xlu1 %v2765_v12  ;;  %v2714_v12 = vsub.f32 %v6955_v30, %v2692_v32  ;;  %5737 = vpow2.f32 %v2746_v11 }
 0x8c9   : > { %v2695_v51 = vpop.xlane.xlu1 %2694 }
 0x8ca   : > { %v7023_v9 = vpop.eup %5729  ;;  %2772 = vadd.xlane.f32.xlu0 %v2771_v41  ;;  %v2715_v35 = vsub.f32 %v6961_v27, %v2695_v51 }
 0x8cb   : > { %v2780_v26 = vsel %vm1477_vm1, %v7023_v9, 0.0  ;;  %v7055_v30 = vpop.permute.xlu0 %3016 }
 0x8cc   : > { %2781 = vadd.xlane.f32.xlu1 %v2780_v26  ;;  %v2744_v41 = vmul.f32 1.442695, %v2715_v35  ;;  %v2717_v26 = vsub.f32 %v6957_v36, %v2701_v34 }
 0x8cd   : > { %v7063_v51 = vpop.permute.xlu1 %3018 }
 0x8ce   : > { %v7027_v13 = vpop.eup %5731  ;;  %5739 = vpow2.f32 %v2744_v41 }
 0x8cf   : > { %v7029_v4 = vpop.eup %5733  ;;  %v2774_v24 = vsel %vm1477_vm1, %v7027_v13, 0.0 }
 0x8d0   : > { %v7033_v48 = vpop.eup %5735  ;;  %2775 = vadd.xlane.f32.xlu1 %v2774_v24  ;;  %v2783_v28 = vsel %vm1477_vm1, %v7029_v4, 0.0  ;;  %v2742_v24 = vmul.f32 1.442695, %v2714_v12 }
 0x8d1   : > { %v2777_v2 = vsel %vm1477_vm1, %v7033_v48, 0.0 }
 0x8d2   : > { %2778 = vadd.xlane.f32.xlu0 %v2777_v2  ;;  %5741 = vpow2.f32 %v2742_v24 }
 0x8d4   : > { %2784 = vadd.xlane.f32.xlu1 %v2783_v28 }
 0x8e5   : > { %3020 = vrot.lane.b32.xlu1 %v6168_v57, %s5867_s26  ;;  %v2748_v57 = vmul.f32 1.442695, %v2717_v26 }
 0x8e7   : > { %5743 = vpow2.f32 %v2748_v57 }
 0x8e8   : > { %3133 = vrot.lane.b32.xlu0 %v6228_v45, %s5867_s26  ;;  %v7047_v45 = vpop.eup %5737 }
 0x8e9   : > { %v7049_v2 = vpop.eup %5739  ;;  %v2792_v53 = vsel %vm1477_vm1, %v7047_v45, 0.0 }
 0x8ea   : > { %v7053_v27 = vpop.eup %5741  ;;  %v2789_v36 = vsel %vm1477_vm1, %v7049_v2, 0.0 }
 0x8eb   : > { %v2786_v28 = vsel %vm1477_vm1, %v7053_v27, 0.0 }
 0x8f1   : > { %v7061_v34 = vpop.eup %5743 }
 0x8f2   : > { %v2795_v1 = vsel %vm1477_vm1, %v7061_v34, 0.0 }
 0x907   : > { %2793 = vadd.xlane.f32.xlu0 %v2792_v53 }
 0x909   : > { %2790 = vadd.xlane.f32.xlu1 %v2789_v36 }
 0x90a   : > { %v2758_v37 = vpop.xlane.xlu0 %2757 }
 0x90b   : > { %2787 = vadd.xlane.f32.xlu0 %v2786_v28 }
 0x90e   : > { %v2752_v32 = vpop.xlane.xlu0 %2751 }
 0x90f   : > { %2796 = vadd.xlane.f32.xlu0 %v2795_v1 }
 0x912   : > { %v2761_v35 = vpop.xlane.xlu1 %2760 }
 0x913   : > { %5745 = vrcp.f32 %v2761_v35 }
 0x914   : > { %5747 = vrcp.f32 %v2752_v32 }
 0x915   : > { %5749 = vrcp.f32 %v2758_v37 }
 0x916   : > { %v2755_v11 = vpop.xlane.xlu1 %2754 }
 0x917   : > { %5751 = vrcp.f32 %v2755_v11 }
 0x91a   : > { %3135 = vrot.lane.b32.xlu1 %v6224_v43, %s5867_s26 }
 0x91d   : > { %v5746_v12 = vpop.eup %5745 }
 0x91e   : > { %3123 = vrot.lane.b32.xlu1 %v6190_v14, %s5867_s26  ;;  %v5748_v41 = vpop.eup %5747  ;;  %v2817_v57 = vmul.f32 %v5746_v12, %v6991_v25  ;;  %v3045_v14 = vsel %vm1282_vm0, %v6844_v62, 0 }
 0x91f   : > { %v5750_v26 = vpop.eup %5749  ;;  %v2814_v53 = vmul.f32 %v5748_v41, %v6987_v47 }
 0x920   : > { %v2816_v28 = vmul.f32 %v5750_v26, %v6983_v18 }
 0x921   : > { %v5752_v24 = vpop.eup %5751 }
 0x922   : > { %3127 = vrot.lane.b32.xlu1 %v6222_v42, %s5867_s26  ;;  %v2815_v36 = vmul.f32 %v5752_v24, %v6995_v38  ;;  %v2831_v43 = vpack.c.bf16 %v2817_v57, %v2816_v28  ;;  %v3051_v42 = vsel %vm1282_vm0, %v6975_v46, 0 }
 0x924   : > { %v2830_v37 = vpack.c.bf16 %v2815_v36, %v2814_v53 }
 0x925   : > { %3022 = vrot.lane.b32.xlu0 %v6164_v54, %s5867_s26  ;;  %v3048_v54 = vsel %vm1282_vm0, %v6851_v40, 0 }
 0x926   : > { %3428 = vrot.lane.b32.xlu1 %v6241_v56, %s5867_s26  ;;  %5166 = vmatprep.mubr.msk.bf16.mxu1 %vm1477_vm1, %v2830_v37 }
 0x927   : > { %5167 = vmatmul.mubr.msk.bf16.vlgmr.msra.gmra.mrb[72].mxu1 %vm1477_vm1, %v2831_v43 }
 0x928   : > { %5191 = vmatpush3.bf16.xpose.msra.mxu1 %v3045_v14 }
 0x929   : > { %5375 = vmatprep.subr.msk.bf16.mxu1 %vm1282_vm0, %v6851_v40  ;;  %3121 = vrot.lane.b32.xlu0 %v6194_v16, %s5867_s26  ;;  %v3054_v16 = vsel %vm1282_vm0, %v6973_v63, 0 }
 0x92d   : > { %3125 = vrot.lane.b32.xlu0 %v6226_v44, %s5867_s26 }
 0x930   : > { %5193 = vmatpush3.bf16.xpose.msra.mxu1 %v3048_v54 }
 0x931   : > { %5376 = vmatprep.subr.msk.bf16.mxu1 %vm1282_vm0, %v6975_v46  ;;  %3426 = vrot.lane.b32.xlu0 %v6243_v60, %s5867_s26 }
 0x935   : > { %3430 = vrot.lane.b32.xlu0 %v6254_v6, %s5867_s26 }
 0x938   : > { %5195 = vmatpush3.bf16.xpose.msra.mxu1 %v3051_v42 }
 0x939   : > { %5377 = vmatprep.subr.msk.bf16.mxu1 %vm1282_vm0, %v6973_v63 }
 0x940   : > { %5197 = vmatpush3.bf16.xpose.msra.mxu1 %v3054_v16 }
 0x94f   : > { %v2770_v44 = vpop.xlane.xlu0 %2769 }
 0x953   : > { %v2764_v56 = vpop.xlane.xlu0 %2763 }
 0x954   : > { %5753 = vrcp.f32 %v2764_v56 }
 0x955   : > { %5755 = vrcp.f32 %v2770_v44  ;;  %v2767_v62 = vpop.xlane.xlu1 %2766 }
 0x956   : > { %5757 = vrcp.f32 %v2767_v62 }
 0x957   : > { %v2773_v60 = vpop.xlane.xlu0 %2772 }
 0x958   : > { %5759 = vrcp.f32 %v2773_v60 }
 0x959   : > { %v2782_v6 = vpop.xlane.xlu1 %2781 }
 0x95d   : > { %v2776_v40 = vpop.xlane.xlu1 %2775 }
 0x95e   : > { %v5754_v18 = vpop.eup %5753  ;;  %5761 = vrcp.f32 %v2776_v40 }
 0x95f   : > { %v5756_v46 = vpop.eup %5755  ;;  %5763 = vrcp.f32 %v2782_v6  ;;  %v2779_v47 = vpop.xlane.xlu0 %2778  ;;  %v2818_v63 = vmul.f32 %v5754_v18, %v7011_v29 }
 0x960   : > { %v5758_v25 = vpop.eup %5757  ;;  %5765 = vrcp.f32 %v2779_v47  ;;  %v2820_v11 = vmul.f32 %v5756_v46, %v7005_v8 }
 0x961   : > { %v2785_v38 = vpop.xlane.xlu1 %2784  ;;  %v2819_v1 = vmul.f32 %v5758_v25, %v7017_v15 }
 0x962   : > { %v5760_v32 = vpop.eup %5759  ;;  %5767 = vrcp.f32 %v2785_v38 }
 0x963   : > { %v2832_v35 = vpack.c.bf16 %v2819_v1, %v2818_v63  ;;  %v2821_v12 = vmul.f32 %v5760_v32, %v7013_v10 }
 0x965   : > { %5170 = vmatprep.mubr.msk.bf16.mxu1 %vm1477_vm1, %v2832_v35  ;;  %v2833_v41 = vpack.c.bf16 %v2821_v12, %v2820_v11  ;;  %v3021_v37 = vpop.permute.xlu1 %3020 }
 0x967   : > { %5171 = vmatmul.mubr.msk.bf16.gmra.mrb[76].mxu1 %vm1477_vm1, %v2833_v41 }
 0x968   : > { %v5762_v26 = vpop.eup %5761  ;;  %5198 = vmatprep.mubr.msk.bf16.mxu1 %vm1282_vm0, %v7055_v30 }
 0x969   : > { %v5764_v24 = vpop.eup %5763  ;;  %v2822_v15 = vmul.f32 %v5762_v26, %v7027_v13  ;;  %v3150_v13 = vsel %vm1282_vm0, %v6853_v20, 0 }
 0x96a   : > { %v5766_v29 = vpop.eup %5765  ;;  %v2824_v8 = vmul.f32 %v5764_v24, %v7023_v9  ;;  %v3153_v9 = vsel %vm1282_vm0, %v6977_v58, 0 }
 0x96b   : > { %v2823_v57 = vmul.f32 %v5766_v29, %v7033_v48 }
 0x96c   : > { %v5768_v53 = vpop.eup %5767 }
 0x96d   : > { %v2825_v10 = vmul.f32 %v5768_v53, %v7029_v4  ;;  %v2834_v36 = vpack.c.bf16 %v2823_v57, %v2822_v15  ;;  %v3134_v4 = vpop.permute.xlu0 %3133 }
 0x96e   : > { %v3156_v48 = vsel %vm1282_vm0, %v3134_v4, 0 }
 0x96f   : > { %v2835_v28 = vpack.c.bf16 %v2825_v10, %v2824_v8  ;;  %5182 = vmatprep.mubr.msk.bf16.mxu0 %vm1477_vm1, %v2834_v36  ;;  %5199 = vmatmul.mubr.msk.bf16.vlgmr.msra.gmra.mrb[80].mxu1 %vm1282_vm0, %v7063_v51 }
 0x970   : > { %5202 = vmatprep.mubr.msk.bf16.mxu1 %vm1282_vm0, %v3021_v37 }
 0x971   : > { %5183 = vmatmul.mubr.msk.bf16.vlgmr.msra.gmra.mrb[104].mxu0 %vm1477_vm1, %v2835_v28 }
 0x972   : > { %5207 = vmatpush3.bf16.xpose.msra.mxu0 %v3150_v13 }
 0x973   : > { %5379 = vmatprep.subr.msk.bf16.mxu0 %vm1282_vm0, %v6977_v58 }
 0x97a   : > { %5209 = vmatpush3.bf16.xpose.msra.mxu0 %v3153_v9 }
 0x97b   : > { %5380 = vmatprep.subr.msk.bf16.mxu0 %vm1282_vm0, %v3134_v4 }
 0x982   : > { %5211 = vmatpush3.bf16.xpose.msra.mxu0 %v3156_v48 }
 0x994   : > { %v2794_v30 = vpop.xlane.xlu0 %2793 }
 0x996   : > { %v2791_v51 = vpop.xlane.xlu1 %2790 }
 0x997   : > { %5769 = vrcp.f32 %v2791_v51 }
 0x998   : > { %v2788_v43 = vpop.xlane.xlu0 %2787 }
 0x999   : > { %5771 = vrcp.f32 %v2788_v43 }
 0x99a   : > { %v3136_v20 = vpop.permute.xlu1 %3135  ;;  %5773 = vrcp.f32 %v2794_v30 }
 0x99b   : > { %v3159_v14 = vsel %vm1282_vm0, %v3136_v20, 0  ;;  %5381 = vmatprep.subr.msk.bf16.mxu0 %vm1282_vm0, %v3136_v20 }
 0x99c   : > { %v2797_v54 = vpop.xlane.xlu0 %2796  ;;  %5213 = vmatpush3.bf16.xpose.msra.mxu0 %v3159_v14 }
 0x99d   : > { %5775 = vrcp.f32 %v2797_v54 }
 0x99e   : > { %v3124_v16 = vpop.permute.xlu1 %3123 }
 0x9a0   : > { %v3023_v58 = vpop.permute.xlu0 %3022 }
 0x9a1   : > { %v5770_v42 = vpop.eup %5769  ;;  %5203 = vmatmul.mubr.msk.bf16.gmra.mrb[84].mxu1 %vm1282_vm0, %v3023_v58 }
 0x9a2   : > { %v2827_v60 = vmul.f32 %v5770_v42, %v7049_v2  ;;  %v3128_v46 = vpop.permute.xlu1 %3127 }
 0x9a3   : > { %v5772_v44 = vpop.eup %5771 }
 0x9a4   : > { %v3122_v56 = vpop.permute.xlu0 %3121  ;;  %v2826_v62 = vmul.f32 %v5772_v44, %v7053_v27  ;;  %v5774_v6 = vpop.eup %5773 }
 0x9a5   : > { %v2828_v25 = vmul.f32 %v5774_v6, %v7047_v45 }
 0x9a6   : > { %v2836_v40 = vpack.c.bf16 %v2827_v60, %v2826_v62  ;;  %v3429_v27 = vpop.permute.xlu1 %3428 }
 0x9a7   : > { %v5776_v18 = vpop.eup %5775 }
 0x9a8   : > { %v3126_v47 = vpop.permute.xlu0 %3125  ;;  %5186 = vmatprep.mubr.msk.bf16.mxu0 %vm1477_vm1, %v2836_v40  ;;  %v2829_v38 = vmul.f32 %v5776_v18, %v7061_v34 }
 0x9aa   : > { %v2837_v63 = vpack.c.bf16 %v2829_v38, %v2828_v25 }
 0x9ac   : > { %v3427_v1 = vpop.permute.xlu0 %3426  ;;  %5187 = vmatmul.mubr.msk.bf16.gmra.mrb[108].mxu0 %vm1477_vm1, %v2837_v63 }
 0x9ad   : > { %5214 = vmatprep.mubr.msk.bf16.mxu0 %vm1282_vm0, %v3122_v56  ;;  %5222 = vmatprep.subr.bf16.mxu1 %v3427_v1 }
 0x9ae   : > { %5223 = vmatpush3.bf16.msra.mxu1 %v3427_v1 }
 0x9af   : > { %5224 = vmatprep.subr.bf16.mxu1 %v3429_v27 }
 0x9b0   : > { %v3431_v2 = vpop.permute.xlu0 %3430 }
 0x9b2   : > { %5225 = vmatpush3.bf16.msra.mxu1 %v3429_v27 }
 0x9b3   : > { %5226 = vmatprep.subr.bf16.mxu1 %v3431_v2 }
 0x9b4   : > { %5215 = vmatmul.mubr.msk.bf16.vlgmr.msra.gmra.mrb[112].mxu0 %vm1282_vm0, %v3124_v16 }
 0x9b5   : > { %5218 = vmatprep.mubr.msk.bf16.mxu0 %vm1282_vm0, %v3126_v47 }
 0x9b6   : > { %5227 = vmatpush3.bf16.msra.mxu1 %v3431_v2 }
 0x9bc   : > { %5219 = vmatmul.mubr.msk.bf16.gmra.mrb[116].mxu0 %vm1282_vm0, %v3128_v46 }
 0x9fa   : > { %v7143_v45 = vpop.f32.mrb[72].mxu1 }
 0x9fb   : > { %v7145_v34 = vpop.f32.mrb[73].mxu1 }
 0x9fc   : > { %v7147_v32 = vpop.f32.mrb[74].mxu1 }
 0x9fd   : > { %v5408_v35 = vpack.i.bf16 %v7147_v32, %v7143_v45  ;;  %v7151_v11 = vpop.f32.mrb[75].mxu1 }
 0x9fe   : > { %v5403_v12 = vpack.i.bf16 %v7151_v11, %v7145_v34 }
 0xa3a   : > { %v7155_v41 = vpop.f32.mrb[76].mxu1 }
 0xa3b   : > { %v7157_v26 = vpop.f32.mrb[77].mxu1 }
 0xa3c   : > { %v7159_v24 = vpop.f32.mrb[78].mxu1 }
 0xa3d   : > { %v5428_v29 = vpack.i.bf16 %v7159_v24, %v7155_v41  ;;  %v7163_v15 = vpop.f32.mrb[79].mxu1 }
 0xa3e   : > { %v5423_v57 = vpack.i.bf16 %v7163_v15, %v7157_v26 }
 0xa42   : > { %v5200_v53 = vpop.f32.mrb[80].mxu1 }
 0xa43   : > { %v7167_v8 = vmul.f32 0.17677669, %v5200_v53  ;;  %v3090_v10 = vpop.f32.mrb[81].mxu1 }
 0xa44   : > { %v7169_v36 = vpop.f32.mrb[104].mxu0  ;;  %v5201_v28 = vpop.f32.mrb[82].mxu1  ;;  %v7171_v37 = vmul.f32 0.17677669, %v3090_v10 }
 0xa45   : > { %v7173_v13 = vpop.f32.mrb[105].mxu0  ;;  %v3093_v9 = vpop.f32.mrb[83].mxu1  ;;  %v3248_v4 = vsel %vm1477_vm1, %v7167_v8, -inf  ;;  %v7189_v54 = vmul.f32 0.17677669, %v5201_v28 }
 0xa46   : > { %v7177_v48 = vmul.f32 0.17677669, %v3093_v9  ;;  %3249 = vmax.xlane.f32.xlu0 %v3248_v4  ;;  %v7179_v30 = vpop.f32.mrb[106].mxu0  ;;  %v3242_v58 = vsel %vm1477_vm1, %v7171_v37, -inf }
 0xa47   : > { %v7183_v43 = vpop.f32.mrb[107].mxu0  ;;  %v3251_v42 = vsel %vm1477_vm1, %v7189_v54, -inf }
 0xa48   : > { %v3245_v14 = vsel %vm1477_vm1, %v7177_v48, -inf }
 0xa49   : > { %3246 = vmax.xlane.f32.xlu1 %v3245_v14 }
 0xa4a   : > { %3243 = vmax.xlane.f32.xlu0 %v3242_v58 }
 0xa4e   : > { %3252 = vmax.xlane.f32.xlu0 %v3251_v42 }
 0xa74   : > { %v5204_v16 = vpop.f32.mrb[84].mxu1 }
 0xa75   : > { %v7195_v44 = vmul.f32 0.17677669, %v5204_v16  ;;  %v3106_v56 = vpop.f32.mrb[85].mxu1 }
 0xa76   : > { %v5205_v62 = vpop.f32.mrb[86].mxu1  ;;  %v7197_v60 = vmul.f32 0.17677669, %v3106_v56 }
 0xa77   : > { %v7199_v6 = vmul.f32 0.17677669, %v5205_v62  ;;  %v3109_v40 = vpop.f32.mrb[87].mxu1  ;;  %v3260_v18 = vsel %vm1477_vm1, %v7195_v44, -inf }
 0xa78   : > { %3261 = vmax.xlane.f32.xlu0 %v3260_v18  ;;  %v7203_v46 = vmul.f32 0.17677669, %v3109_v40  ;;  %v3254_v25 = vsel %vm1477_vm1, %v7197_v60, -inf }
 0xa79   : > { %v3263_v47 = vsel %vm1477_vm1, %v7199_v6, -inf }
 0xa7a   : > { %3264 = vmax.xlane.f32.xlu1 %v3263_v47  ;;  %v3257_v38 = vsel %vm1477_vm1, %v7203_v46, -inf }
 0xa7c   : > { %3255 = vmax.xlane.f32.xlu0 %v3254_v25 }
 0xa7e   : > { %3258 = vmax.xlane.f32.xlu1 %v3257_v38 }
 0xa7f   : > { %v7211_v63 = vpop.f32.mrb[108].mxu0 }
 0xa80   : > { %v7213_v1 = vpop.f32.mrb[109].mxu0 }
 0xa81   : > { %v7215_v27 = vpop.f32.mrb[110].mxu0 }
 0xa82   : > { %v7219_v53 = vpop.f32.mrb[111].mxu0 }
 0xa87   : > { %v5216_v28 = vpop.f32.mrb[112].mxu0 }
 0xa88   : > { %v7223_v9 = vmul.f32 0.17677669, %v5216_v28  ;;  %v3195_v4 = vpop.f32.mrb[113].mxu0 }
 0xa89   : > { %v5217_v14 = vpop.f32.mrb[114].mxu0  ;;  %v7225_v58 = vmul.f32 0.17677669, %v3195_v4 }
 0xa8a   : > { %v7227_v42 = vmul.f32 0.17677669, %v5217_v14  ;;  %v3198_v16 = vpop.f32.mrb[115].mxu0  ;;  %v3272_v56 = vsel %vm1477_vm1, %v7223_v9, -inf }
 0xa8b   : > { %3273 = vmax.xlane.f32.xlu0 %v3272_v56  ;;  %v7231_v62 = vmul.f32 0.17677669, %v3198_v16  ;;  %v3266_v18 = vsel %vm1477_vm1, %v7225_v58, -inf }
 0xa8c   : > { %v3275_v40 = vsel %vm1477_vm1, %v7227_v42, -inf }
 0xa8d   : > { %3276 = vmax.xlane.f32.xlu1 %v3275_v40  ;;  %v3269_v28 = vsel %vm1477_vm1, %v7231_v62, -inf }
 0xa8f   : > { %3267 = vmax.xlane.f32.xlu0 %v3266_v18  ;;  %v5220_v47 = vpop.f32.mrb[116].mxu0 }
 0xa90   : > { %v7237_v25 = vmul.f32 0.17677669, %v5220_v47  ;;  %v3211_v38 = vpop.f32.mrb[117].mxu0 }
 0xa91   : > { %3270 = vmax.xlane.f32.xlu1 %v3269_v28  ;;  %v5221_v4 = vpop.f32.mrb[118].mxu0  ;;  %v7241_v14 = vmul.f32 0.17677669, %v3211_v38 }
 0xa92   : > { %v3214_v16 = vpop.f32.mrb[119].mxu0  ;;  %v3284_v56 = vsel %vm1477_vm1, %v7237_v25, -inf  ;;  %v7251_v18 = vmul.f32 0.17677669, %v5221_v4 }
 0xa93   : > { %3285 = vmax.xlane.f32.xlu0 %v3284_v56  ;;  %v3278_v40 = vsel %vm1477_vm1, %v7241_v14, -inf  ;;  %v7253_v47 = vmul.f32 0.17677669, %v3214_v16 }
 0xa94   : > { %v3287_v38 = vsel %vm1477_vm1, %v7251_v18, -inf }
 0xa95   : > { %v3281_v28 = vsel %vm1477_vm1, %v7253_v47, -inf }
 0xa97   : > { %3279 = vmax.xlane.f32.xlu0 %v3278_v40 }
 0xaa2   : > { %3515 = vrot.lane.b32.xlu1 %v6265_v22, %s5867_s26 }
 0xaad   : > { %3432 = vrot.lane.b32.xlu0 %v6252_v5, %s5867_s26 }
 0xac6   : > { %3288 = vmax.xlane.f32.xlu1 %v3287_v38 }
 0xaca   : > { %3282 = vmax.xlane.f32.xlu1 %v3281_v28 }
 0xad3   : > { %v3250_v56 = vpop.xlane.xlu0 %3249 }
 0xad4   : > { %v3292_v40 = vsub.f32 %v7167_v8, %v3250_v56 }
 0xad6   : > { %v3310_v10 = vmul.f32 1.442695, %v3292_v40 }
 0xad7   : > { %v3244_v22 = vpop.xlane.xlu0 %3243 }
 0xad8   : > { %5777 = vpow2.f32 %v3310_v10  ;;  %v3290_v5 = vsub.f32 %v7171_v37, %v3244_v22  ;;  %v3247_v10 = vpop.xlane.xlu1 %3246 }
 0xad9   : > { %v3291_v56 = vsub.f32 %v7177_v48, %v3247_v10 }
 0xada   : > { %v3306_v4 = vmul.f32 1.442695, %v3290_v5 }
 0xadb   : > { %3517 = vrot.lane.b32.xlu1 %v6262_v21, %s5867_s26  ;;  %v3253_v2 = vpop.xlane.xlu0 %3252  ;;  %v3308_v40 = vmul.f32 1.442695, %v3291_v56 }
 0xadc   : > { %5779 = vpow2.f32 %v3306_v4  ;;  %v3293_v37 = vsub.f32 %v7189_v54, %v3253_v2 }
 0xade   : > { %v3312_v21 = vmul.f32 1.442695, %v3293_v37 }
 0xae0   : > { %5781 = vpow2.f32 %v3312_v21 }
 0xae1   : > { %5783 = vpow2.f32 %v3308_v40 }
 0xae2   : > { %v7263_v16 = vpop.eup %5777 }
 0xae3   : > { %v3344_v38 = vsel %vm1477_vm1, %v7263_v16, 0.0 }
 0xae4   : > { %3345 = vadd.xlane.f32.xlu0 %v3344_v38 }
 0xae6   : > { %v7267_v28 = vpop.eup %5779 }
 0xae7   : > { %v3338_v8 = vsel %vm1477_vm1, %v7267_v28, 0.0 }
 0xae8   : > { %3339 = vadd.xlane.f32.xlu0 %v3338_v8 }
 0xaea   : > { %v7273_v22 = vpop.eup %5781 }
 0xaeb   : > { %v3347_v5 = vsel %vm1477_vm1, %v7273_v22, 0.0  ;;  %v7277_v4 = vpop.eup %5783 }
 0xaec   : > { %v3341_v38 = vsel %vm1477_vm1, %v7277_v4, 0.0 }
 0xaff   : > { %3348 = vadd.xlane.f32.xlu1 %v3347_v5 }
 0xb03   : > { %3342 = vadd.xlane.f32.xlu1 %v3341_v38 }
 0xb05   : > { %v3262_v54 = vpop.xlane.xlu0 %3261 }
 0xb06   : > { %v3296_v2 = vsub.f32 %v7195_v44, %v3262_v54 }
 0xb07   : > { %v3265_v48 = vpop.xlane.xlu1 %3264 }
 0xb08   : > { %v3318_v8 = vmul.f32 1.442695, %v3296_v2  ;;  %v3297_v37 = vsub.f32 %v7199_v6, %v3265_v48 }
 0xb09   : > { %v3256_v10 = vpop.xlane.xlu0 %3255 }
 0xb0a   : > { %5785 = vpow2.f32 %v3318_v8  ;;  %v3320_v56 = vmul.f32 1.442695, %v3297_v37  ;;  %v3294_v21 = vsub.f32 %v7197_v60, %v3256_v10 }
 0xb0b   : > { %v3259_v40 = vpop.xlane.xlu1 %3258 }
 0xb0c   : > { %5787 = vpow2.f32 %v3320_v56  ;;  %v3314_v20 = vmul.f32 1.442695, %v3294_v21  ;;  %v3295_v5 = vsub.f32 %v7203_v46, %v3259_v40 }
 0xb0e   : > { %5789 = vpow2.f32 %v3314_v20  ;;  %v3316_v51 = vmul.f32 1.442695, %v3295_v5 }
 0xb10   : > { %5791 = vpow2.f32 %v3316_v51 }
 0xb14   : > { %v7285_v38 = vpop.eup %5785 }
 0xb15   : > { %v3356_v44 = vsel %vm1477_vm1, %v7285_v38, 0.0 }
 0xb16   : > { %v7289_v54 = vpop.eup %5787  ;;  %3357 = vadd.xlane.f32.xlu0 %v3356_v44 }
 0xb17   : > { %v3359_v6 = vsel %vm1477_vm1, %v7289_v54, 0.0 }
 0xb18   : > { %v7293_v60 = vpop.eup %5789  ;;  %v3274_v2 = vpop.xlane.xlu0 %3273  ;;  %3360 = vadd.xlane.f32.xlu1 %v3359_v6 }
 0xb19   : > { %v3300_v46 = vsub.f32 %v7223_v9, %v3274_v2  ;;  %v3350_v51 = vsel %vm1477_vm1, %v7293_v60, 0.0 }
 0xb1a   : > { %v7298_v20 = vpop.eup %5791  ;;  %3351 = vadd.xlane.f32.xlu0 %v3350_v51  ;;  %v3277_v48 = vpop.xlane.xlu1 %3276 }
 0xb1b   : > { %v3326_v8 = vmul.f32 1.442695, %v3300_v46  ;;  %v3301_v37 = vsub.f32 %v7227_v42, %v3277_v48  ;;  %v3353_v10 = vsel %vm1477_vm1, %v7298_v20, 0.0 }
 0xb1c   : > { %v3268_v56 = vpop.xlane.xlu0 %3267  ;;  %3354 = vadd.xlane.f32.xlu1 %v3353_v10 }
 0xb1d   : > { %5793 = vpow2.f32 %v3326_v8  ;;  %v3298_v21 = vsub.f32 %v7225_v58, %v3268_v56  ;;  %v3328_v9 = vmul.f32 1.442695, %v3301_v37 }
 0xb1e   : > { %v3271_v40 = vpop.xlane.xlu1 %3270 }
 0xb1f   : > { %v3322_v5 = vmul.f32 1.442695, %v3298_v21  ;;  %v3299_v44 = vsub.f32 %v7231_v62, %v3271_v40 }
 0xb20   : > { %v3286_v6 = vpop.xlane.xlu0 %3285 }
 0xb21   : > { %5795 = vpow2.f32 %v3322_v5  ;;  %v3304_v2 = vsub.f32 %v7237_v25, %v3286_v6  ;;  %v3324_v42 = vmul.f32 1.442695, %v3299_v44 }
 0xb22   : > { %v3516_v46 = vpop.permute.xlu1 %3515  ;;  %5797 = vpow2.f32 %v3328_v9 }
 0xb23   : > { %v3334_v51 = vmul.f32 1.442695, %v3304_v2  ;;  %5238 = vmatprep.subr.bf16.mxu0 %v3516_v46 }
 0xb24   : > { %v3280_v48 = vpop.xlane.xlu0 %3279  ;;  %5239 = vmatpush3.bf16.msra.mxu0 %v3516_v46 }
 0xb25   : > { %5799 = vpow2.f32 %v3334_v51  ;;  %v3302_v8 = vsub.f32 %v7241_v14, %v3280_v48 }
 0xb26   : > { %5801 = vpow2.f32 %v3324_v42 }
 0xb27   : > { %v7307_v58 = vpop.eup %5793  ;;  %v3330_v37 = vmul.f32 1.442695, %v3302_v8 }
 0xb28   : > { %v3433_v10 = vpop.permute.xlu0 %3432  ;;  %v3368_v62 = vsel %vm1477_vm1, %v7307_v58, 0.0 }
 0xb29   : > { %5803 = vpow2.f32 %v3330_v37  ;;  %5228 = vmatprep.subr.bf16.mxu1 %v3433_v10  ;;  %3369 = vadd.xlane.f32.xlu1 %v3368_v62 }
 0xb2a   : > { %5229 = vmatpush3.bf16.msra.mxu1 %v3433_v10 }
 0xb2b   : > { %v7311_v25 = vpop.eup %5795 }
 0xb2c   : > { %v3362_v56 = vsel %vm1477_vm1, %v7311_v25, 0.0  ;;  %v7315_v21 = vpop.eup %5797 }
 0xb2d   : > { %3363 = vadd.xlane.f32.xlu1 %v3362_v56  ;;  %v3371_v9 = vsel %vm1477_vm1, %v7315_v21, 0.0 }
 0xb2f   : > { %v7317_v14 = vpop.eup %5799 }
 0xb30   : > { %v3380_v40 = vsel %vm1477_vm1, %v7317_v14, 0.0  ;;  %v7323_v5 = vpop.eup %5801 }
 0xb31   : > { %3381 = vadd.xlane.f32.xlu0 %v3380_v40  ;;  %3372 = vadd.xlane.f32.xlu1 %v3371_v9  ;;  %v3365_v2 = vsel %vm1477_vm1, %v7323_v5, 0.0  ;;  %v7752_v9 = vpack.i.bf16 %v6865_v19, %v6859_v52  ;;  %v7755_v19 = vpack.i.bf16 %v6901_v0, %v6895_v61 }
 0xb33   : > { %v7325_v44 = vpop.eup %5803 }
 0xb34   : > { %v3374_v6 = vsel %vm1477_vm1, %v7325_v44, 0.0 }
 0xb35   : > { %3375 = vadd.xlane.f32.xlu0 %v3374_v6  ;;  %3366 = vadd.xlane.f32.xlu1 %v3365_v2 }
 0xb53   : > { %v3289_v46 = vpop.xlane.xlu1 %3288 }
 0xb54   : > { %v3305_v42 = vsub.f32 %v7251_v18, %v3289_v46 }
 0xb56   : > { %v3336_v51 = vmul.f32 1.442695, %v3305_v42 }
 0xb57   : > { %v3283_v48 = vpop.xlane.xlu1 %3282 }
 0xb58   : > { %5805 = vpow2.f32 %v3336_v51  ;;  %v3303_v8 = vsub.f32 %v7253_v47, %v3283_v48  ;;  %v7751_v47 = vpack.i.bf16 %v6861_v7, %v6857_v59  ;;  %v7754_v59 = vpack.i.bf16 %v6877_v17, %v6871_v49 }
 0xb5a   : > { %v3332_v37 = vmul.f32 1.442695, %v3303_v8 }
 0xb5b   : > { %v3518_v10 = vpop.permute.xlu1 %3517 }
 0xb5c   : > { %5807 = vpow2.f32 %v3332_v37  ;;  %5240 = vmatprep.subr.bf16.mxu0 %v3518_v10 }
 0xb5d   : > { %5241 = vmatpush3.bf16.msra.mxu0 %v3518_v10 }
 0xb62   : > { %v7333_v62 = vpop.eup %5805 }
 0xb63   : > { %v3383_v56 = vsel %vm1477_vm1, %v7333_v62, 0.0 }
 0xb64   : > { %3384 = vadd.xlane.f32.xlu0 %v3383_v56 }
 0xb66   : > { %v7337_v40 = vpop.eup %5807 }
 0xb67   : > { %v3377_v18 = vsel %vm1477_vm1, %v7337_v40, 0.0 }
 0xb68   : > { %3378 = vadd.xlane.f32.xlu1 %v3377_v18 }
 0xb79   : > { %3521 = vrot.lane.b32.xlu1 %v6270_v31, %s5867_s26  ;;  %v7753_v31 = vpack.i.bf16 %v6873_v23, %v6869_v3  ;;  %v7756_v3 = vpack.i.bf16 %v6905_v55, %v6899_v39 }
 0xb7a   : > { %3519 = vrot.lane.b32.xlu0 %v6273_v33, %s5867_s26  ;;  %v3346_v33 = vpop.xlane.xlu0 %3345 }
 0xb7d   : > { %5399 = vrot.lane.b32.xlu1 %v7751_v47, %s5867_s26 }
 0xb7e   : > { %5394 = vrot.lane.b32.xlu0 %v7752_v9, %s5867_s26  ;;  %v3340_v52 = vpop.xlane.xlu0 %3339 }
 0xb81   : > { %5409 = vrot.lane.b32.xlu1 %v5408_v35, %s5866_s25 }
 0xb82   : > { %5404 = vrot.lane.b32.xlu0 %v5403_v12, %s5866_s25 }
 0xb85   : > { %5419 = vrot.lane.b32.xlu1 %v7753_v31, %s5867_s26 }
 0xb86   : > { %5414 = vrot.lane.b32.xlu0 %v7754_v59, %s5867_s26 }
 0xb89   : > { %5429 = vrot.lane.b32.xlu1 %v5428_v29, %s5866_s25 }
 0xb8a   : > { %5424 = vrot.lane.b32.xlu0 %v5423_v57, %s5866_s25 }
 0xb8c   : > { %v3349_v7 = vpop.xlane.xlu1 %3348 }
 0xb8d   : > { %5439 = vrot.lane.b32.xlu1 %v7755_v19, %s5867_s26  ;;  %5809 = vrcp.f32 %v3349_v7 }
 0xb8e   : > { %5434 = vrot.lane.b32.xlu0 %v7756_v3, %s5867_s26  ;;  %5811 = vrcp.f32 %v3340_v52 }
 0xb8f   : > { %5813 = vrcp.f32 %v3346_v33 }
 0xb90   : > { %v3343_v49 = vpop.xlane.xlu1 %3342 }
 0xb91   : > { %5815 = vrcp.f32 %v3343_v49 }
 0xb97   : > { %v5810_v23 = vpop.eup %5809 }
 0xb98   : > { %v5812_v17 = vpop.eup %5811  ;;  %v3405_v32 = vmul.f32 %v5810_v23, %v7273_v22 }
 0xb99   : > { %v5814_v45 = vpop.eup %5813  ;;  %v3402_v35 = vmul.f32 %v5812_v17, %v7267_v28 }
 0xb9a   : > { %v3404_v0 = vmul.f32 %v5814_v45, %v7263_v16 }
 0xb9b   : > { %v5816_v34 = vpop.eup %5815 }
 0xb9c   : > { %v3403_v61 = vmul.f32 %v5816_v34, %v7277_v4  ;;  %v3419_v12 = vpack.c.bf16 %v3405_v32, %v3404_v0  ;;  %v5566_v32 = vld [vmem:[%s7724_s4 + $0x28] sm:$0xff]  }
 0xb9e   : > { %v3418_v11 = vpack.c.bf16 %v3403_v61, %v3402_v35  ;;  %v5567_v35 = vld [vmem:[%s7724_s4 + $0x30] sm:$0xff]   ;;  %v5568_v61 = vld [vmem:[%s7724_s4 + $0x38] sm:$0xff]  }
 0xba0   : > { %5230 = vmatprep.mubr.msk.bf16.mxu1 %vm1477_vm1, %v3418_v11 }
 0xba1   : > { %5231 = vmatmul.mubr.msk.bf16.vlgmr.msra.gmra.mrb[88].mxu1 %vm1477_vm1, %v3419_v12 }
 0xba3   : > { %v3358_v39 = vpop.xlane.xlu0 %3357 }
 0xba5   : > { %v3361_v55 = vpop.xlane.xlu1 %3360 }
 0xba6   : > { %5817 = vrcp.f32 %v3361_v55 }
 0xba7   : > { %v3352_v41 = vpop.xlane.xlu0 %3351 }
 0xba8   : > { %5819 = vrcp.f32 %v3352_v41 }
 0xba9   : > { %5821 = vrcp.f32 %v3358_v39  ;;  %v3355_v26 = vpop.xlane.xlu1 %3354 }
 0xbaa   : > { %5823 = vrcp.f32 %v3355_v26  ;;  %v7757_v26 = vpack.i.bf16 %v7179_v30, %v7169_v36  ;;  %v7761_v30 = vld [vmem:[#allocation20_spill] sm:$0xff] }
 0xbb0   : > { %v5818_v24 = vpop.eup %5817 }
 0xbb1   : > { %v3409_v16 = vmul.f32 %v5818_v24, %v7289_v54  ;;  %v7758_v24 = vpack.i.bf16 %v7183_v43, %v7173_v13 }
 0xbb2   : > { %v5820_v29 = vpop.eup %5819 }
 0xbb3   : > { %v5822_v15 = vpop.eup %5821  ;;  %v3406_v28 = vmul.f32 %v5820_v29, %v7293_v60 }
 0xbb4   : > { %v5824_v57 = vpop.eup %5823  ;;  %v3408_v6 = vmul.f32 %v5822_v15, %v7285_v38 }
 0xbb5   : > { %v3407_v22 = vmul.f32 %v5824_v57, %v7298_v20 }
 0xbb6   : > { %v3370_v4 = vpop.xlane.xlu1 %3369  ;;  %v3421_v46 = vpack.c.bf16 %v3409_v16, %v3408_v6  ;;  %v7762_v6 = vld [vmem:[#allocation19_spill] sm:$0xff] }
 0xbb7   : > { %v3420_v2 = vpack.c.bf16 %v3407_v22, %v3406_v28  ;;  %v7763_v13 = vpack.i.bf16 %v7761_v30, %v7762_v6 }
 0xbb9   : > { %5234 = vmatprep.mubr.msk.bf16.mxu1 %vm1477_vm1, %v3420_v2 }
 0xbba   : > { %5235 = vmatmul.mubr.msk.bf16.gmra.mrb[92].mxu1 %vm1477_vm1, %v3421_v46  ;;  %v3364_v42 = vpop.xlane.xlu1 %3363 }
 0xbbb   : > { %5825 = vrcp.f32 %v3364_v42 }
 0xbbe   : > { %v3373_v51 = vpop.xlane.xlu1 %3372  ;;  %v3382_v38 = vpop.xlane.xlu0 %3381 }
 0xbc2   : > { %v3367_v48 = vpop.xlane.xlu1 %3366  ;;  %v3376_v10 = vpop.xlane.xlu0 %3375 }
 0xbc3   : > { %5827 = vrcp.f32 %v3367_v48 }
 0xbc4   : > { %5829 = vrcp.f32 %v3373_v51 }
 0xbc5   : > { %v5826_v8 = vpop.eup %5825  ;;  %5831 = vrcp.f32 %v3370_v4  ;;  %v7759_v4 = vld [vmem:[#allocation18_spill] sm:$0xff] }
 0xbc6   : > { %v3410_v60 = vmul.f32 %v5826_v8, %v7311_v25  ;;  %v7760_v36 = vpack.i.bf16 %v6921_v50, %v7759_v4  ;;  %v5569_v50 = vld [vmem:[%s7726_s6] sm:$0xff]  }
 0xbcd   : > { %v5828_v54 = vpop.eup %5827 }
 0xbce   : > { %v3411_v20 = vmul.f32 %v5828_v54, %v7323_v5  ;;  %v5830_v18 = vpop.eup %5829 }
 0xbcf   : > { %v5832_v31 = vpop.eup %5831  ;;  %v3413_v25 = vmul.f32 %v5830_v18, %v7315_v21 }
 0xbd0   : > { %v3422_v37 = vpack.c.bf16 %v3411_v20, %v3410_v60  ;;  %v3412_v33 = vmul.f32 %v5832_v31, %v7307_v58  ;;  %v5561_v58 = vld [vmem:[%s7724_s4] sm:$0xff]  }
 0xbd1   : > { %5254 = vmatprep.subr.bf16.mxu1 %v5561_v58 }
 0xbd2   : > { %5246 = vmatprep.mubr.msk.bf16.mxu0 %vm1477_vm1, %v3422_v37  ;;  %v3423_v59 = vpack.c.bf16 %v3413_v25, %v3412_v33  ;;  %5255 = vmatpush3.bf16.xpose.msra.mxu1 %v5561_v58  ;;  %v5570_v37 = vld [vmem:[%s7726_s6 + $0x8] sm:$0xff]  }
 0xbf1   : > { %v3385_v56 = vpop.xlane.xlu0 %3384 }
 0xbf2   : > { %5833 = vrcp.f32 %v3385_v56 }
 0xbf3   : > { %5835 = vrcp.f32 %v3376_v10  ;;  %v7764_v10 = vpack.i.bf16 %v7215_v27, %v7211_v63  ;;  %v5571_v63 = vld [vmem:[%s7726_s6 + $0x10] sm:$0xff]  }
 0xbf4   : > { %5837 = vrcp.f32 %v3382_v38 }
 0xbf5   : > { %v3520_v47 = vpop.permute.xlu0 %3519  ;;  %v3379_v9 = vpop.xlane.xlu1 %3378 }
 0xbf6   : > { %5839 = vrcp.f32 %v3379_v9  ;;  %5242 = vmatprep.subr.bf16.mxu0 %v3520_v47 }
 0xbf7   : > { %5243 = vmatpush3.bf16.msra.mxu0 %v3520_v47  ;;  %v7765_v47 = vpack.i.bf16 %v7219_v53, %v7213_v1 }
 0xbf9   : > { %v3522_v5 = vpop.permute.xlu1 %3521  ;;  %v5395_v2 = vpop.permute.xlu0 %5394 }
 0xbfa   : > { %5244 = vmatprep.subr.bf16.mxu0 %v3522_v5  ;;  %v5396_v53 = vunpack.i.l.bf16 %v5395_v2 }
 0xbfb   : > { %5245 = vmatpush3.bf16.msra.mxu0 %v3522_v5 }
 0xbfc   : > { %v5834_v52 = vpop.eup %5833  ;;  %5286 = vmatprep.subr.bf16.mxu0 %v5569_v50 }
 0xbfd   : > { %v5836_v7 = vpop.eup %5835  ;;  %v3417_v49 = vmul.f32 %v5834_v52, %v7333_v62  ;;  %v5562_v62 = vld [vmem:[%s7724_s4 + $0x8] sm:$0xff]   ;;  %v5400_v43 = vpop.permute.xlu1 %5399 }
 0xbfe   : > { %5247 = vmatmul.mubr.msk.bf16.vlgmr.msra.gmra.mrb[120].mxu0 %vm1477_vm1, %v3423_v59  ;;  %v5838_v19 = vpop.eup %5837  ;;  %v3414_v23 = vmul.f32 %v5836_v7, %v7325_v44  ;;  %5256 = vmatprep.subr.bf16.mxu1 %v5562_v62  ;;  %v5564_v44 = vld [vmem:[%s7724_s4 + $0x18] sm:$0xff]   ;;  %v5405_v20 = vpop.permute.xlu0 %5404  ;;  %v5397_v59 = vunpack.i.h.bf16 %v5395_v2 }
 0xbff   : > { %v3416_v21 = vmul.f32 %v5838_v19, %v7317_v14  ;;  %v5563_v14 = vld [vmem:[%s7724_s4 + $0x10] sm:$0xff]   ;;  %5257 = vmatpush3.bf16.xpose.msra.mxu1 %v5562_v62  ;;  %v5406_v52 = vunpack.i.l.bf16 %v5405_v20  ;;  %v5407_v7 = vunpack.i.h.bf16 %v5405_v20  ;;  %v5402_v19 = vunpack.i.h.bf16 %v5400_v43  ;;  %v7767_v62 = vld [vmem:[#allocation5_spill] sm:$0xff] }
 0xc00   : > { %v5840_v3 = vpop.eup %5839  ;;  %5258 = vmatprep.subr.bf16.mxu1 %v5563_v14 }
 0xc01   : > { %v3415_v17 = vmul.f32 %v5840_v3, %v7337_v40  ;;  %v3425_v34 = vpack.c.bf16 %v3417_v49, %v3416_v21  ;;  %v5565_v40 = vld [vmem:[%s7724_s4 + $0x20] sm:$0xff]   ;;  %v5410_v54 = vpop.permute.xlu1 %5409  ;;  %v5401_v3 = vunpack.i.l.bf16 %v5400_v43 }
 0xc02   : > { %v7471_v31 = vpop.permute.xlu0 %5414 }
 0xc03   : > { %v3424_v45 = vpack.c.bf16 %v3415_v17, %v3414_v23  ;;  %v5412_v23 = vunpack.i.h.bf16 %v5410_v54  ;;  %v5411_v17 = vunpack.i.l.bf16 %v5410_v54  ;;  %v7771_v54 = vld [vmem:[#allocation10_spill] sm:$0xff] }
 0xc04   : > { %5287 = vmatpush3.bf16.xpose.msra.mxu0 %v5569_v50 }
 0xc05   : > { %5250 = vmatprep.mubr.msk.bf16.mxu0 %vm1477_vm1, %v3424_v45  ;;  %v7465_v18 = vpop.permute.xlu1 %5419  ;;  %5288 = vmatprep.subr.bf16.mxu0 %v5570_v37  ;;  %v5572_v45 = vld [vmem:[%s7726_s6 + $0x18] sm:$0xff]  }
 0xc06   : > { %5251 = vmatmul.mubr.msk.bf16.gmra.mrb[124].mxu0 %vm1477_vm1, %v3425_v34  ;;  %v7480_v1 = vpop.permute.xlu0 %5424  ;;  %v7766_v34 = vld [vmem:[#allocation3_spill] sm:$0xff] }
 0xc07   : > { %5259 = vmatpush3.bf16.xpose.msra.mxu1 %v5563_v14  ;;  %v3796_v58 = vsel %vm1282_vm0, %v7766_v34, %v5396_v53  ;;  %v3797_v14 = vsel %vm1282_vm0, %v7767_v62, %v5397_v59  ;;  %v5416_v53 = vunpack.i.l.bf16 %v7471_v31  ;;  %v5575_v59 = vld [vmem:[%s7726_s6 + $0x30] sm:$0xff]   ;;  %v7777_v62 = vld [vmem:[#allocation6_spill] sm:$0xff] }
 0xc08   : > { %5260 = vmatprep.subr.bf16.mxu1 %v5564_v44 }
 0xc09   : > { %v7478_v27 = vpop.permute.xlu1 %5429 }
 0xc0a   : > { %v5435_v21 = vpop.permute.xlu0 %5434 }
 0xc0c   : > { %5289 = vmatpush3.bf16.xpose.msra.mxu0 %v5570_v37  ;;  %v7772_v37 = vld [vmem:[#allocation13_spill] sm:$0xff] }
 0xc0d   : > { %5290 = vmatprep.subr.bf16.mxu0 %v5571_v63  ;;  %v5440_v49 = vpop.permute.xlu1 %5439 }
 0xc0f   : > { %5261 = vmatpush3.bf16.xpose.msra.mxu1 %v5564_v44  ;;  %v3812_v44 = vsel %vm1477_vm1, %v3796_v58, %v5406_v52  ;;  %v5422_v52 = vunpack.i.h.bf16 %v7465_v18  ;;  %v7776_v58 = vld [vmem:[#allocation8_spill] sm:$0xff] }
 0xc10   : > { %5262 = vmatprep.subr.bf16.mxu1 %v5565_v40 }
 0xc14   : > { %5291 = vmatpush3.bf16.xpose.msra.mxu0 %v5571_v63  ;;  %v5417_v63 = vunpack.i.h.bf16 %v7471_v31 }
 0xc15   : > { %5292 = vmatprep.subr.bf16.mxu0 %v5572_v45 }
 0xc17   : > { %5263 = vmatpush3.bf16.xpose.msra.mxu1 %v5565_v40  ;;  %v3813_v40 = vsel %vm1477_vm1, %v3797_v14, %v5407_v7  ;;  %v5421_v7 = vunpack.i.l.bf16 %v7465_v18  ;;  %v3803_v18 = vsel %vm1282_vm0, %v7776_v58, %v5422_v52 }
 0xc18   : > { %5264 = vmatprep.subr.bf16.mxu1 %v5566_v32 }
 0xc19   : > { %v3802_v14 = vsel %vm1282_vm0, %v7777_v62, %v5421_v7 }
 0xc1c   : > { %5293 = vmatpush3.bf16.xpose.msra.mxu0 %v5572_v45 }
 0xc1f   : > { %5265 = vmatpush3.bf16.xpose.msra.mxu1 %v5566_v32  ;;  %v7768_v32 = vld [vmem:[#allocation4_spill] sm:$0xff] }
 0xc20   : > { %5266 = vmatprep.subr.bf16.mxu1 %v5567_v35 }
 0xc27   : > { %5267 = vmatpush3.bf16.xpose.msra.mxu1 %v5567_v35  ;;  %v3799_v35 = vsel %vm1282_vm0, %v7768_v32, %v5402_v19  ;;  %v5432_v19 = vunpack.i.h.bf16 %v7478_v27 }
 0xc28   : > { %5268 = vmatprep.subr.bf16.mxu1 %v5568_v61 }
 0xc29   : > { %v3819_v32 = vsel %vm1477_vm1, %v3803_v18, %v5432_v19 }
 0xc2f   : > { %5269 = vmatpush3.bf16.xpose.msra.mxu1 %v5568_v61  ;;  %v7769_v61 = vld [vmem:[#allocation2_spill] sm:$0xff] }
 0xc74   : > { %v5232_v0 = vpop.f32.mrb[88].mxu1 }
 0xc75   : > { %v3484_v11 = vpop.f32.mrb[89].mxu1 }
 0xc76   : > { %v5233_v12 = vpop.f32.mrb[90].mxu1 }
 0xc77   : > { %v5443_v39 = vpack.i.bf16 %v5233_v12, %v5232_v0  ;;  %v3487_v55 = vpop.f32.mrb[91].mxu1  ;;  %v3798_v0 = vsel %vm1282_vm0, %v7769_v61, %v5401_v3  ;;  %v5431_v3 = vunpack.i.l.bf16 %v7478_v27 }
 0xc78   : > { %v5448_v41 = vpack.i.bf16 %v3487_v55, %v3484_v11  ;;  %v3814_v12 = vsel %vm1477_vm1, %v3798_v0, %v5411_v17  ;;  %v7774_v17 = vld [vmem:[#allocation9_spill] sm:$0xff] }
 0xc79   : > { %5444 = vrot.lane.b32.xlu1 %v5443_v39, %s5865_s22  ;;  %v3815_v39 = vsel %vm1477_vm1, %v3799_v35, %v5412_v23  ;;  %v5426_v23 = vunpack.i.l.bf16 %v7480_v1  ;;  %v3801_v31 = vsel %vm1282_vm0, %v7774_v17, %v5417_v63 }
 0xc7a   : > { %5449 = vrot.lane.b32.xlu0 %v5448_v41, %s5865_s22 }
 0xc7d   : > { %5459 = vrot.lane.b32.xlu1 %v7757_v26, %s5866_s25 }
 0xc7e   : > { %5454 = vrot.lane.b32.xlu0 %v7758_v24, %s5866_s25  ;;  %v5442_v24 = vunpack.i.h.bf16 %v5440_v49 }
 0xc8d   : > { %v5236_v29 = vpop.f32.mrb[92].mxu1 }
 0xc8e   : > { %v3500_v15 = vpop.f32.mrb[93].mxu1 }
 0xc8f   : > { %v5237_v57 = vpop.f32.mrb[94].mxu1 }
 0xc90   : > { %v5463_v16 = vpack.i.bf16 %v5237_v57, %v5236_v29  ;;  %v3503_v28 = vpop.f32.mrb[95].mxu1  ;;  %v5441_v29 = vunpack.i.l.bf16 %v5440_v49  ;;  %v5427_v49 = vunpack.i.h.bf16 %v7480_v1  ;;  %v3818_v1 = vsel %vm1477_vm1, %v3802_v14, %v5431_v3 }
 0xc91   : > { %v5468_v22 = vpack.i.bf16 %v3503_v28, %v3500_v15  ;;  %v5436_v28 = vunpack.i.l.bf16 %v5435_v21 }
 0xc92   : > { %5464 = vrot.lane.b32.xlu1 %v5463_v16, %s5865_s22  ;;  %v5437_v16 = vunpack.i.h.bf16 %v5435_v21  ;;  %v7775_v21 = vld [vmem:[#allocation7_spill] sm:$0xff] }
 0xc93   : > { %5469 = vrot.lane.b32.xlu0 %v5468_v22, %s5865_s22  ;;  %v3800_v45 = vsel %vm1282_vm0, %v7775_v21, %v5416_v53  ;;  %v7781_v53 = vld [vmem:[#allocation15_spill] sm:$0xff] }
 0xc94   : > { %v3816_v0 = vsel %vm1477_vm1, %v3800_v45, %v5426_v23 }
 0xc96   : > { %5479 = vrot.lane.b32.xlu1 %v7760_v36, %s5867_s26 }
 0xc97   : > { %5474 = vrot.lane.b32.xlu0 %v7763_v13, %s5867_s26 }
 0xcd1   : > { %v5248_v46 = vpop.f32.mrb[120].mxu0 }
 0xcd2   : > { %v3573_v42 = vpop.f32.mrb[121].mxu0 }
 0xcd3   : > { %v5249_v51 = vpop.f32.mrb[122].mxu0 }
 0xcd4   : > { %v5483_v48 = vpack.i.bf16 %v5249_v51, %v5248_v46  ;;  %v3576_v8 = vpop.f32.mrb[123].mxu0  ;;  %v5573_v51 = vld [vmem:[%s7726_s6 + $0x20] sm:$0xff]  }
 0xcd5   : > { %v5488_v60 = vpack.i.bf16 %v3576_v8, %v3573_v42  ;;  %5294 = vmatprep.subr.bf16.mxu0 %v5573_v51 }
 0xcd6   : > { %5484 = vrot.lane.b32.xlu1 %v5483_v48, %s5865_s22  ;;  %v7770_v48 = vld [vmem:[#allocation12_spill] sm:$0xff]  ;;  %5295 = vmatpush3.bf16.xpose.msra.mxu0 %v5573_v51 }
 0xcd7   : > { %5489 = vrot.lane.b32.xlu0 %v5488_v60, %s5865_s22  ;;  %v3807_v8 = vsel %vm1282_vm0, %v7770_v48, %v5442_v24  ;;  %v3806_v60 = vsel %vm1282_vm0, %v7771_v54, %v5441_v29 }
 0xcd9   : > { %v5252_v38 = vpop.f32.mrb[124].mxu0 }
 0xcda   : > { %5499 = vrot.lane.b32.xlu1 %v7764_v10, %s5866_s25  ;;  %v3589_v56 = vpop.f32.mrb[125].mxu0  ;;  %v7773_v10 = vld [vmem:[#allocation11_spill] sm:$0xff] }
 0xcdb   : > { %5494 = vrot.lane.b32.xlu0 %v7765_v47, %s5866_s25  ;;  %v5253_v9 = vpop.f32.mrb[126].mxu0 }
 0xcdc   : > { %v5508_v25 = vpack.i.bf16 %v5253_v9, %v5252_v38  ;;  %v3592_v5 = vpop.f32.mrb[127].mxu0  ;;  %v3805_v38 = vsel %vm1282_vm0, %v7772_v37, %v5437_v16  ;;  %v5576_v16 = vld [vmem:[%s7726_s6 + $0x38] sm:$0xff]  }
 0xcdd   : > { %v5503_v33 = vpack.i.bf16 %v3592_v5, %v3589_v56  ;;  %v3804_v56 = vsel %vm1282_vm0, %v7773_v10, %v5436_v28 }
 0xcde   : > { %5509 = vrot.lane.b32.xlu1 %v5508_v25, %s5865_s22 }
 0xcdf   : > { %5504 = vrot.lane.b32.xlu0 %v5503_v33, %s5865_s22  ;;  %v5574_v33 = vld [vmem:[%s7726_s6 + $0x28] sm:$0xff]  }
 0xce0   : > { %5296 = vmatprep.subr.bf16.mxu0 %v5574_v33 }
 0xce1   : > { %5297 = vmatpush3.bf16.xpose.msra.mxu0 %v5574_v33 }
 0xce2   : > { %5298 = vmatprep.subr.bf16.mxu0 %v5575_v59 }
 0xce9   : > { %5299 = vmatpush3.bf16.xpose.msra.mxu0 %v5575_v59 }
 0xcea   : > { %5300 = vmatprep.subr.bf16.mxu0 %v5576_v16 }
 0xceb   : > { %v5445_v11 = vpop.permute.xlu1 %5444 }
 0xcec   : > { %v5447_v55 = vunpack.i.h.bf16 %v5445_v11  ;;  %v5446_v41 = vunpack.i.l.bf16 %v5445_v11  ;;  %v5450_v26 = vpop.permute.xlu0 %5449  ;;  %v3817_v11 = vsel %vm1477_vm1, %v3801_v31, %v5427_v49 }
 0xced   : > { %v5452_v15 = vunpack.i.h.bf16 %v5450_v26  ;;  %v5451_v57 = vunpack.i.l.bf16 %v5450_v26 }
 0xcee   : > { %v3831_v22 = vsel %vm3828_vm2, %v3814_v12, %v5446_v41  ;;  %v3832_v4 = vsel %vm3828_vm2, %v3815_v39, %v5447_v55 }
 0xcef   : > { %v3862_v36 = vpack.c.bf16 %v3832_v4, %v3831_v22  ;;  %v5460_v30 = vpop.permute.xlu1 %5459  ;;  %v3829_v6 = vsel %vm3828_vm2, %v3812_v44, %v5451_v57  ;;  %v3830_v13 = vsel %vm3828_vm2, %v3813_v40, %v5452_v15 }
 0xcf0   : > { %v5462_v43 = vunpack.i.h.bf16 %v5460_v30  ;;  %v5461_v2 = vunpack.i.l.bf16 %v5460_v30  ;;  %v5455_v46 = vpop.permute.xlu0 %5454  ;;  %v3861_v42 = vpack.c.bf16 %v3830_v13, %v3829_v6 }
 0xcf1   : > { %v5457_v20 = vunpack.i.h.bf16 %v5455_v46  ;;  %v5456_v50 = vunpack.i.l.bf16 %v5455_v46  ;;  %5301 = vmatpush3.bf16.xpose.msra.mxu0 %v5576_v16 }
 0xcf2   : > { %v3822_v47 = vsel %vm1477_vm1, %v3806_v60, %v5461_v2  ;;  %v3823_v9 = vsel %vm1477_vm1, %v3807_v8, %v5462_v43  ;;  %5270 = vmatprep.mubr.bf16.mxu1 %v3861_v42 }
 0xcf3   : > { %v3821_v25 = vsel %vm1477_vm1, %v3805_v38, %v5457_v20  ;;  %v3820_v5 = vsel %vm1477_vm1, %v3804_v56, %v5456_v50  ;;  %5271 = vmatmul.mubr.bf16.vlgmr.msra.gmra.mrb[96].mxu1 %v3862_v36  ;;  %v7778_v56 = vld [vmem:[#allocation16_spill] sm:$0xff] }
 0xd04   : > { %v5465_v34 = vpop.permute.xlu1 %5464 }
 0xd05   : > { %v5467_v27 = vunpack.i.h.bf16 %v5465_v34  ;;  %v5466_v44 = vunpack.i.l.bf16 %v5465_v34  ;;  %v5470_v40 = vpop.permute.xlu0 %5469 }
 0xd06   : > { %v5472_v35 = vunpack.i.h.bf16 %v5470_v40  ;;  %v5471_v61 = vunpack.i.l.bf16 %v5470_v40  ;;  %v5579_v40 = vld [vmem:[%s7727_s7 + $0x10] sm:$0xff]  }
 0xd07   : > { %v3835_v12 = vsel %vm3828_vm2, %v3818_v1, %v5466_v44  ;;  %v3836_v39 = vsel %vm3828_vm2, %v3819_v32, %v5467_v27  ;;  %v5577_v27 = vld [vmem:[%s7727_s7] sm:$0xff]   ;;  %v5578_v44 = vld [vmem:[%s7727_s7 + $0x8] sm:$0xff]  }
 0xd08   : > { %v3833_v55 = vsel %vm3828_vm2, %v3816_v0, %v5471_v61  ;;  %v3834_v41 = vsel %vm3828_vm2, %v3817_v11, %v5472_v35  ;;  %v3864_v26 = vpack.c.bf16 %v3836_v39, %v3835_v12  ;;  %v5480_v29 = vpop.permute.xlu1 %5479  ;;  %5318 = vmatprep.subr.bf16.mxu1 %v5577_v27  ;;  %v7581_v1 = vld [vmem:[%s7725_s5] ss:$0 sm:$0xff]  ;;  %v5580_v35 = vld [vmem:[%s7727_s7 + $0x18] sm:$0xff]  }
 0xd09   : > { %v3863_v24 = vpack.c.bf16 %v3834_v41, %v3833_v55  ;;  %v5475_v15 = vpop.permute.xlu0 %5474  ;;  %v5482_v6 = vunpack.i.h.bf16 %v5480_v29  ;;  %v5481_v2 = vunpack.i.l.bf16 %v5480_v29  ;;  %5319 = vmatpush3.bf16.xpose.msra.mxu1 %v5577_v27  ;;  %v5842_v29 = vld [vmem:[%s5944_s21] sm:$0xff] }
 0xd0a   : > { %v5477_v8 = vunpack.i.h.bf16 %v5475_v15  ;;  %v5476_v54 = vunpack.i.l.bf16 %v5475_v15  ;;  %5320 = vmatprep.subr.bf16.mxu1 %v5578_v44 }
 0xd0b   : > { %5274 = vmatprep.mubr.bf16.mxu1 %v3863_v24 }
 0xd0c   : > { %5275 = vmatmul.mubr.bf16.gmra.mrb[100].mxu1 %v3864_v26  ;;  %v3808_v59 = vsel %vm1282_vm0, %v7781_v53, %v5476_v54  ;;  %v5841_v26 = vld [vmem:[%s5944_s21 + $0x18] sm:$0xff] }
 0xd11   : > { %5321 = vmatpush3.bf16.xpose.msra.mxu1 %v5578_v44 }
 0xd12   : > { %5322 = vmatprep.subr.bf16.mxu1 %v5579_v40 }
 0xd19   : > { %5323 = vmatpush3.bf16.xpose.msra.mxu1 %v5579_v40 }
 0xd1a   : > { %5324 = vmatprep.subr.bf16.mxu1 %v5580_v35 }
 0xd21   : > { %5325 = vmatpush3.bf16.xpose.msra.mxu1 %v5580_v35 }
 0xd48   : > { %v5485_v57 = vpop.permute.xlu1 %5484 }
 0xd49   : > { %v5487_v28 = vunpack.i.h.bf16 %v5485_v57  ;;  %v5486_v22 = vunpack.i.l.bf16 %v5485_v57  ;;  %v5490_v4 = vpop.permute.xlu0 %5489  ;;  %v5843_v57 = vld [vmem:[%s5944_s21 + $0x8] sm:$0xff] }
 0xd4a   : > { %v5492_v36 = vunpack.i.h.bf16 %v5490_v4  ;;  %v5491_v30 = vunpack.i.l.bf16 %v5490_v4 }
 0xd4b   : > { %v3839_v13 = vsel %vm3828_vm2, %v3822_v47, %v5486_v22  ;;  %v3840_v43 = vsel %vm3828_vm2, %v3823_v9, %v5487_v28  ;;  %v3811_v47 = vsel %vm1282_vm0, %v7778_v56, %v5482_v6  ;;  %v7779_v9 = vld [vmem:[#allocation14_spill] sm:$0xff]  ;;  %v5844_v28 = vld [vmem:[%s5944_s21 + $0x10] sm:$0xff]  ;;  %v5582_v6 = vld [vmem:[%s7727_s7 + $0x28] sm:$0xff]  }
 0xd4c   : > { %v5500_v46 = vpop.permute.xlu1 %5499  ;;  %v3837_v42 = vsel %vm3828_vm2, %v3820_v5, %v5491_v30  ;;  %v3838_v51 = vsel %vm3828_vm2, %v3821_v25, %v5492_v36  ;;  %v3866_v48 = vpack.c.bf16 %v3840_v43, %v3839_v13  ;;  %v3810_v33 = vsel %vm1282_vm0, %v7779_v9, %v5481_v2  ;;  %v7780_v5 = vld [vmem:[#allocation17_spill] sm:$0xff]  ;;  %v5581_v36 = vld [vmem:[%s7727_s7 + $0x20] sm:$0xff]   ;;  %v5583_v13 = vld [vmem:[%s7727_s7 + $0x30] sm:$0xff]  }
 0xd4d   : > { %v5495_v60 = vpop.permute.xlu0 %5494  ;;  %v3865_v20 = vpack.c.bf16 %v3838_v51, %v3837_v42  ;;  %v5502_v50 = vunpack.i.h.bf16 %v5500_v46  ;;  %v5501_v37 = vunpack.i.l.bf16 %v5500_v46  ;;  %v3809_v25 = vsel %vm1282_vm0, %v7780_v5, %v5477_v8  ;;  %5326 = vmatprep.subr.bf16.mxu1 %v5581_v36  ;;  %v5848_v56 = vld [vmem:[%s5944_s21 + $0x30] sm:$0xff]  ;;  %v5584_v9 = vld [vmem:[%s7727_s7 + $0x38] sm:$0xff]  }
 0xd4e   : > { %v5497_v38 = vunpack.i.h.bf16 %v5495_v60  ;;  %v5496_v10 = vunpack.i.l.bf16 %v5495_v60  ;;  %5327 = vmatpush3.bf16.xpose.msra.mxu1 %v5581_v36  ;;  %v5845_v60 = vld [vmem:[%s5944_s21 + $0x38] sm:$0xff] }
 0xd4f   : > { %5278 = vmatprep.mubr.bf16.mxu1 %v3865_v20  ;;  %v3826_v3 = vsel %vm1477_vm1, %v3810_v33, %v5501_v37  ;;  %v3827_v49 = vsel %vm1477_vm1, %v3811_v47, %v5502_v50  ;;  %5328 = vmatprep.subr.bf16.mxu1 %v5582_v6  ;;  %v5846_v50 = vld [vmem:[%s5944_s21 + $0x20] sm:$0xff] }
 0xd50   : > { %v5510_v63 = vpop.permute.xlu1 %5509  ;;  %5279 = vmatmul.mubr.bf16.gmra.mrb[104].mxu1 %v3866_v48  ;;  %v3825_v31 = vsel %vm1477_vm1, %v3809_v25, %v5497_v38  ;;  %v3824_v21 = vsel %vm1477_vm1, %v3808_v59, %v5496_v10  ;;  %v5847_v38 = vld [vmem:[%s5944_s21 + $0x28] sm:$0xff] }
 0xd51   : > { %v5512_v52 = vunpack.i.h.bf16 %v5510_v63  ;;  %v5511_v7 = vunpack.i.l.bf16 %v5510_v63  ;;  %v5505_v19 = vpop.permute.xlu0 %5504 }
 0xd52   : > { %v5507_v23 = vunpack.i.h.bf16 %v5505_v19  ;;  %v5506_v17 = vunpack.i.l.bf16 %v5505_v19 }
 0xd53   : > { %v3843_v45 = vsel %vm3828_vm2, %v3826_v3, %v5511_v7  ;;  %v3844_v34 = vsel %vm3828_vm2, %v3827_v49, %v5512_v52  ;;  %v5849_v49 = vld [vmem:[%s5944_s21 + $0x58] sm:$0xff] }
 0xd54   : > { %v3841_v58 = vsel %vm3828_vm2, %v3824_v21, %v5506_v17  ;;  %v3842_v18 = vsel %vm3828_vm2, %v3825_v31, %v5507_v23  ;;  %v3868_v62 = vpack.c.bf16 %v3844_v34, %v3843_v45  ;;  %v5850_v17 = vld [vmem:[%s5944_s21 + $0x40] sm:$0xff]  ;;  %v5851_v21 = vld [vmem:[%s5944_s21 + $0x48] sm:$0xff]  ;;  %v5852_v34 = vld [vmem:[%s5944_s21 + $0x50] sm:$0xff] }
 0xd55   : > { %v3867_v14 = vpack.c.bf16 %v3842_v18, %v3841_v58 }
 0xd56   : > { %5329 = vmatpush3.bf16.xpose.msra.mxu1 %v5582_v6 }
 0xd57   : > { %5282 = vmatprep.mubr.bf16.mxu1 %v3867_v14  ;;  %5330 = vmatprep.subr.bf16.mxu1 %v5583_v13 }
 0xd58   : > { %5283 = vmatmul.mubr.bf16.gmra.mrb[108].mxu1 %v3868_v62 }
 0xd5e   : > { %5331 = vmatpush3.bf16.xpose.msra.mxu1 %v5583_v13 }
 0xd5f   : > { %5332 = vmatprep.subr.bf16.mxu1 %v5584_v9 }
 0xd66   : > { %5333 = vmatpush3.bf16.xpose.msra.mxu1 %v5584_v9 }
 0xdc6   : > { %v5272_v32 = vpop.f32.mrb[96].mxu1 }
 0xdc7   : > { %v3958_v61 = vpop.f32.mrb[97].mxu1  ;;  %v3967_v12 = vadd.f32 %v5272_v32, %v7581_v1 }
 0xdc8   : > { %v3959_v0 = vadd.f32 %v7581_v1, %v3958_v61  ;;  %v5273_v11 = vpop.f32.mrb[98].mxu1 }
 0xdc9   : > { %v3970_v39 = vadd.f32 %v5273_v11, %v7581_v1  ;;  %v3961_v55 = vpop.f32.mrb[99].mxu1  ;;  %v7600_v22 = vadd.f32 %v5844_v28, %v3967_v12  ;;  %v5853_v11 = vld [vmem:[%s5944_s21 + $0x78] sm:$0xff] }
 0xdca   : > { %v3962_v41 = vadd.f32 %v7581_v1, %v3961_v55  ;;  %v7594_v15 = vadd.f32 %v5842_v29, %v3959_v0  ;;  %v5856_v29 = vld [vmem:[%s5944_s21 + $0x70] sm:$0xff] }
 0xdcb   : > { %v7591_v24 = vadd.f32 %v5841_v26, %v3970_v39  ;;  %v5854_v39 = vld [vmem:[%s5944_s21 + $0x60] sm:$0xff] }
 0xdcc   : > { %v7597_v16 = vadd.f32 %v5843_v57, %v3962_v41  ;;  %v5855_v41 = vld [vmem:[%s5944_s21 + $0x68] sm:$0xff] }
 0xdcd   : > { %v4054_v30 = vpack.c.bf16 %v7591_v24, %v7600_v22 }
 0xdce   : > { %v4053_v4 = vpack.c.bf16 %v7597_v16, %v7594_v15 }
 0xdd0   : > { %5302 = vmatprep.mubr.bf16.mxu0 %v4053_v4 }
 0xdd1   : > { %5303 = vmatmul.mubr.bf16.vlgmr.msra.gmra.mrb[128].mxu0 %v4054_v30 }
 0xddf   : > { %v5276_v43 = vpop.f32.mrb[100].mxu1 }
 0xde0   : > { %v3974_v2 = vpop.f32.mrb[101].mxu1  ;;  %v3983_v51 = vadd.f32 %v5276_v43, %v7581_v1 }
 0xde1   : > { %v3975_v46 = vadd.f32 %v7581_v1, %v3974_v2  ;;  %v5277_v42 = vpop.f32.mrb[102].mxu1 }
 0xde2   : > { %v3986_v48 = vadd.f32 %v5277_v42, %v7581_v1  ;;  %v3977_v8 = vpop.f32.mrb[103].mxu1  ;;  %v7629_v47 = vadd.f32 %v5848_v56, %v3983_v51 }
 0xde3   : > { %v3978_v54 = vadd.f32 %v7581_v1, %v3977_v8  ;;  %v7623_v37 = vadd.f32 %v5846_v50, %v3975_v46 }
 0xde4   : > { %v7620_v20 = vadd.f32 %v5845_v60, %v3986_v48 }
 0xde5   : > { %v7626_v10 = vadd.f32 %v5847_v38, %v3978_v54 }
 0xde6   : > { %v4056_v63 = vpack.c.bf16 %v7620_v20, %v7629_v47 }
 0xde7   : > { %v4055_v33 = vpack.c.bf16 %v7626_v10, %v7623_v37 }
 0xde9   : > { %5306 = vmatprep.mubr.bf16.mxu0 %v4055_v33 }
 0xdea   : > { %5307 = vmatmul.mubr.bf16.gmra.mrb[132].mxu0 %v4056_v63 }
 0xe23   : > { %v5280_v5 = vpop.f32.mrb[104].mxu1 }
 0xe24   : > { %v3990_v25 = vpop.f32.mrb[105].mxu1  ;;  %v3999_v52 = vadd.f32 %v5280_v5, %v7581_v1 }
 0xe25   : > { %v3991_v53 = vadd.f32 %v7581_v1, %v3990_v25  ;;  %v5281_v59 = vpop.f32.mrb[106].mxu1 }
 0xe26   : > { %v4002_v7 = vadd.f32 %v5281_v59, %v7581_v1  ;;  %v3993_v19 = vpop.f32.mrb[107].mxu1  ;;  %v7652_v58 = vadd.f32 %v5852_v34, %v3999_v52 }
 0xe27   : > { %v3994_v3 = vadd.f32 %v7581_v1, %v3993_v19  ;;  %v7646_v31 = vadd.f32 %v5850_v17, %v3991_v53 }
 0xe28   : > { %v7643_v23 = vadd.f32 %v5849_v49, %v4002_v7 }
 0xe29   : > { %v7649_v45 = vadd.f32 %v5851_v21, %v3994_v3 }
 0xe2a   : > { %v4058_v27 = vpack.c.bf16 %v7643_v23, %v7652_v58 }
 0xe2b   : > { %v5284_v18 = vpop.f32.mrb[108].mxu1  ;;  %v4057_v62 = vpack.c.bf16 %v7649_v45, %v7646_v31 }
 0xe2c   : > { %v4006_v14 = vpop.f32.mrb[109].mxu1  ;;  %v4015_v32 = vadd.f32 %v5284_v18, %v7581_v1 }
 0xe2d   : > { %v4007_v44 = vadd.f32 %v7581_v1, %v4006_v14  ;;  %v5285_v40 = vpop.f32.mrb[110].mxu1  ;;  %5310 = vmatprep.mubr.bf16.mxu0 %v4057_v62 }
 0xe2e   : > { %v4018_v35 = vadd.f32 %v5285_v40, %v7581_v1  ;;  %v4009_v61 = vpop.f32.mrb[111].mxu1  ;;  %5311 = vmatmul.mubr.bf16.gmra.mrb[136].mxu0 %v4058_v27  ;;  %v7672_v57 = vadd.f32 %v5856_v29, %v4015_v32 }
 0xe2f   : > { %v4010_v0 = vadd.f32 %v7581_v1, %v4009_v61  ;;  %v7666_v55 = vadd.f32 %v5854_v39, %v4007_v44 }
 0xe30   : > { %v7663_v12 = vadd.f32 %v5853_v11, %v4018_v35 }
 0xe31   : > { %v7669_v26 = vadd.f32 %v5855_v41, %v4010_v0 }
 0xe32   : > { %v4060_v4 = vpack.c.bf16 %v7663_v12, %v7672_v57 }
 0xe33   : > { %v4059_v28 = vpack.c.bf16 %v7669_v26, %v7666_v55 }
 0xe35   : > { %5314 = vmatprep.mubr.bf16.mxu0 %v4059_v28 }
 0xe36   : > { %5315 = vmatmul.mubr.bf16.gmra.mrb[140].mxu0 %v4060_v4 }
 0xea4   : > { %v5304_v1 = vpop.f32.mrb[128].mxu0 }
 0xea5   : > { %v4143_v36 = vpop.f32.mrb[129].mxu0 }
 0xea6   : > { %v5305_v30 = vpop.f32.mrb[130].mxu0 }
 0xea7   : > { %v4223_v6 = vpack.c.bf16 %v5305_v30, %v5304_v1  ;;  %v4146_v13 = vpop.f32.mrb[131].mxu0 }
 0xea8   : > { %v4222_v43 = vpack.c.bf16 %v4146_v13, %v4143_v36 }
 0xeaa   : > { %5334 = vmatprep.mubr.bf16.mxu1 %v4222_v43 }
 0xeab   : > { %5335 = vmatmul.mubr.bf16.vlgmr.msra.gmra.mrb[112].mxu1 %v4223_v6 }
 0xebd   : > { %v5308_v2 = vpop.f32.mrb[132].mxu0 }
 0xebe   : > { %v4159_v46 = vpop.f32.mrb[133].mxu0 }
 0xebf   : > { %v5309_v42 = vpop.f32.mrb[134].mxu0 }
 0xec0   : > { %v4225_v51 = vpack.c.bf16 %v5309_v42, %v5308_v2  ;;  %v4162_v48 = vpop.f32.mrb[135].mxu0 }
 0xec1   : > { %v4224_v8 = vpack.c.bf16 %v4162_v48, %v4159_v46 }
 0xec3   : > { %5338 = vmatprep.mubr.bf16.mxu1 %v4224_v8 }
 0xec4   : > { %5339 = vmatmul.mubr.bf16.gmra.mrb[116].mxu1 %v4225_v51 }
 0xf01   : > { %v5312_v54 = vpop.f32.mrb[136].mxu0 }
 0xf02   : > { %v4175_v60 = vpop.f32.mrb[137].mxu0 }
 0xf03   : > { %v5313_v50 = vpop.f32.mrb[138].mxu0 }
 0xf04   : > { %v4227_v38 = vpack.c.bf16 %v5313_v50, %v5312_v54  ;;  %v4178_v56 = vpop.f32.mrb[139].mxu0 }
 0xf05   : > { %v4226_v9 = vpack.c.bf16 %v4178_v56, %v4175_v60 }
 0xf07   : > { %5342 = vmatprep.mubr.bf16.mxu1 %v4226_v9 }
 0xf08   : > { %5343 = vmatmul.mubr.bf16.gmra.mrb[120].mxu1 %v4227_v38 }
 0xf09   : > { %v5316_v33 = vpop.f32.mrb[140].mxu0 }
 0xf0a   : > { %v4191_v63 = vpop.f32.mrb[141].mxu0 }
 0xf0b   : > { %v5317_v5 = vpop.f32.mrb[142].mxu0 }
 0xf0c   : > { %v4229_v25 = vpack.c.bf16 %v5317_v5, %v5316_v33  ;;  %v4194_v53 = vpop.f32.mrb[143].mxu0 }
 0xf0d   : > { %v4228_v59 = vpack.c.bf16 %v4194_v53, %v4191_v63 }
 0xf0f   : > { %5346 = vmatprep.mubr.bf16.mxu1 %v4228_v59 }
 0xf10   : > { %5347 = vmatmul.mubr.bf16.gmra.mrb[124].mxu1 %v4229_v25 }
 0xf7e   : > { %v5336_v52 = vpop.f32.mrb[112].mxu1 }
 0xf7f   : > { %v4321_v7 = vadd.f32 %v5336_v52, %v7600_v22  ;;  %v4312_v19 = vpop.f32.mrb[113].mxu1 }
 0xf80   : > { %v4313_v3 = vadd.f32 %v4312_v19, %v7594_v15  ;;  %v5337_v49 = vpop.f32.mrb[114].mxu1 }
 0xf81   : > { %4377 = vst [vmem:[%s7683_s28 + $0x10] sm:$0xff] %v4321_v7  ;;  %v4324_v17 = vadd.f32 %v5337_v49, %v7591_v24  ;;  %v4315_v21 = vpop.f32.mrb[115].mxu1 }
 0xf82   : > { %4375 = vst [vmem:[%s7683_s28] sm:$0xff] %v4313_v3  ;;  %v4316_v34 = vadd.f32 %v4315_v21, %v7597_v16 }
 0xf83   : > { %4378 = vst [vmem:[%s7683_s28 + $0x18] sm:$0xff] %v4324_v17 }
 0xf84   : > { %4376 = vst [vmem:[%s7683_s28 + $0x8] sm:$0xff] %v4316_v34 }
 0xf97   : > { %v5340_v18 = vpop.f32.mrb[116].mxu1 }
 0xf98   : > { %v4337_v22 = vadd.f32 %v5340_v18, %v7629_v47  ;;  %v4328_v62 = vpop.f32.mrb[117].mxu1 }
 0xf99   : > { %v4329_v15 = vadd.f32 %v4328_v62, %v7623_v37  ;;  %v5341_v14 = vpop.f32.mrb[118].mxu1 }
 0xf9a   : > { %4381 = vst [vmem:[%s7683_s28 + $0x30] sm:$0xff] %v4337_v22  ;;  %v4340_v24 = vadd.f32 %v5341_v14, %v7620_v20  ;;  %v4331_v27 = vpop.f32.mrb[119].mxu1 }
 0xf9b   : > { %4379 = vst [vmem:[%s7683_s28 + $0x20] sm:$0xff] %v4329_v15  ;;  %v4332_v16 = vadd.f32 %v4331_v27, %v7626_v10 }
 0xf9c   : > { %4382 = vst [vmem:[%s7683_s28 + $0x38] sm:$0xff] %v4340_v24 }
 0xf9d   : > { %4380 = vst [vmem:[%s7683_s28 + $0x28] sm:$0xff] %v4332_v16 }
 0xfdb   : > { %v5344_v44 = vpop.f32.mrb[120].mxu1 }
 0xfdc   : > { %v4353_v47 = vadd.f32 %v5344_v44, %v7652_v58  ;;  %v4344_v40 = vpop.f32.mrb[121].mxu1 }
 0xfdd   : > { %v4345_v37 = vadd.f32 %v4344_v40, %v7646_v31  ;;  %v5345_v32 = vpop.f32.mrb[122].mxu1 }
 0xfde   : > { %4385 = vst [vmem:[%s7683_s28 + $0x50] sm:$0xff] %v4353_v47  ;;  %v4356_v20 = vadd.f32 %v5345_v32, %v7643_v23  ;;  %v4347_v35 = vpop.f32.mrb[123].mxu1 }
 0xfdf   : > { %4383 = vst [vmem:[%s7683_s28 + $0x40] sm:$0xff] %v4345_v37  ;;  %v4348_v10 = vadd.f32 %v4347_v35, %v7649_v45 }
 0xfe0   : > { %4386 = vst [vmem:[%s7683_s28 + $0x58] sm:$0xff] %v4356_v20 }
 0xfe1   : > { %4384 = vst [vmem:[%s7683_s28 + $0x48] sm:$0xff] %v4348_v10 }
 0xfe3   : > { %v5348_v61 = vpop.f32.mrb[124].mxu1 }
 0xfe4   : > { %v4369_v58 = vadd.f32 %v5348_v61, %v7672_v57  ;;  %v4360_v0 = vpop.f32.mrb[125].mxu1 }
 0xfe5   : > { %v4361_v11 = vadd.f32 %v4360_v0, %v7666_v55  ;;  %v5349_v31 = vpop.f32.mrb[126].mxu1 }
 0xfe6   : > { %4389 = vst [vmem:[%s7683_s28 + $0x70] sm:$0xff] %v4369_v58  ;;  %v4372_v39 = vadd.f32 %v5349_v31, %v7663_v12  ;;  %v4363_v41 = vpop.f32.mrb[127].mxu1 }
 0xfe7   : > { %4387 = vst [vmem:[%s7683_s28 + $0x60] sm:$0xff] %v4361_v11  ;;  %v4364_v23 = vadd.f32 %v4363_v41, %v7669_v26 }
 0xfe8   : > { %4390 = vst [vmem:[%s7683_s28 + $0x78] sm:$0xff] %v4372_v39 }
 0xfe9   : > { %4388 = vst [vmem:[%s7683_s28 + $0x68] sm:$0xff] %v4364_v23 }
 0xfea PF: > { %s18_s27 = sadd.s32 1, %s5863_s27  }
 0xfeb   : > { %p15_p4 = scmp.ge.s32.totalorder %s18_s27, 4  }
 0xfed   :  { %17 = sbr.rel (!%p15_p4) target bundleno = 1 (0x1), region = 82 }

</bundles_post_ra>
